<compile_context>
chip_gen: v6e
topology: v6e:2x2x1
jax: 0.10.0
libtpu: 0.0.40
codegen_flags: <defaults>
</compile_context>

<pallas_src>
import jax
import jax.numpy as jnp
from jax.experimental import pallas as pl
from jax.experimental.pallas import tpu as pltpu

BN_EPS = 1e-5
K = 5            # conv kernel size
STRIDE = 2       # conv stride
SEG = 256        # lane padding of every (batch, phase) time segment

# Static network geometry, pinned by the Linear(32*222, 3) head.
L_IN = 1800
L1, L2, L3 = 898, 447, 222          # time length after conv1 / conv2 / conv3
PH_IN, PH1, PH2 = 8, 4, 2           # time-phase split of input / act1 / act2


def _plen(total, nphases, p):
    """Number of positions o in [0, total) with o % nphases == p."""
    return (total - p + nphases - 1) // nphases


def _store_seg(slab_ref, seg_idx, parts, t_valid):
    """Write one im2col segment: valid lanes + explicit zero tail (so the
    conv dot produces exact zeros on padded lanes -> BN stats stay exact)."""
    seg = jnp.concatenate(parts, axis=0)                       # (K*Cin, t_valid)
    s0 = seg_idx * SEG
    slab_ref[:, s0:s0 + t_valid] = seg
    slab_ref[:, s0 + t_valid:s0 + SEG] = jnp.zeros(
        (seg.shape[0], SEG - t_valid), jnp.float32)


# ------------------------------------------------------------------ kernel --

def dqn_fused_kernel(xph_ref, w1_ref, w2_ref, w3_ref, hw_ref, pcols_ref, hb_ref,
                     out_ref,
                     slab1_ref, slab2_ref, slab3_ref,
                     act1_ref, act2_ref, act3_ref):
    B = out_ref.shape[1]

    # Packed per-channel BN params (columns of pcols): g1, be1, g2, be2, g3, be3.
    g1, be1 = pcols_ref[0:16, 0:1], pcols_ref[0:16, 1:2]
    g2, be2 = pcols_ref[:, 2:3], pcols_ref[:, 3:4]
    g3, be3 = pcols_ref[:, 4:5], pcols_ref[:, 5:6]

    def bn_relu(y, n_valid, g, be):
        # Full-buffer stats are exact: padded lanes of y are exactly 0 and we
        # divide by the true element count.  (Single-pass E[x^2]-E[x]^2; fine
        # at these activation scales / 1e-3 tolerance.)
        s = jnp.sum(y, axis=1, keepdims=True)
        sq = jnp.sum(y * y, axis=1, keepdims=True)
        m = s / n_valid
        inv = jax.lax.rsqrt(sq / n_valid - m * m + BN_EPS) * g
        return jnp.maximum((y - m) * inv + be, 0.0)

    # ---------- layer 1: im2col (input in 8 time phases -> output in 4) + 1 dot
    for b in range(B):
        for p in range(PH1):
            t_v = _plen(L1, PH1, p)
            parts = []
            for k in range(K):
                idx = STRIDE * p + k
                q, off = idx % PH_IN, idx // PH_IN
                r0 = (q * B + b) * 8
                parts.append(xph_ref[r0:r0 + 8, off:off + t_v])        # (8, t_v)
            _store_seg(slab1_ref, b * PH1 + p, parts, t_v)
    y1 = jnp.dot(w1_ref[...], slab1_ref[...],
                 preferred_element_type=jnp.float32)                   # (16, B*4*256)
    act1_ref[...] = bn_relu(y1, float(B * L1), g1, be1)

    # ---------- layer 2: im2col (input in 4 phases -> output in 2) + 1 dot
    for b in range(B):
        for p in range(PH2):
            t_v = _plen(L2, PH2, p)
            parts = []
            for k in range(K):
                idx = STRIDE * p + k
                q, off = idx % PH1, idx // PH1
                base = (b * PH1 + q) * SEG
                parts.append(act1_ref[:, base + off:base + off + t_v])  # (16, t_v)
            _store_seg(slab2_ref, b * PH2 + p, parts, t_v)
    y2 = jnp.dot(w2_ref[...], slab2_ref[...],
                 preferred_element_type=jnp.float32)                   # (32, B*2*256)
    act2_ref[...] = bn_relu(y2, float(B * L2), g2, be2)

    # ---------- layer 3: im2col (input in 2 phases -> natural order) + 1 dot
    for b in range(B):
        parts = []
        for k in range(K):
            q, off = k % PH2, k // PH2
            base = (b * PH2 + q) * SEG
            parts.append(act2_ref[:, base + off:base + off + L3])      # (32, 222)
        _store_seg(slab3_ref, b, parts, L3)
    y3 = jnp.dot(w3_ref[...], slab3_ref[...],
                 preferred_element_type=jnp.float32)                   # (32, B*256)
    act3_ref[...] = bn_relu(y3, float(B * L3), g3, be3)

    # ---------- linear head: one multiply + two reductions per batch row.
    # hw_ref is (3, 32, 256) with zero-padded lanes, which also masks out the
    # garbage that BN+ReLU left in act3's padded lanes.
    cols = []
    for b in range(B):
        yb = act3_ref[:, b * SEG:(b + 1) * SEG]                        # (32, 256)
        prod = hw_ref[...] * yb[None, :, :]                            # (3, 32, 256)
        col = jnp.sum(jnp.sum(prod, axis=2), axis=1, keepdims=True)    # (3, 1)
        cols.append(col)
    out_ref[...] = jnp.concatenate(cols, axis=1) + hb_ref[...]         # (3, B)


# ----------------------------------------------------------------- wrapper --

def dqn_forward(params, x):
    """x: (B, 6, 1800) NCL float32 -> (B, 3)."""
    B, c_in, L = x.shape
    assert c_in == 6 and L == L_IN, (c_in, L)

    # Polyphase (t % 8) split of the input so every stride-2 tap in the kernel
    # is a unit-stride lane slice; channels padded 6 -> 8 with zeros.
    # Row layout: (phase * B + b) * 8 + channel.
    xp = jnp.pad(x.astype(jnp.float32), ((0, 0), (0, 2), (0, 0)))           # (B, 8, 1800)
    xph = xp.reshape(B, 8, L // PH_IN, PH_IN).transpose(3, 0, 1, 2)         # (8, B, 8, 225)
    xph = xph.reshape(PH_IN * B * 8, L // PH_IN)                            # (8B*8, 225)

    # Tap-concatenated conv weights: column k*Cin + c  <->  im2col row k*Cin + c.
    w1 = jnp.pad(params["w1"], ((0, 0), (0, 2), (0, 0)))                    # (16, 8, 5)
    w1 = jnp.transpose(w1, (0, 2, 1)).reshape(16, K * 8).astype(jnp.float32)
    w2 = jnp.transpose(params["w2"], (0, 2, 1)).reshape(32, K * 16).astype(jnp.float32)
    w3 = jnp.transpose(params["w3"], (0, 2, 1)).reshape(32, K * 32).astype(jnp.float32)

    # Head weights as (3, 32, 256): [o, c, t] matches PyTorch x.view(B, -1)
    # (channel-major flatten); time lanes padded 222 -> 256 with zeros.
    hw = params["hw"].reshape(3, 32, L3)
    hw = jnp.pad(hw, ((0, 0), (0, 0), (0, SEG - L3))).astype(jnp.float32)
    hb = params["hb"].reshape(3, 1).astype(jnp.float32)

    # Pack the six per-channel BN params as columns of one (32, 8) array.
    # NOTE: conv biases b1/b2/b3 are deliberately not passed -- a per-channel
    # bias immediately followed by train-mode BatchNorm cancels exactly.
    def col32(v):
        v = v.astype(jnp.float32).reshape(-1, 1)
        return jnp.pad(v, ((0, 32 - v.shape[0]), (0, 0)))
    pcols = jnp.concatenate(
        [col32(params["g1"]), col32(params["be1"]),
         col32(params["g2"]), col32(params["be2"]),
         col32(params["g3"]), col32(params["be3"]),
         jnp.zeros((32, 2), jnp.float32)], axis=1)                          # (32, 8)

    vmem = lambda: pl.BlockSpec(memory_space=pltpu.MemorySpace.VMEM)
    out = pl.pallas_call(
        dqn_fused_kernel,
        out_shape=jax.ShapeDtypeStruct((3, B), jnp.float32),
        in_specs=[vmem() for _ in range(7)],
        out_specs=vmem(),
        scratch_shapes=[
            pltpu.VMEM((K * 8,  B * PH1 * SEG), jnp.float32),   # im2col slab, layer 1
            pltpu.VMEM((K * 16, B * PH2 * SEG), jnp.float32),   # im2col slab, layer 2
            pltpu.VMEM((K * 32, B * SEG), jnp.float32),         # im2col slab, layer 3
            pltpu.VMEM((16, B * PH1 * SEG), jnp.float32),       # act1 (post BN+ReLU)
            pltpu.VMEM((32, B * PH2 * SEG), jnp.float32),       # act2
            pltpu.VMEM((32, B * SEG), jnp.float32),             # act3
        ],
    )(xph, w1, w2, w3, hw, pcols, hb)
    return out.T                                                # (B, 3)


# ------------------------------------------------------------- reference ----

def _reference_forward(params, x):
    hp = jax.lax.Precision.HIGHEST

    def conv_bn_relu_ref(x, w, b, g, be):
        y = jax.lax.conv_general_dilated(
            x, w, window_strides=(STRIDE,), padding="VALID",
            dimension_numbers=("NCH", "OIH", "NCH"), precision=hp)
        y = y + b[None, :, None]
        mean = jnp.mean(y, axis=(0, 2), keepdims=True)
        var = jnp.var(y, axis=(0, 2), keepdims=True)   # biased, train-mode BN
        y = (y - mean) * jax.lax.rsqrt(var + BN_EPS)
        return jnp.maximum(y * g[None, :, None] + be[None, :, None], 0.0)

    x = conv_bn_relu_ref(x, params["w1"], params["b1"], params["g1"], params["be1"])
    x = conv_bn_relu_ref(x, params["w2"], params["b2"], params["g2"], params["be2"])
    x = conv_bn_relu_ref(x, params["w3"], params["b3"], params["g3"], params["be3"])
    flat = x.reshape(x.shape[0], -1)
    return jnp.dot(flat, params["hw"].T, precision=hp) + params["hb"][None, :]


# ----------------------------------------------------------------- params ---

def init_params(key):
    def uniform(k, shape, fan_in):
        bound = 1.0 / jnp.sqrt(float(fan_in))
        return jax.random.uniform(k, shape, jnp.float32, -bound, bound)

    ks = jax.random.split(key, 8)
    p = {}
    p["w1"] = uniform(ks[0], (16, 6, 5), 6 * 5)
    p["b1"] = uniform(ks[1], (16,), 6 * 5)
    p["g1"] = jnp.ones((16,), jnp.float32)
    p["be1"] = jnp.zeros((16,), jnp.float32)
    p["w2"] = uniform(ks[2], (32, 16, 5), 16 * 5)
    p["b2"] = uniform(ks[3], (32,), 16 * 5)
    p["g2"] = jnp.ones((32,), jnp.float32)
    p["be2"] = jnp.zeros((32,), jnp.float32)
    p["w3"] = uniform(ks[4], (32, 32, 5), 32 * 5)
    p["b3"] = uniform(ks[5], (32,), 32 * 5)
    p["g3"] = jnp.ones((32,), jnp.float32)
    p["be3"] = jnp.zeros((32,), jnp.float32)
    p["hw"] = uniform(ks[6], (3, 32 * L3), 32 * L3)
    p["hb"] = uniform(ks[7], (3,), 32 * L3)
    return p


# ------------------------------------------------------------------- main ---

if __name__ == "__main__":
    key = jax.random.PRNGKey(0)
    k_param, k_x = jax.random.split(key)
    params = init_params(k_param)

    # The Linear(32*222, 3) head pins the input length: 1800 -> 898 -> 447 -> 222.
    B, C_IN = 2, 6
    x = jax.random.normal(k_x, (B, C_IN, L_IN), jnp.float32)

    out = jax.block_until_ready(jax.jit(dqn_forward)(params, x))
    assert out.shape == (B, 3), out.shape

    ref = _reference_forward(params, x)
    assert jnp.allclose(out, ref, atol=1e-3, rtol=1e-3), (out, ref)

    print("KERNEL_OK")
</pallas_src>

<mosaic_0001>
module attributes {stable_mosaic.version = 11 : i64} {
  func.func @dqn_fused_kernel(%arg0: memref<128x225xf32, #tpu.memory_space<vmem>>, %arg1: memref<16x40xf32, #tpu.memory_space<vmem>>, %arg2: memref<32x80xf32, #tpu.memory_space<vmem>>, %arg3: memref<32x160xf32, #tpu.memory_space<vmem>>, %arg4: memref<3x32x256xf32, #tpu.memory_space<vmem>>, %arg5: memref<32x8xf32, #tpu.memory_space<vmem>>, %arg6: memref<3x1xf32, #tpu.memory_space<vmem>>, %arg7: memref<3x2xf32, #tpu.memory_space<vmem>>, %arg8: memref<40x2048xf32, #tpu.memory_space<vmem>>, %arg9: memref<80x1024xf32, #tpu.memory_space<vmem>>, %arg10: memref<160x512xf32, #tpu.memory_space<vmem>>, %arg11: memref<16x2048xf32, #tpu.memory_space<vmem>>, %arg12: memref<32x1024xf32, #tpu.memory_space<vmem>>, %arg13: memref<32x512xf32, #tpu.memory_space<vmem>>) attributes {dimension_semantics = [], scalar_prefetch = 0 : i64, scratch_operands = 6 : i64, tpu.core_type = #tpu.core_type<tc>} {
    %c0 = arith.constant 0 : index
    %c0_0 = arith.constant 0 : index
    %0 = vector.load %arg5[%c0, %c0_0] : memref<32x8xf32, #tpu.memory_space<vmem>>, vector<16x1xf32>
    %c0_1 = arith.constant 0 : index
    %c1 = arith.constant 1 : index
    %1 = vector.load %arg5[%c0_1, %c1] : memref<32x8xf32, #tpu.memory_space<vmem>>, vector<16x1xf32>
    %c0_2 = arith.constant 0 : index
    %c2 = arith.constant 2 : index
    %2 = vector.load %arg5[%c0_2, %c2] : memref<32x8xf32, #tpu.memory_space<vmem>>, vector<32x1xf32>
    %c0_3 = arith.constant 0 : index
    %c3 = arith.constant 3 : index
    %3 = vector.load %arg5[%c0_3, %c3] : memref<32x8xf32, #tpu.memory_space<vmem>>, vector<32x1xf32>
    %c0_4 = arith.constant 0 : index
    %c4 = arith.constant 4 : index
    %4 = vector.load %arg5[%c0_4, %c4] : memref<32x8xf32, #tpu.memory_space<vmem>>, vector<32x1xf32>
    %c0_5 = arith.constant 0 : index
    %c5 = arith.constant 5 : index
    %5 = vector.load %arg5[%c0_5, %c5] : memref<32x8xf32, #tpu.memory_space<vmem>>, vector<32x1xf32>
    %c0_6 = arith.constant 0 : index
    %c0_7 = arith.constant 0 : index
    %6 = vector.load %arg0[%c0_6, %c0_7] : memref<128x225xf32, #tpu.memory_space<vmem>>, vector<8x225xf32>
    %c16 = arith.constant 16 : index
    %c0_8 = arith.constant 0 : index
    %7 = vector.load %arg0[%c16, %c0_8] : memref<128x225xf32, #tpu.memory_space<vmem>>, vector<8x225xf32>
    %c32 = arith.constant 32 : index
    %c0_9 = arith.constant 0 : index
    %8 = vector.load %arg0[%c32, %c0_9] : memref<128x225xf32, #tpu.memory_space<vmem>>, vector<8x225xf32>
    %c48 = arith.constant 48 : index
    %c0_10 = arith.constant 0 : index
    %9 = vector.load %arg0[%c48, %c0_10] : memref<128x225xf32, #tpu.memory_space<vmem>>, vector<8x225xf32>
    %c64 = arith.constant 64 : index
    %c0_11 = arith.constant 0 : index
    %10 = vector.load %arg0[%c64, %c0_11] : memref<128x225xf32, #tpu.memory_space<vmem>>, vector<8x225xf32>
    %11 = tpu.concatenate %6, %7, %8, %9, %10 in 0 : vector<8x225xf32>, vector<8x225xf32>, vector<8x225xf32>, vector<8x225xf32>, vector<8x225xf32> -> vector<40x225xf32>
    %c0_12 = arith.constant 0 : index
    %c0_13 = arith.constant 0 : index
    %12 = vector.load %arg8[%c0_12, %c0_13] : memref<40x2048xf32, #tpu.memory_space<vmem>>, vector<40x225xf32>
    tpu.vector_store %arg8[%c0_12, %c0_13], %11 {strides = array<i32>} : memref<40x2048xf32, #tpu.memory_space<vmem>>, vector<40x225xf32>,
    %cst = arith.constant 0.000000e+00 : f32
    %13 = vector.broadcast %cst : f32 to vector<40x31xf32>
    %c0_14 = arith.constant 0 : index
    %c225 = arith.constant 225 : index
    %14 = vector.load %arg8[%c0_14, %c225] : memref<40x2048xf32, #tpu.memory_space<vmem>>, vector<40x31xf32>
    tpu.vector_store %arg8[%c0_14, %c225], %13 {strides = array<i32>} : memref<40x2048xf32, #tpu.memory_space<vmem>>, vector<40x31xf32>,
    %c32_15 = arith.constant 32 : index
    %c0_16 = arith.constant 0 : index
    %15 = vector.load %arg0[%c32_15, %c0_16] : memref<128x225xf32, #tpu.memory_space<vmem>>, vector<8x225xf32>
    %c48_17 = arith.constant 48 : index
    %c0_18 = arith.constant 0 : index
    %16 = vector.load %arg0[%c48_17, %c0_18] : memref<128x225xf32, #tpu.memory_space<vmem>>, vector<8x225xf32>
    %c64_19 = arith.constant 64 : index
    %c0_20 = arith.constant 0 : index
    %17 = vector.load %arg0[%c64_19, %c0_20] : memref<128x225xf32, #tpu.memory_space<vmem>>, vector<8x225xf32>
    %c80 = arith.constant 80 : index
    %c0_21 = arith.constant 0 : index
    %18 = vector.load %arg0[%c80, %c0_21] : memref<128x225xf32, #tpu.memory_space<vmem>>, vector<8x225xf32>
    %c96 = arith.constant 96 : index
    %c0_22 = arith.constant 0 : index
    %19 = vector.load %arg0[%c96, %c0_22] : memref<128x225xf32, #tpu.memory_space<vmem>>, vector<8x225xf32>
    %20 = tpu.concatenate %15, %16, %17, %18, %19 in 0 : vector<8x225xf32>, vector<8x225xf32>, vector<8x225xf32>, vector<8x225xf32>, vector<8x225xf32> -> vector<40x225xf32>
    %c0_23 = arith.constant 0 : index
    %c256 = arith.constant 256 : index
    %21 = vector.load %arg8[%c0_23, %c256] : memref<40x2048xf32, #tpu.memory_space<vmem>>, vector<40x225xf32>
    tpu.vector_store %arg8[%c0_23, %c256], %20 {strides = array<i32>} : memref<40x2048xf32, #tpu.memory_space<vmem>>, vector<40x225xf32>,
    %cst_24 = arith.constant 0.000000e+00 : f32
    %22 = vector.broadcast %cst_24 : f32 to vector<40x31xf32>
    %c0_25 = arith.constant 0 : index
    %c481 = arith.constant 481 : index
    %23 = vector.load %arg8[%c0_25, %c481] : memref<40x2048xf32, #tpu.memory_space<vmem>>, vector<40x31xf32>
    tpu.vector_store %arg8[%c0_25, %c481], %22 {strides = array<i32>} : memref<40x2048xf32, #tpu.memory_space<vmem>>, vector<40x31xf32>,
    %c64_26 = arith.constant 64 : index
    %c0_27 = arith.constant 0 : index
    %24 = vector.load %arg0[%c64_26, %c0_27] : memref<128x225xf32, #tpu.memory_space<vmem>>, vector<8x224xf32>
    %c80_28 = arith.constant 80 : index
    %c0_29 = arith.constant 0 : index
    %25 = vector.load %arg0[%c80_28, %c0_29] : memref<128x225xf32, #tpu.memory_space<vmem>>, vector<8x224xf32>
    %c96_30 = arith.constant 96 : index
    %c0_31 = arith.constant 0 : index
    %26 = vector.load %arg0[%c96_30, %c0_31] : memref<128x225xf32, #tpu.memory_space<vmem>>, vector<8x224xf32>
    %c112 = arith.constant 112 : index
    %c0_32 = arith.constant 0 : index
    %27 = vector.load %arg0[%c112, %c0_32] : memref<128x225xf32, #tpu.memory_space<vmem>>, vector<8x224xf32>
    %c0_33 = arith.constant 0 : index
    %c1_34 = arith.constant 1 : index
    %28 = vector.load %arg0[%c0_33, %c1_34] : memref<128x225xf32, #tpu.memory_space<vmem>>, vector<8x224xf32>
    %29 = tpu.concatenate %24, %25, %26, %27, %28 in 0 : vector<8x224xf32>, vector<8x224xf32>, vector<8x224xf32>, vector<8x224xf32>, vector<8x224xf32> -> vector<40x224xf32>
    %c0_35 = arith.constant 0 : index
    %c512 = arith.constant 512 : index
    %30 = vector.load %arg8[%c0_35, %c512] : memref<40x2048xf32, #tpu.memory_space<vmem>>, vector<40x224xf32>
    tpu.vector_store %arg8[%c0_35, %c512], %29 {strides = array<i32>} : memref<40x2048xf32, #tpu.memory_space<vmem>>, vector<40x224xf32>,
    %cst_36 = arith.constant 0.000000e+00 : f32
    %31 = vector.broadcast %cst_36 : f32 to vector<40x32xf32>
    %c0_37 = arith.constant 0 : index
    %c736 = arith.constant 736 : index
    %32 = vector.load %arg8[%c0_37, %c736] : memref<40x2048xf32, #tpu.memory_space<vmem>>, vector<40x32xf32>
    tpu.vector_store %arg8[%c0_37, %c736], %31 {strides = array<i32>} : memref<40x2048xf32, #tpu.memory_space<vmem>>, vector<40x32xf32>,
    %c96_38 = arith.constant 96 : index
    %c0_39 = arith.constant 0 : index
    %33 = vector.load %arg0[%c96_38, %c0_39] : memref<128x225xf32, #tpu.memory_space<vmem>>, vector<8x224xf32>
    %c112_40 = arith.constant 112 : index
    %c0_41 = arith.constant 0 : index
    %34 = vector.load %arg0[%c112_40, %c0_41] : memref<128x225xf32, #tpu.memory_space<vmem>>, vector<8x224xf32>
    %c0_42 = arith.constant 0 : index
    %c1_43 = arith.constant 1 : index
    %35 = vector.load %arg0[%c0_42, %c1_43] : memref<128x225xf32, #tpu.memory_space<vmem>>, vector<8x224xf32>
    %c16_44 = arith.constant 16 : index
    %c1_45 = arith.constant 1 : index
    %36 = vector.load %arg0[%c16_44, %c1_45] : memref<128x225xf32, #tpu.memory_space<vmem>>, vector<8x224xf32>
    %c32_46 = arith.constant 32 : index
    %c1_47 = arith.constant 1 : index
    %37 = vector.load %arg0[%c32_46, %c1_47] : memref<128x225xf32, #tpu.memory_space<vmem>>, vector<8x224xf32>
    %38 = tpu.concatenate %33, %34, %35, %36, %37 in 0 : vector<8x224xf32>, vector<8x224xf32>, vector<8x224xf32>, vector<8x224xf32>, vector<8x224xf32> -> vector<40x224xf32>
    %c0_48 = arith.constant 0 : index
    %c768 = arith.constant 768 : index
    %39 = vector.load %arg8[%c0_48, %c768] : memref<40x2048xf32, #tpu.memory_space<vmem>>, vector<40x224xf32>
    tpu.vector_store %arg8[%c0_48, %c768], %38 {strides = array<i32>} : memref<40x2048xf32, #tpu.memory_space<vmem>>, vector<40x224xf32>,
    %cst_49 = arith.constant 0.000000e+00 : f32
    %40 = vector.broadcast %cst_49 : f32 to vector<40x32xf32>
    %c0_50 = arith.constant 0 : index
    %c992 = arith.constant 992 : index
    %41 = vector.load %arg8[%c0_50, %c992] : memref<40x2048xf32, #tpu.memory_space<vmem>>, vector<40x32xf32>
    tpu.vector_store %arg8[%c0_50, %c992], %40 {strides = array<i32>} : memref<40x2048xf32, #tpu.memory_space<vmem>>, vector<40x32xf32>,
    %c8 = arith.constant 8 : index
    %c0_51 = arith.constant 0 : index
    %42 = vector.load %arg0[%c8, %c0_51] : memref<128x225xf32, #tpu.memory_space<vmem>>, vector<8x225xf32>
    %c24 = arith.constant 24 : index
    %c0_52 = arith.constant 0 : index
    %43 = vector.load %arg0[%c24, %c0_52] : memref<128x225xf32, #tpu.memory_space<vmem>>, vector<8x225xf32>
    %c40 = arith.constant 40 : index
    %c0_53 = arith.constant 0 : index
    %44 = vector.load %arg0[%c40, %c0_53] : memref<128x225xf32, #tpu.memory_space<vmem>>, vector<8x225xf32>
    %c56 = arith.constant 56 : index
    %c0_54 = arith.constant 0 : index
    %45 = vector.load %arg0[%c56, %c0_54] : memref<128x225xf32, #tpu.memory_space<vmem>>, vector<8x225xf32>
    %c72 = arith.constant 72 : index
    %c0_55 = arith.constant 0 : index
    %46 = vector.load %arg0[%c72, %c0_55] : memref<128x225xf32, #tpu.memory_space<vmem>>, vector<8x225xf32>
    %47 = tpu.concatenate %42, %43, %44, %45, %46 in 0 : vector<8x225xf32>, vector<8x225xf32>, vector<8x225xf32>, vector<8x225xf32>, vector<8x225xf32> -> vector<40x225xf32>
    %c0_56 = arith.constant 0 : index
    %c1024 = arith.constant 1024 : index
    %48 = vector.load %arg8[%c0_56, %c1024] : memref<40x2048xf32, #tpu.memory_space<vmem>>, vector<40x225xf32>
    tpu.vector_store %arg8[%c0_56, %c1024], %47 {strides = array<i32>} : memref<40x2048xf32, #tpu.memory_space<vmem>>, vector<40x225xf32>,
    %cst_57 = arith.constant 0.000000e+00 : f32
    %49 = vector.broadcast %cst_57 : f32 to vector<40x31xf32>
    %c0_58 = arith.constant 0 : index
    %c1249 = arith.constant 1249 : index
    %50 = vector.load %arg8[%c0_58, %c1249] : memref<40x2048xf32, #tpu.memory_space<vmem>>, vector<40x31xf32>
    tpu.vector_store %arg8[%c0_58, %c1249], %49 {strides = array<i32>} : memref<40x2048xf32, #tpu.memory_space<vmem>>, vector<40x31xf32>,
    %c40_59 = arith.constant 40 : index
    %c0_60 = arith.constant 0 : index
    %51 = vector.load %arg0[%c40_59, %c0_60] : memref<128x225xf32, #tpu.memory_space<vmem>>, vector<8x225xf32>
    %c56_61 = arith.constant 56 : index
    %c0_62 = arith.constant 0 : index
    %52 = vector.load %arg0[%c56_61, %c0_62] : memref<128x225xf32, #tpu.memory_space<vmem>>, vector<8x225xf32>
    %c72_63 = arith.constant 72 : index
    %c0_64 = arith.constant 0 : index
    %53 = vector.load %arg0[%c72_63, %c0_64] : memref<128x225xf32, #tpu.memory_space<vmem>>, vector<8x225xf32>
    %c88 = arith.constant 88 : index
    %c0_65 = arith.constant 0 : index
    %54 = vector.load %arg0[%c88, %c0_65] : memref<128x225xf32, #tpu.memory_space<vmem>>, vector<8x225xf32>
    %c104 = arith.constant 104 : index
    %c0_66 = arith.constant 0 : index
    %55 = vector.load %arg0[%c104, %c0_66] : memref<128x225xf32, #tpu.memory_space<vmem>>, vector<8x225xf32>
    %56 = tpu.concatenate %51, %52, %53, %54, %55 in 0 : vector<8x225xf32>, vector<8x225xf32>, vector<8x225xf32>, vector<8x225xf32>, vector<8x225xf32> -> vector<40x225xf32>
    %c0_67 = arith.constant 0 : index
    %c1280 = arith.constant 1280 : index
    %57 = vector.load %arg8[%c0_67, %c1280] : memref<40x2048xf32, #tpu.memory_space<vmem>>, vector<40x225xf32>
    tpu.vector_store %arg8[%c0_67, %c1280], %56 {strides = array<i32>} : memref<40x2048xf32, #tpu.memory_space<vmem>>, vector<40x225xf32>,
    %cst_68 = arith.constant 0.000000e+00 : f32
    %58 = vector.broadcast %cst_68 : f32 to vector<40x31xf32>
    %c0_69 = arith.constant 0 : index
    %c1505 = arith.constant 1505 : index
    %59 = vector.load %arg8[%c0_69, %c1505] : memref<40x2048xf32, #tpu.memory_space<vmem>>, vector<40x31xf32>
    tpu.vector_store %arg8[%c0_69, %c1505], %58 {strides = array<i32>} : memref<40x2048xf32, #tpu.memory_space<vmem>>, vector<40x31xf32>,
    %c72_70 = arith.constant 72 : index
    %c0_71 = arith.constant 0 : index
    %60 = vector.load %arg0[%c72_70, %c0_71] : memref<128x225xf32, #tpu.memory_space<vmem>>, vector<8x224xf32>
    %c88_72 = arith.constant 88 : index
    %c0_73 = arith.constant 0 : index
    %61 = vector.load %arg0[%c88_72, %c0_73] : memref<128x225xf32, #tpu.memory_space<vmem>>, vector<8x224xf32>
    %c104_74 = arith.constant 104 : index
    %c0_75 = arith.constant 0 : index
    %62 = vector.load %arg0[%c104_74, %c0_75] : memref<128x225xf32, #tpu.memory_space<vmem>>, vector<8x224xf32>
    %c120 = arith.constant 120 : index
    %c0_76 = arith.constant 0 : index
    %63 = vector.load %arg0[%c120, %c0_76] : memref<128x225xf32, #tpu.memory_space<vmem>>, vector<8x224xf32>
    %c8_77 = arith.constant 8 : index
    %c1_78 = arith.constant 1 : index
    %64 = vector.load %arg0[%c8_77, %c1_78] : memref<128x225xf32, #tpu.memory_space<vmem>>, vector<8x224xf32>
    %65 = tpu.concatenate %60, %61, %62, %63, %64 in 0 : vector<8x224xf32>, vector<8x224xf32>, vector<8x224xf32>, vector<8x224xf32>, vector<8x224xf32> -> vector<40x224xf32>
    %c0_79 = arith.constant 0 : index
    %c1536 = arith.constant 1536 : index
    %66 = vector.load %arg8[%c0_79, %c1536] : memref<40x2048xf32, #tpu.memory_space<vmem>>, vector<40x224xf32>
    tpu.vector_store %arg8[%c0_79, %c1536], %65 {strides = array<i32>} : memref<40x2048xf32, #tpu.memory_space<vmem>>, vector<40x224xf32>,
    %cst_80 = arith.constant 0.000000e+00 : f32
    %67 = vector.broadcast %cst_80 : f32 to vector<40x32xf32>
    %c0_81 = arith.constant 0 : index
    %c1760 = arith.constant 1760 : index
    %68 = vector.load %arg8[%c0_81, %c1760] : memref<40x2048xf32, #tpu.memory_space<vmem>>, vector<40x32xf32>
    tpu.vector_store %arg8[%c0_81, %c1760], %67 {strides = array<i32>} : memref<40x2048xf32, #tpu.memory_space<vmem>>, vector<40x32xf32>,
    %c104_82 = arith.constant 104 : index
    %c0_83 = arith.constant 0 : index
    %69 = vector.load %arg0[%c104_82, %c0_83] : memref<128x225xf32, #tpu.memory_space<vmem>>, vector<8x224xf32>
    %c120_84 = arith.constant 120 : index
    %c0_85 = arith.constant 0 : index
    %70 = vector.load %arg0[%c120_84, %c0_85] : memref<128x225xf32, #tpu.memory_space<vmem>>, vector<8x224xf32>
    %c8_86 = arith.constant 8 : index
    %c1_87 = arith.constant 1 : index
    %71 = vector.load %arg0[%c8_86, %c1_87] : memref<128x225xf32, #tpu.memory_space<vmem>>, vector<8x224xf32>
    %c24_88 = arith.constant 24 : index
    %c1_89 = arith.constant 1 : index
    %72 = vector.load %arg0[%c24_88, %c1_89] : memref<128x225xf32, #tpu.memory_space<vmem>>, vector<8x224xf32>
    %c40_90 = arith.constant 40 : index
    %c1_91 = arith.constant 1 : index
    %73 = vector.load %arg0[%c40_90, %c1_91] : memref<128x225xf32, #tpu.memory_space<vmem>>, vector<8x224xf32>
    %74 = tpu.concatenate %69, %70, %71, %72, %73 in 0 : vector<8x224xf32>, vector<8x224xf32>, vector<8x224xf32>, vector<8x224xf32>, vector<8x224xf32> -> vector<40x224xf32>
    %c0_92 = arith.constant 0 : index
    %c1792 = arith.constant 1792 : index
    %75 = vector.load %arg8[%c0_92, %c1792] : memref<40x2048xf32, #tpu.memory_space<vmem>>, vector<40x224xf32>
    tpu.vector_store %arg8[%c0_92, %c1792], %74 {strides = array<i32>} : memref<40x2048xf32, #tpu.memory_space<vmem>>, vector<40x224xf32>,
    %cst_93 = arith.constant 0.000000e+00 : f32
    %76 = vector.broadcast %cst_93 : f32 to vector<40x32xf32>
    %c0_94 = arith.constant 0 : index
    %c2016 = arith.constant 2016 : index
    %77 = vector.load %arg8[%c0_94, %c2016] : memref<40x2048xf32, #tpu.memory_space<vmem>>, vector<40x32xf32>
    tpu.vector_store %arg8[%c0_94, %c2016], %76 {strides = array<i32>} : memref<40x2048xf32, #tpu.memory_space<vmem>>, vector<40x32xf32>,
    %c0_95 = arith.constant 0 : index
    %c0_96 = arith.constant 0 : index
    %78 = vector.load %arg1[%c0_95, %c0_96] : memref<16x40xf32, #tpu.memory_space<vmem>>, vector<16x40xf32>
    %c0_97 = arith.constant 0 : index
    %c0_98 = arith.constant 0 : index
    %79 = vector.load %arg8[%c0_97, %c0_98] : memref<40x2048xf32, #tpu.memory_space<vmem>>, vector<40x2048xf32>
    %cst_99 = arith.constant dense<0.000000e+00> : vector<16x2048xf32>
    %80 = tpu.matmul %78, %79, %cst_99 {dimension_numbers = #tpu.dot_dimension_numbers<[1], [0], [0], [1], [0, 0, 1, 1], [], []>} : vector<16x40xf32>, vector<40x2048xf32>, vector<16x2048xf32> -> vector<16x2048xf32>
    %cst_100 = arith.constant dense<0.000000e+00> : vector<16xf32>
    %81 = vector.multi_reduction <add>, %80, %cst_100 [1] : vector<16x2048xf32> to vector<16xf32>
    %82 = vector.shape_cast %81 : vector<16xf32> to vector<16x1xf32>
    %83 = arith.mulf %80, %80 : vector<16x2048xf32>
    %cst_101 = arith.constant dense<0.000000e+00> : vector<16xf32>
    %84 = vector.multi_reduction <add>, %83, %cst_101 [1] : vector<16x2048xf32> to vector<16xf32>
    %85 = vector.shape_cast %84 : vector<16xf32> to vector<16x1xf32>
    %cst_102 = arith.constant 1.796000e+03 : f32
    %86 = vector.broadcast %cst_102 : f32 to vector<16x1xf32>
    %87 = arith.divf %82, %86 : vector<16x1xf32>
    %cst_103 = arith.constant 1.796000e+03 : f32
    %88 = vector.broadcast %cst_103 : f32 to vector<16x1xf32>
    %89 = arith.divf %85, %88 : vector<16x1xf32>
    %90 = arith.mulf %87, %87 : vector<16x1xf32>
    %91 = arith.subf %89, %90 : vector<16x1xf32>
    %cst_104 = arith.constant 9.99999974E-6 : f32
    %92 = vector.broadcast %cst_104 : f32 to vector<16x1xf32>
    %93 = arith.addf %91, %92 : vector<16x1xf32>
    %94 = math.rsqrt %93 : vector<16x1xf32>
    %95 = arith.mulf %94, %0 : vector<16x1xf32>
    %96 = vector.broadcast %87 : vector<16x1xf32> to vector<16x2048xf32>
    %97 = arith.subf %80, %96 : vector<16x2048xf32>
    %98 = vector.broadcast %95 : vector<16x1xf32> to vector<16x2048xf32>
    %99 = arith.mulf %97, %98 : vector<16x2048xf32>
    %100 = vector.broadcast %1 : vector<16x1xf32> to vector<16x2048xf32>
    %101 = arith.addf %99, %100 : vector<16x2048xf32>
    %cst_105 = arith.constant 0.000000e+00 : f32
    %102 = vector.broadcast %cst_105 : f32 to vector<16x2048xf32>
    %103 = arith.maximumf %101, %102 : vector<16x2048xf32>
    %c0_106 = arith.constant 0 : index
    %c0_107 = arith.constant 0 : index
    %104 = vector.load %arg11[%c0_106, %c0_107] : memref<16x2048xf32, #tpu.memory_space<vmem>>, vector<16x2048xf32>
    tpu.vector_store %arg11[%c0_106, %c0_107], %103 {strides = array<i32>} : memref<16x2048xf32, #tpu.memory_space<vmem>>, vector<16x2048xf32>,
    %c0_108 = arith.constant 0 : index
    %c0_109 = arith.constant 0 : index
    %105 = vector.load %arg11[%c0_108, %c0_109] : memref<16x2048xf32, #tpu.memory_space<vmem>>, vector<16x224xf32>
    %c0_110 = arith.constant 0 : index
    %c256_111 = arith.constant 256 : index
    %106 = vector.load %arg11[%c0_110, %c256_111] : memref<16x2048xf32, #tpu.memory_space<vmem>>, vector<16x224xf32>
    %c0_112 = arith.constant 0 : index
    %c512_113 = arith.constant 512 : index
    %107 = vector.load %arg11[%c0_112, %c512_113] : memref<16x2048xf32, #tpu.memory_space<vmem>>, vector<16x224xf32>
    %c0_114 = arith.constant 0 : index
    %c768_115 = arith.constant 768 : index
    %108 = vector.load %arg11[%c0_114, %c768_115] : memref<16x2048xf32, #tpu.memory_space<vmem>>, vector<16x224xf32>
    %c0_116 = arith.constant 0 : index
    %c1_117 = arith.constant 1 : index
    %109 = vector.load %arg11[%c0_116, %c1_117] : memref<16x2048xf32, #tpu.memory_space<vmem>>, vector<16x224xf32>
    %110 = tpu.concatenate %105, %106, %107, %108, %109 in 0 : vector<16x224xf32>, vector<16x224xf32>, vector<16x224xf32>, vector<16x224xf32>, vector<16x224xf32> -> vector<80x224xf32>
    %c0_118 = arith.constant 0 : index
    %c0_119 = arith.constant 0 : index
    %111 = vector.load %arg9[%c0_118, %c0_119] : memref<80x1024xf32, #tpu.memory_space<vmem>>, vector<80x224xf32>
    tpu.vector_store %arg9[%c0_118, %c0_119], %110 {strides = array<i32>} : memref<80x1024xf32, #tpu.memory_space<vmem>>, vector<80x224xf32>,
    %cst_120 = arith.constant 0.000000e+00 : f32
    %112 = vector.broadcast %cst_120 : f32 to vector<80x32xf32>
    %c0_121 = arith.constant 0 : index
    %c224 = arith.constant 224 : index
    %113 = vector.load %arg9[%c0_121, %c224] : memref<80x1024xf32, #tpu.memory_space<vmem>>, vector<80x32xf32>
    tpu.vector_store %arg9[%c0_121, %c224], %112 {strides = array<i32>} : memref<80x1024xf32, #tpu.memory_space<vmem>>, vector<80x32xf32>,
    %c0_122 = arith.constant 0 : index
    %c512_123 = arith.constant 512 : index
    %114 = vector.load %arg11[%c0_122, %c512_123] : memref<16x2048xf32, #tpu.memory_space<vmem>>, vector<16x223xf32>
    %c0_124 = arith.constant 0 : index
    %c768_125 = arith.constant 768 : index
    %115 = vector.load %arg11[%c0_124, %c768_125] : memref<16x2048xf32, #tpu.memory_space<vmem>>, vector<16x223xf32>
    %c0_126 = arith.constant 0 : index
    %c1_127 = arith.constant 1 : index
    %116 = vector.load %arg11[%c0_126, %c1_127] : memref<16x2048xf32, #tpu.memory_space<vmem>>, vector<16x223xf32>
    %c0_128 = arith.constant 0 : index
    %c257 = arith.constant 257 : index
    %117 = vector.load %arg11[%c0_128, %c257] : memref<16x2048xf32, #tpu.memory_space<vmem>>, vector<16x223xf32>
    %c0_129 = arith.constant 0 : index
    %c513 = arith.constant 513 : index
    %118 = vector.load %arg11[%c0_129, %c513] : memref<16x2048xf32, #tpu.memory_space<vmem>>, vector<16x223xf32>
    %119 = tpu.concatenate %114, %115, %116, %117, %118 in 0 : vector<16x223xf32>, vector<16x223xf32>, vector<16x223xf32>, vector<16x223xf32>, vector<16x223xf32> -> vector<80x223xf32>
    %c0_130 = arith.constant 0 : index
    %c256_131 = arith.constant 256 : index
    %120 = vector.load %arg9[%c0_130, %c256_131] : memref<80x1024xf32, #tpu.memory_space<vmem>>, vector<80x223xf32>
    tpu.vector_store %arg9[%c0_130, %c256_131], %119 {strides = array<i32>} : memref<80x1024xf32, #tpu.memory_space<vmem>>, vector<80x223xf32>,
    %cst_132 = arith.constant 0.000000e+00 : f32
    %121 = vector.broadcast %cst_132 : f32 to vector<80x33xf32>
    %c0_133 = arith.constant 0 : index
    %c479 = arith.constant 479 : index
    %122 = vector.load %arg9[%c0_133, %c479] : memref<80x1024xf32, #tpu.memory_space<vmem>>, vector<80x33xf32>
    tpu.vector_store %arg9[%c0_133, %c479], %121 {strides = array<i32>} : memref<80x1024xf32, #tpu.memory_space<vmem>>, vector<80x33xf32>,
    %c0_134 = arith.constant 0 : index
    %c1024_135 = arith.constant 1024 : index
    %123 = vector.load %arg11[%c0_134, %c1024_135] : memref<16x2048xf32, #tpu.memory_space<vmem>>, vector<16x224xf32>
    %c0_136 = arith.constant 0 : index
    %c1280_137 = arith.constant 1280 : index
    %124 = vector.load %arg11[%c0_136, %c1280_137] : memref<16x2048xf32, #tpu.memory_space<vmem>>, vector<16x224xf32>
    %c0_138 = arith.constant 0 : index
    %c1536_139 = arith.constant 1536 : index
    %125 = vector.load %arg11[%c0_138, %c1536_139] : memref<16x2048xf32, #tpu.memory_space<vmem>>, vector<16x224xf32>
    %c0_140 = arith.constant 0 : index
    %c1792_141 = arith.constant 1792 : index
    %126 = vector.load %arg11[%c0_140, %c1792_141] : memref<16x2048xf32, #tpu.memory_space<vmem>>, vector<16x224xf32>
    %c0_142 = arith.constant 0 : index
    %c1025 = arith.constant 1025 : index
    %127 = vector.load %arg11[%c0_142, %c1025] : memref<16x2048xf32, #tpu.memory_space<vmem>>, vector<16x224xf32>
    %128 = tpu.concatenate %123, %124, %125, %126, %127 in 0 : vector<16x224xf32>, vector<16x224xf32>, vector<16x224xf32>, vector<16x224xf32>, vector<16x224xf32> -> vector<80x224xf32>
    %c0_143 = arith.constant 0 : index
    %c512_144 = arith.constant 512 : index
    %129 = vector.load %arg9[%c0_143, %c512_144] : memref<80x1024xf32, #tpu.memory_space<vmem>>, vector<80x224xf32>
    tpu.vector_store %arg9[%c0_143, %c512_144], %128 {strides = array<i32>} : memref<80x1024xf32, #tpu.memory_space<vmem>>, vector<80x224xf32>,
    %cst_145 = arith.constant 0.000000e+00 : f32
    %130 = vector.broadcast %cst_145 : f32 to vector<80x32xf32>
    %c0_146 = arith.constant 0 : index
    %c736_147 = arith.constant 736 : index
    %131 = vector.load %arg9[%c0_146, %c736_147] : memref<80x1024xf32, #tpu.memory_space<vmem>>, vector<80x32xf32>
    tpu.vector_store %arg9[%c0_146, %c736_147], %130 {strides = array<i32>} : memref<80x1024xf32, #tpu.memory_space<vmem>>, vector<80x32xf32>,
    %c0_148 = arith.constant 0 : index
    %c1536_149 = arith.constant 1536 : index
    %132 = vector.load %arg11[%c0_148, %c1536_149] : memref<16x2048xf32, #tpu.memory_space<vmem>>, vector<16x223xf32>
    %c0_150 = arith.constant 0 : index
    %c1792_151 = arith.constant 1792 : index
    %133 = vector.load %arg11[%c0_150, %c1792_151] : memref<16x2048xf32, #tpu.memory_space<vmem>>, vector<16x223xf32>
    %c0_152 = arith.constant 0 : index
    %c1025_153 = arith.constant 1025 : index
    %134 = vector.load %arg11[%c0_152, %c1025_153] : memref<16x2048xf32, #tpu.memory_space<vmem>>, vector<16x223xf32>
    %c0_154 = arith.constant 0 : index
    %c1281 = arith.constant 1281 : index
    %135 = vector.load %arg11[%c0_154, %c1281] : memref<16x2048xf32, #tpu.memory_space<vmem>>, vector<16x223xf32>
    %c0_155 = arith.constant 0 : index
    %c1537 = arith.constant 1537 : index
    %136 = vector.load %arg11[%c0_155, %c1537] : memref<16x2048xf32, #tpu.memory_space<vmem>>, vector<16x223xf32>
    %137 = tpu.concatenate %132, %133, %134, %135, %136 in 0 : vector<16x223xf32>, vector<16x223xf32>, vector<16x223xf32>, vector<16x223xf32>, vector<16x223xf32> -> vector<80x223xf32>
    %c0_156 = arith.constant 0 : index
    %c768_157 = arith.constant 768 : index
    %138 = vector.load %arg9[%c0_156, %c768_157] : memref<80x1024xf32, #tpu.memory_space<vmem>>, vector<80x223xf32>
    tpu.vector_store %arg9[%c0_156, %c768_157], %137 {strides = array<i32>} : memref<80x1024xf32, #tpu.memory_space<vmem>>, vector<80x223xf32>,
    %cst_158 = arith.constant 0.000000e+00 : f32
    %139 = vector.broadcast %cst_158 : f32 to vector<80x33xf32>
    %c0_159 = arith.constant 0 : index
    %c991 = arith.constant 991 : index
    %140 = vector.load %arg9[%c0_159, %c991] : memref<80x1024xf32, #tpu.memory_space<vmem>>, vector<80x33xf32>
    tpu.vector_store %arg9[%c0_159, %c991], %139 {strides = array<i32>} : memref<80x1024xf32, #tpu.memory_space<vmem>>, vector<80x33xf32>,
    %c0_160 = arith.constant 0 : index
    %c0_161 = arith.constant 0 : index
    %141 = vector.load %arg2[%c0_160, %c0_161] : memref<32x80xf32, #tpu.memory_space<vmem>>, vector<32x80xf32>
    %c0_162 = arith.constant 0 : index
    %c0_163 = arith.constant 0 : index
    %142 = vector.load %arg9[%c0_162, %c0_163] : memref<80x1024xf32, #tpu.memory_space<vmem>>, vector<80x1024xf32>
    %cst_164 = arith.constant dense<0.000000e+00> : vector<32x1024xf32>
    %143 = tpu.matmul %141, %142, %cst_164 {dimension_numbers = #tpu.dot_dimension_numbers<[1], [0], [0], [1], [0, 0, 1, 1], [], []>} : vector<32x80xf32>, vector<80x1024xf32>, vector<32x1024xf32> -> vector<32x1024xf32>
    %cst_165 = arith.constant dense<0.000000e+00> : vector<32xf32>
    %144 = vector.multi_reduction <add>, %143, %cst_165 [1] : vector<32x1024xf32> to vector<32xf32>
    %145 = vector.shape_cast %144 : vector<32xf32> to vector<32x1xf32>
    %146 = arith.mulf %143, %143 : vector<32x1024xf32>
    %cst_166 = arith.constant dense<0.000000e+00> : vector<32xf32>
    %147 = vector.multi_reduction <add>, %146, %cst_166 [1] : vector<32x1024xf32> to vector<32xf32>
    %148 = vector.shape_cast %147 : vector<32xf32> to vector<32x1xf32>
    %cst_167 = arith.constant 8.940000e+02 : f32
    %149 = vector.broadcast %cst_167 : f32 to vector<32x1xf32>
    %150 = arith.divf %145, %149 : vector<32x1xf32>
    %cst_168 = arith.constant 8.940000e+02 : f32
    %151 = vector.broadcast %cst_168 : f32 to vector<32x1xf32>
    %152 = arith.divf %148, %151 : vector<32x1xf32>
    %153 = arith.mulf %150, %150 : vector<32x1xf32>
    %154 = arith.subf %152, %153 : vector<32x1xf32>
    %cst_169 = arith.constant 9.99999974E-6 : f32
    %155 = vector.broadcast %cst_169 : f32 to vector<32x1xf32>
    %156 = arith.addf %154, %155 : vector<32x1xf32>
    %157 = math.rsqrt %156 : vector<32x1xf32>
    %158 = arith.mulf %157, %2 : vector<32x1xf32>
    %159 = vector.broadcast %150 : vector<32x1xf32> to vector<32x1024xf32>
    %160 = arith.subf %143, %159 : vector<32x1024xf32>
    %161 = vector.broadcast %158 : vector<32x1xf32> to vector<32x1024xf32>
    %162 = arith.mulf %160, %161 : vector<32x1024xf32>
    %163 = vector.broadcast %3 : vector<32x1xf32> to vector<32x1024xf32>
    %164 = arith.addf %162, %163 : vector<32x1024xf32>
    %cst_170 = arith.constant 0.000000e+00 : f32
    %165 = vector.broadcast %cst_170 : f32 to vector<32x1024xf32>
    %166 = arith.maximumf %164, %165 : vector<32x1024xf32>
    %c0_171 = arith.constant 0 : index
    %c0_172 = arith.constant 0 : index
    %167 = vector.load %arg12[%c0_171, %c0_172] : memref<32x1024xf32, #tpu.memory_space<vmem>>, vector<32x1024xf32>
    tpu.vector_store %arg12[%c0_171, %c0_172], %166 {strides = array<i32>} : memref<32x1024xf32, #tpu.memory_space<vmem>>, vector<32x1024xf32>,
    %c0_173 = arith.constant 0 : index
    %c0_174 = arith.constant 0 : index
    %168 = vector.load %arg12[%c0_173, %c0_174] : memref<32x1024xf32, #tpu.memory_space<vmem>>, vector<32x222xf32>
    %c0_175 = arith.constant 0 : index
    %c256_176 = arith.constant 256 : index
    %169 = vector.load %arg12[%c0_175, %c256_176] : memref<32x1024xf32, #tpu.memory_space<vmem>>, vector<32x222xf32>
    %c0_177 = arith.constant 0 : index
    %c1_178 = arith.constant 1 : index
    %170 = vector.load %arg12[%c0_177, %c1_178] : memref<32x1024xf32, #tpu.memory_space<vmem>>, vector<32x222xf32>
    %c0_179 = arith.constant 0 : index
    %c257_180 = arith.constant 257 : index
    %171 = vector.load %arg12[%c0_179, %c257_180] : memref<32x1024xf32, #tpu.memory_space<vmem>>, vector<32x222xf32>
    %c0_181 = arith.constant 0 : index
    %c2_182 = arith.constant 2 : index
    %172 = vector.load %arg12[%c0_181, %c2_182] : memref<32x1024xf32, #tpu.memory_space<vmem>>, vector<32x222xf32>
    %173 = tpu.concatenate %168, %169, %170, %171, %172 in 0 : vector<32x222xf32>, vector<32x222xf32>, vector<32x222xf32>, vector<32x222xf32>, vector<32x222xf32> -> vector<160x222xf32>
    %c0_183 = arith.constant 0 : index
    %c0_184 = arith.constant 0 : index
    %174 = vector.load %arg10[%c0_183, %c0_184] : memref<160x512xf32, #tpu.memory_space<vmem>>, vector<160x222xf32>
    tpu.vector_store %arg10[%c0_183, %c0_184], %173 {strides = array<i32>} : memref<160x512xf32, #tpu.memory_space<vmem>>, vector<160x222xf32>,
    %cst_185 = arith.constant 0.000000e+00 : f32
    %175 = vector.broadcast %cst_185 : f32 to vector<160x34xf32>
    %c0_186 = arith.constant 0 : index
    %c222 = arith.constant 222 : index
    %176 = vector.load %arg10[%c0_186, %c222] : memref<160x512xf32, #tpu.memory_space<vmem>>, vector<160x34xf32>
    tpu.vector_store %arg10[%c0_186, %c222], %175 {strides = array<i32>} : memref<160x512xf32, #tpu.memory_space<vmem>>, vector<160x34xf32>,
    %c0_187 = arith.constant 0 : index
    %c512_188 = arith.constant 512 : index
    %177 = vector.load %arg12[%c0_187, %c512_188] : memref<32x1024xf32, #tpu.memory_space<vmem>>, vector<32x222xf32>
    %c0_189 = arith.constant 0 : index
    %c768_190 = arith.constant 768 : index
    %178 = vector.load %arg12[%c0_189, %c768_190] : memref<32x1024xf32, #tpu.memory_space<vmem>>, vector<32x222xf32>
    %c0_191 = arith.constant 0 : index
    %c513_192 = arith.constant 513 : index
    %179 = vector.load %arg12[%c0_191, %c513_192] : memref<32x1024xf32, #tpu.memory_space<vmem>>, vector<32x222xf32>
    %c0_193 = arith.constant 0 : index
    %c769 = arith.constant 769 : index
    %180 = vector.load %arg12[%c0_193, %c769] : memref<32x1024xf32, #tpu.memory_space<vmem>>, vector<32x222xf32>
    %c0_194 = arith.constant 0 : index
    %c514 = arith.constant 514 : index
    %181 = vector.load %arg12[%c0_194, %c514] : memref<32x1024xf32, #tpu.memory_space<vmem>>, vector<32x222xf32>
    %182 = tpu.concatenate %177, %178, %179, %180, %181 in 0 : vector<32x222xf32>, vector<32x222xf32>, vector<32x222xf32>, vector<32x222xf32>, vector<32x222xf32> -> vector<160x222xf32>
    %c0_195 = arith.constant 0 : index
    %c256_196 = arith.constant 256 : index
    %183 = vector.load %arg10[%c0_195, %c256_196] : memref<160x512xf32, #tpu.memory_space<vmem>>, vector<160x222xf32>
    tpu.vector_store %arg10[%c0_195, %c256_196], %182 {strides = array<i32>} : memref<160x512xf32, #tpu.memory_space<vmem>>, vector<160x222xf32>,
    %cst_197 = arith.constant 0.000000e+00 : f32
    %184 = vector.broadcast %cst_197 : f32 to vector<160x34xf32>
    %c0_198 = arith.constant 0 : index
    %c478 = arith.constant 478 : index
    %185 = vector.load %arg10[%c0_198, %c478] : memref<160x512xf32, #tpu.memory_space<vmem>>, vector<160x34xf32>
    tpu.vector_store %arg10[%c0_198, %c478], %184 {strides = array<i32>} : memref<160x512xf32, #tpu.memory_space<vmem>>, vector<160x34xf32>,
    %c0_199 = arith.constant 0 : index
    %c0_200 = arith.constant 0 : index
    %186 = vector.load %arg3[%c0_199, %c0_200] : memref<32x160xf32, #tpu.memory_space<vmem>>, vector<32x160xf32>
    %c0_201 = arith.constant 0 : index
    %c0_202 = arith.constant 0 : index
    %187 = vector.load %arg10[%c0_201, %c0_202] : memref<160x512xf32, #tpu.memory_space<vmem>>, vector<160x512xf32>
    %cst_203 = arith.constant dense<0.000000e+00> : vector<32x512xf32>
    %188 = tpu.matmul %186, %187, %cst_203 {dimension_numbers = #tpu.dot_dimension_numbers<[1], [0], [0], [1], [0, 0, 1, 1], [], []>} : vector<32x160xf32>, vector<160x512xf32>, vector<32x512xf32> -> vector<32x512xf32>
    %cst_204 = arith.constant dense<0.000000e+00> : vector<32xf32>
    %189 = vector.multi_reduction <add>, %188, %cst_204 [1] : vector<32x512xf32> to vector<32xf32>
    %190 = vector.shape_cast %189 : vector<32xf32> to vector<32x1xf32>
    %191 = arith.mulf %188, %188 : vector<32x512xf32>
    %cst_205 = arith.constant dense<0.000000e+00> : vector<32xf32>
    %192 = vector.multi_reduction <add>, %191, %cst_205 [1] : vector<32x512xf32> to vector<32xf32>
    %193 = vector.shape_cast %192 : vector<32xf32> to vector<32x1xf32>
    %cst_206 = arith.constant 4.440000e+02 : f32
    %194 = vector.broadcast %cst_206 : f32 to vector<32x1xf32>
    %195 = arith.divf %190, %194 : vector<32x1xf32>
    %cst_207 = arith.constant 4.440000e+02 : f32
    %196 = vector.broadcast %cst_207 : f32 to vector<32x1xf32>
    %197 = arith.divf %193, %196 : vector<32x1xf32>
    %198 = arith.mulf %195, %195 : vector<32x1xf32>
    %199 = arith.subf %197, %198 : vector<32x1xf32>
    %cst_208 = arith.constant 9.99999974E-6 : f32
    %200 = vector.broadcast %cst_208 : f32 to vector<32x1xf32>
    %201 = arith.addf %199, %200 : vector<32x1xf32>
    %202 = math.rsqrt %201 : vector<32x1xf32>
    %203 = arith.mulf %202, %4 : vector<32x1xf32>
    %204 = vector.broadcast %195 : vector<32x1xf32> to vector<32x512xf32>
    %205 = arith.subf %188, %204 : vector<32x512xf32>
    %206 = vector.broadcast %203 : vector<32x1xf32> to vector<32x512xf32>
    %207 = arith.mulf %205, %206 : vector<32x512xf32>
    %208 = vector.broadcast %5 : vector<32x1xf32> to vector<32x512xf32>
    %209 = arith.addf %207, %208 : vector<32x512xf32>
    %cst_209 = arith.constant 0.000000e+00 : f32
    %210 = vector.broadcast %cst_209 : f32 to vector<32x512xf32>
    %211 = arith.maximumf %209, %210 : vector<32x512xf32>
    %c0_210 = arith.constant 0 : index
    %c0_211 = arith.constant 0 : index
    %212 = vector.load %arg13[%c0_210, %c0_211] : memref<32x512xf32, #tpu.memory_space<vmem>>, vector<32x512xf32>
    tpu.vector_store %arg13[%c0_210, %c0_211], %211 {strides = array<i32>} : memref<32x512xf32, #tpu.memory_space<vmem>>, vector<32x512xf32>,
    %c0_212 = arith.constant 0 : index
    %c0_213 = arith.constant 0 : index
    %213 = vector.load %arg13[%c0_212, %c0_213] : memref<32x512xf32, #tpu.memory_space<vmem>>, vector<32x256xf32>
    %c0_214 = arith.constant 0 : index
    %c0_215 = arith.constant 0 : index
    %c0_216 = arith.constant 0 : index
    %214 = vector.load %arg4[%c0_214, %c0_215, %c0_216] : memref<3x32x256xf32, #tpu.memory_space<vmem>>, vector<3x32x256xf32>
    %215 = vector.shape_cast %213 : vector<32x256xf32> to vector<1x32x256xf32>
    %216 = vector.broadcast %215 : vector<1x32x256xf32> to vector<3x32x256xf32>
    %217 = arith.mulf %214, %216 : vector<3x32x256xf32>
    %cst_217 = arith.constant dense<0.000000e+00> : vector<3x32xf32>
    %218 = vector.multi_reduction <add>, %217, %cst_217 [2] : vector<3x32x256xf32> to vector<3x32xf32>
    %cst_218 = arith.constant dense<0.000000e+00> : vector<3xf32>
    %219 = vector.multi_reduction <add>, %218, %cst_218 [1] : vector<3x32xf32> to vector<3xf32>
    %220 = vector.shape_cast %219 : vector<3xf32> to vector<3x1xf32>
    %c0_219 = arith.constant 0 : index
    %c256_220 = arith.constant 256 : index
    %221 = vector.load %arg13[%c0_219, %c256_220] : memref<32x512xf32, #tpu.memory_space<vmem>>, vector<32x256xf32>
    %c0_221 = arith.constant 0 : index
    %c0_222 = arith.constant 0 : index
    %c0_223 = arith.constant 0 : index
    %222 = vector.load %arg4[%c0_221, %c0_222, %c0_223] : memref<3x32x256xf32, #tpu.memory_space<vmem>>, vector<3x32x256xf32>
    %223 = vector.shape_cast %221 : vector<32x256xf32> to vector<1x32x256xf32>
    %224 = vector.broadcast %223 : vector<1x32x256xf32> to vector<3x32x256xf32>
    %225 = arith.mulf %222, %224 : vector<3x32x256xf32>
    %cst_224 = arith.constant dense<0.000000e+00> : vector<3x32xf32>
    %226 = vector.multi_reduction <add>, %225, %cst_224 [2] : vector<3x32x256xf32> to vector<3x32xf32>
    %cst_225 = arith.constant dense<0.000000e+00> : vector<3xf32>
    %227 = vector.multi_reduction <add>, %226, %cst_225 [1] : vector<3x32xf32> to vector<3xf32>
    %228 = vector.shape_cast %227 : vector<3xf32> to vector<3x1xf32>
    %229 = tpu.concatenate %220, %228 in 1 : vector<3x1xf32>, vector<3x1xf32> -> vector<3x2xf32>
    %c0_226 = arith.constant 0 : index
    %c0_227 = arith.constant 0 : index
    %230 = vector.load %arg6[%c0_226, %c0_227] : memref<3x1xf32, #tpu.memory_space<vmem>>, vector<3x1xf32>
    %231 = vector.broadcast %230 : vector<3x1xf32> to vector<3x2xf32>
    %232 = arith.addf %229, %231 : vector<3x2xf32>
    %c0_228 = arith.constant 0 : index
    %c0_229 = arith.constant 0 : index
    %233 = vector.load %arg7[%c0_228, %c0_229] : memref<3x2xf32, #tpu.memory_space<vmem>>, vector<3x2xf32>
    tpu.vector_store %arg7[%c0_228, %c0_229], %232 {strides = array<i32>} : memref<3x2xf32, #tpu.memory_space<vmem>>, vector<3x2xf32>,
    return
  }
}

</mosaic_0001>

<bundles_post_ra>
// kernel: dqn_forward.1
= control target key start
LH: loop header
LB: loop body
LE: loop exit
PB: predicated region body
PF: predicated region fallthrough
CT: control target
= control target key end

     0   :  { %vm41_vm0 = vcmask 793600   ;;  %v3682_v3 = vmov 0.0   ;;  %s3683_s30 = smov 127   ;;  %vm51_vm1 = vcmask 1048328   ;;  %vm103_vm2 = vcmask 785408   ;;  %s3688_s21 = smov 126   ;;  %s5876_s0 = inlined_call_operand.vmem [shape: f32[128,225], index: 0, kind: input, shape index: {}]   ;;  %s5877_s1 = inlined_call_operand.vmem [shape: f32[16,40], index: 1, kind: input, shape index: {}]   ;;  %s5878_s5 = inlined_call_operand.vmem [shape: f32[32,8], index: 5, kind: input, shape index: {}]   ;;  %s5879_s2 = inlined_call_operand.vmem [shape: f32[32,80], index: 2, kind: input, shape index: {}]   ;;  %s5880_s3 = inlined_call_operand.vmem [shape: f32[32,160], index: 3, kind: input, shape index: {}]   ;;  %s5881_s4 = inlined_call_operand.vmem [shape: f32[3,32,256], index: 4, kind: input, shape index: {}]   ;;  %s5882_s6 = inlined_call_operand.vmem [shape: f32[3,1], index: 6, kind: input, shape index: {}]   ;;  %s5883_s7 = inlined_call_operand.vmem [shape: f32[3,2], index: 7, kind: output, shape index: {}]  }
   0x1   :  { %v128_v0 = vld [vmem:[%s5876_s0 + $0x48] sm:$0xff]  ;;  %v3742_v2 = vld [vmem:[%s5876_s0 + $0x40] sm:$0xff]  ;;  %460 = vmatprep.mubr.f32.mxu0 %v3682_v3  ;;  %537 = vmatprep.mubr.f32.mxu1 %v3682_v3  ;;  %v3769_v7 = vld [vmem:[%s5876_s0 + $0x10] sm:$0xff]  ;;  %vm113_vm3 = vcmask 1048320   ;;  %vm389_vm4 = vcmask 326656   ;;  %vm98_vm5 = vcmask 1039360  }
   0x2   :  { %v3737_v1 = vld [vmem:[%s5876_s0 + $0x8] sm:$0xff]  ;;  %151 = vrot.lane.b32.xlu1 %v128_v0, %s3683_s30  ;;  %v3752_v4 = vld [vmem:[%s5876_s0] sm:$0xff]  ;;  %46 = vst.msk [vmem:[#allocation2 + $0x108] sm:$0xff] %vm41_vm0, %v128_v0  ;;  %68 = vst.msk [vmem:[#allocation2 + $0x18] sm:$0xff] %vm41_vm0, %v128_v0  ;;  %vm1442_vm6 = vcmask 777216   ;;  %vm1462_vm7 = vcmask 1048312  }
   0x3   :  { %96 = vrot.lane.b32.xlu0 %v3737_v1, %s3683_s30  ;;  %v3757_v5 = vld [vmem:[%s5876_s0 + $0x20] sm:$0xff]  ;;  %42 = vst.msk [vmem:[#allocation2 + $0x8] sm:$0xff] %vm41_vm0, %v3737_v1  ;;  %v126_v6 = vld [vmem:[%s5876_s0 + $0x28] sm:$0xff]  ;;  %v3774_v8 = vld [vmem:[%s5876_s0 + $0x18] sm:$0xff]  ;;  %vm1721_vm8 = vcmask 654336   ;;  %vm2539_vm9 = vcmask 769024  }
   0x4   :  { %54 = vst.msk [vmem:[#allocation2 + $0x108] sm:$0xff] %vm51_vm1, %v3682_v3  ;;  %52 = vst.msk [vmem:[#allocation2 + $0x8] sm:$0xff] %vm51_vm1, %v3682_v3  ;;  %v3785_v9 = vld [vmem:[%s5876_s0 + $0x50] sm:$0xff]  ;;  %v3790_v10 = vld [vmem:[%s5876_s0 + $0x58] sm:$0xff]  ;;  %vm2579_vm10 = vcmask 1048304   ;;  %vm2864_vm11 = vcmask 261120  }
   0x5   :  { %77 = vst.msk [vmem:[#allocation2 + $0x18] sm:$0xff] %vm51_vm1, %v3682_v3  ;;  %v3795_v11 = vld [vmem:[%s5876_s0 + $0x30] sm:$0xff]  ;;  %v3803_v12 = vld [vmem:[%s5876_s0 + $0x38] sm:$0xff]  ;;  %v39_v13 = vld [vmem:[%s5876_s0 + $0x88] sm:$0xff]  ;;  %vm2525_vm12 = vcmask 1031168   ;;  %vm3371_vm13 = vcmask 130112  }
   0x6   :  { %44 = vst.msk [vmem:[#allocation2 + $0x88] sm:$0xff] %vm41_vm0, %v126_v6  ;;  %182 = vst.msk [vmem:[#allocation2 + $0x48] sm:$0xff] %vm41_vm0, %v3774_v8  ;;  %v66_v14 = vld [vmem:[%s5876_s0 + $0xc8] sm:$0xff]  ;;  %149 = vrot.lane.b32.xlu1 %v3742_v2, %s3683_s30  ;;  %v3828_v15 = vld [vmem:[%s5876_s0 + $0x80] sm:$0xff]  ;;  %vm3378_vm14 = vcmask 195712   ;;  %vm3385_vm15 = vcmask 261312  }
   0x7   :  { %53 = vst.msk [vmem:[#allocation2 + $0x88] sm:$0xff] %vm51_vm1, %v3682_v3  ;;  %191 = vst.msk [vmem:[#allocation2 + $0x48] sm:$0xff] %vm51_vm1, %v3682_v3  ;;  %94 = vrot.lane.b32.xlu0 %v3752_v4, %s3683_s30  ;;  %v3833_v16 = vld [vmem:[%s5876_s0 + $0xc0] sm:$0xff]  ;;  %v37_v17 = vld [vmem:[%s5876_s0 + $0x68] sm:$0xff] }
   0x8   :  { %186 = vst.msk [vmem:[#allocation2 + $0x148] sm:$0xff] %vm41_vm0, %v3790_v10  ;;  %207 = vst.msk [vmem:[#allocation2 + $0x58] sm:$0xff] %vm41_vm0, %v3790_v10  ;;  %v64_v18 = vld [vmem:[%s5876_s0 + $0xa8] sm:$0xff]  ;;  %v3858_v19 = vld [vmem:[%s5876_s0 + $0x60] sm:$0xff] }
   0x9   :  { %50 = vst.msk [vmem:[#allocation2 + $0x208] sm:$0xff] %vm41_vm0, %v39_v13  ;;  %76 = vst.msk [vmem:[#allocation2 + $0x218] sm:$0xff] %vm41_vm0, %v66_v14  ;;  %v3875_v20 = vld [vmem:[%s5876_s0 + $0xa0] sm:$0xff]  ;;  %v89_v21 = vld [vmem:[%s5876_s0 + $0xe8] sm:$0xff] }
   0xa   :  { %72 = vst.msk [vmem:[#allocation2 + $0x118] sm:$0xff] %vm41_vm0, %v39_v13  ;;  %184 = vst.msk [vmem:[#allocation2 + $0xc8] sm:$0xff] %vm41_vm0, %v3803_v12  ;;  %v3892_v22 = vld [vmem:[%s5876_s0 + $0xe0] sm:$0xff]  ;;  %v180_v23 = vld [vmem:[%s5876_s0 + $0x98] sm:$0xff]  ;;  %140 = vrot.lane.b32.xlu1 %v3757_v5, %s3683_s30 }
   0xb   :  { %108 = vst.msk [vmem:[#allocation2 + $0x128] sm:$0xff] %vm103_vm2, %v66_v14  ;;  %104 = vst.msk [vmem:[#allocation2 + $0x28] sm:$0xff] %vm103_vm2, %v39_v13  ;;  %142 = vrot.lane.b32.xlu0 %v126_v6, %s3683_s30  ;;  %v3915_v24 = vld [vmem:[%s5876_s0 + $0x90] sm:$0xff]  ;;  %v178_v25 = vld [vmem:[%s5876_s0 + $0x78] sm:$0xff] }
   0xc   :  { %157 = vst.msk [vmem:[#allocation2 + $0x38] sm:$0xff] %vm103_vm2, %v66_v14  ;;  %106 = vst.msk [vmem:[#allocation2 + $0xa8] sm:$0xff] %vm103_vm2, %v64_v18  ;;  %v3923_v26 = vld [vmem:[%s5876_s0 + $0x70] sm:$0xff]  ;;  %v205_v27 = vld [vmem:[%s5876_s0 + $0xd8] sm:$0xff] }
   0xd   :  { %193 = vst.msk [vmem:[#allocation2 + $0x148] sm:$0xff] %vm51_vm1, %v3682_v3  ;;  %216 = vst.msk [vmem:[#allocation2 + $0x58] sm:$0xff] %vm51_vm1, %v3682_v3  ;;  %v203_v28 = vld [vmem:[%s5876_s0 + $0xb8] sm:$0xff]  ;;  %v342_v33 = vld [vmem:[#allocation2 + $0x108] sm:$0xff] }
   0xe   :  { %56 = vst.msk [vmem:[#allocation2 + $0x208] sm:$0xff] %vm51_vm1, %v3682_v3  ;;  %81 = vst.msk [vmem:[#allocation2 + $0x218] sm:$0xff] %vm51_vm1, %v3682_v3  ;;  %131 = vrot.lane.b32.xlu1 %v3752_v4, %s3683_s30  ;;  %v3969_v35 = vld [vmem:[%s5876_s0 + $0xd0] sm:$0xff]  ;;  %v228_v37 = vld [vmem:[%s5876_s0 + $0xf8] sm:$0xff] }
   0xf   :  { %79 = vst.msk [vmem:[#allocation2 + $0x118] sm:$0xff] %vm51_vm1, %v3682_v3  ;;  %192 = vst.msk [vmem:[#allocation2 + $0xc8] sm:$0xff] %vm51_vm1, %v3682_v3  ;;  %133 = vrot.lane.b32.xlu0 %v3737_v1, %s3683_s30  ;;  %v3976_v36 = vld [vmem:[%s5876_s0 + $0xb0] sm:$0xff]  ;;  %v326_v38 = vld [vmem:[#allocation2 + $0x88] sm:$0xff] }
  0x10   :  { %116 = vst.msk [vmem:[#allocation2 + $0x128] sm:$0xff] %vm113_vm3, %v3682_v3  ;;  %114 = vst.msk [vmem:[#allocation2 + $0x28] sm:$0xff] %vm113_vm3, %v3682_v3  ;;  %v310_v40 = vld [vmem:[#allocation2 + $0x8] sm:$0xff]  ;;  %v312_v41 = vld [vmem:[#allocation2 + $0x18] sm:$0xff] }
  0x11   :  { %166 = vst.msk [vmem:[#allocation2 + $0x38] sm:$0xff] %vm113_vm3, %v3682_v3  ;;  %115 = vst.msk [vmem:[#allocation2 + $0xa8] sm:$0xff] %vm113_vm3, %v3682_v3  ;;  %v3998_v42 = vld [vmem:[%s5877_s1] sm:$0xff]  ;;  %v4007_v43 = vld [vmem:[%s5876_s0 + $0xf0] sm:$0xff] }
  0x12   :  { %48 = vst.msk [vmem:[#allocation2 + $0x188] sm:$0xff] %vm41_vm0, %v37_v17  ;;  %74 = vst.msk [vmem:[#allocation2 + $0x198] sm:$0xff] %vm41_vm0, %v64_v18  ;;  %233 = vrot.lane.b32.xlu1 %v3769_v7, %s3683_s30  ;;  %v4019_v44 = vld [vmem:[%s5877_s1 + $0x8] sm:$0xff] }
  0x13   :  { %70 = vst.msk [vmem:[#allocation2 + $0x98] sm:$0xff] %vm41_vm0, %v37_v17  ;;  %190 = vst.msk [vmem:[#allocation2 + $0x248] sm:$0xff] %vm41_vm0, %v180_v23  ;;  %235 = vrot.lane.b32.xlu0 %v3774_v8, %s3683_s30 }
  0x14   :  { %55 = vst.msk [vmem:[#allocation2 + $0x188] sm:$0xff] %vm51_vm1, %v3682_v3  ;;  %80 = vst.msk [vmem:[#allocation2 + $0x198] sm:$0xff] %vm51_vm1, %v3682_v3  ;;  %v350_v14 = vld [vmem:[#allocation2 + $0x148] sm:$0xff] }
  0x15   :  { %78 = vst.msk [vmem:[#allocation2 + $0x98] sm:$0xff] %vm51_vm1, %v3682_v3  ;;  %195 = vst.msk [vmem:[#allocation2 + $0x248] sm:$0xff] %vm51_vm1, %v3682_v3  ;;  %v374_v29 = vld [vmem:[#allocation2 + $0x208] sm:$0xff]  ;;  %v376_v30 = vld [vmem:[#allocation2 + $0x218] sm:$0xff] }
  0x16   :  { %110 = vst.msk [vmem:[#allocation2 + $0x1a8] sm:$0xff] %vm103_vm2, %v89_v21  ;;  %159 = vst.msk [vmem:[#allocation2 + $0xb8] sm:$0xff] %vm103_vm2, %v89_v21  ;;  %418 = vmatprep.subr.mxu0 %v374_v29  ;;  %495 = vmatprep.subr.mxu1 %v376_v30  ;;  %v344_v34 = vld [vmem:[#allocation2 + $0x118] sm:$0xff] }
  0x17   :  { %117 = vst.msk [vmem:[#allocation2 + $0x1a8] sm:$0xff] %vm113_vm3, %v3682_v3  ;;  %167 = vst.msk [vmem:[#allocation2 + $0xb8] sm:$0xff] %vm113_vm3, %v3682_v3  ;;  %419 = vmatpush1.msra.mxu0 %v3828_v15  ;;  %496 = vmatpush1.msra.mxu1 %v3833_v16  ;;  %v346_v57 = vld [vmem:[#allocation2 + $0x128] sm:$0xff] }
  0x18   :  { %211 = vst.msk [vmem:[#allocation2 + $0x158] sm:$0xff] %vm41_vm0, %v180_v23  ;;  %188 = vst.msk [vmem:[#allocation2 + $0x1c8] sm:$0xff] %vm41_vm0, %v178_v25  ;;  %285 = vrot.lane.b32.xlu1 %v3785_v9, %s3683_s30  ;;  %287 = vrot.lane.b32.xlu0 %v3790_v10, %s3683_s30  ;;  %v330_v61 = vld [vmem:[#allocation2 + $0xa8] sm:$0xff] }
  0x19   :  { %241 = vst.msk [vmem:[#allocation2 + $0x68] sm:$0xff] %vm103_vm2, %v180_v23  ;;  %245 = vst.msk [vmem:[#allocation2 + $0x168] sm:$0xff] %vm103_vm2, %v205_v27  ;;  %v314_v62 = vld [vmem:[#allocation2 + $0x28] sm:$0xff] }
  0x1a   :  { %218 = vst.msk [vmem:[#allocation2 + $0x158] sm:$0xff] %vm51_vm1, %v3682_v3  ;;  %194 = vst.msk [vmem:[#allocation2 + $0x1c8] sm:$0xff] %vm51_vm1, %v3682_v3 }
  0x1b   :  { %250 = vst.msk [vmem:[#allocation2 + $0x68] sm:$0xff] %vm113_vm3, %v3682_v3  ;;  %252 = vst.msk [vmem:[#allocation2 + $0x168] sm:$0xff] %vm113_vm3, %v3682_v3  ;;  %v358_v31 = vld [vmem:[#allocation2 + $0x188] sm:$0xff]  ;;  %v360_v32 = vld [vmem:[#allocation2 + $0x198] sm:$0xff] }
  0x1c   :  { %209 = vst.msk [vmem:[#allocation2 + $0xd8] sm:$0xff] %vm41_vm0, %v178_v25  ;;  %215 = vst.msk [vmem:[#allocation2 + $0x258] sm:$0xff] %vm41_vm0, %v205_v27  ;;  %420 = vmatprep.subr.mxu0 %v358_v31  ;;  %497 = vmatprep.subr.mxu1 %v360_v32  ;;  %v328_v39 = vld [vmem:[#allocation2 + $0x98] sm:$0xff] }
  0x1d   :  { %213 = vst.msk [vmem:[#allocation2 + $0x1d8] sm:$0xff] %vm41_vm0, %v203_v28  ;;  %421 = vmatpush1.msra.mxu0 %v3858_v19  ;;  %498 = vmatpush1.msra.mxu1 %v3875_v20  ;;  %v320_v31 = vld [vmem:[#allocation2 + $0x58] sm:$0xff]  ;;  %vm3425_vm0 = vcmask 1041409  }
  0x1e   :  { %217 = vst.msk [vmem:[#allocation2 + $0xd8] sm:$0xff] %vm51_vm1, %v3682_v3  ;;  %220 = vst.msk [vmem:[#allocation2 + $0x258] sm:$0xff] %vm51_vm1, %v3682_v3  ;;  %422 = vmatprep.subr.mxu0 %v342_v33  ;;  %499 = vmatprep.subr.mxu1 %v344_v34  ;;  %v362_v56 = vld [vmem:[#allocation2 + $0x1a8] sm:$0xff]  ;;  %v332_v13 = vld [vmem:[#allocation2 + $0xb8] sm:$0xff] }
  0x1f   :  { %243 = vst.msk [vmem:[#allocation2 + $0xe8] sm:$0xff] %vm103_vm2, %v203_v28  ;;  %293 = vst.msk [vmem:[#allocation2 + $0x78] sm:$0xff] %vm103_vm2, %v205_v27  ;;  %423 = vmatpush1.msra.mxu0 %v3742_v2  ;;  %500 = vmatpush1.msra.mxu1 %v3828_v15 }
  0x20   :  { %219 = vst.msk [vmem:[#allocation2 + $0x1d8] sm:$0xff] %vm51_vm1, %v3682_v3  ;;  %424 = vmatprep.subr.mxu0 %v326_v38  ;;  %501 = vmatprep.subr.mxu1 %v328_v39  ;;  %vm3427_vm1 = vcmask 1042434  }
  0x21   :  { %251 = vst.msk [vmem:[#allocation2 + $0xe8] sm:$0xff] %vm113_vm3, %v3682_v3  ;;  %302 = vst.msk [vmem:[#allocation2 + $0x78] sm:$0xff] %vm113_vm3, %v3682_v3  ;;  %425 = vmatpush1.msra.mxu0 %v3757_v5  ;;  %502 = vmatpush1.msra.mxu1 %v3858_v19  ;;  %v366_v5 = vld [vmem:[#allocation2 + $0x1c8] sm:$0xff] }
  0x22   :  { %247 = vst.msk [vmem:[#allocation2 + $0x1e8] sm:$0xff] %vm103_vm2, %v228_v37  ;;  %295 = vst.msk [vmem:[#allocation2 + $0xf8] sm:$0xff] %vm103_vm2, %v228_v37  ;;  %426 = vmatprep.subr.mxu0 %v310_v40  ;;  %503 = vmatprep.subr.mxu1 %v312_v41  ;;  %v334_v19 = vld [vmem:[#allocation2 + $0xc8] sm:$0xff] }
  0x23   :  { %253 = vst.msk [vmem:[#allocation2 + $0x1e8] sm:$0xff] %vm113_vm3, %v3682_v3  ;;  %303 = vst.msk [vmem:[#allocation2 + $0xf8] sm:$0xff] %vm113_vm3, %v3682_v3  ;;  %276 = vrot.lane.b32.xlu1 %v3795_v11, %s3683_s30  ;;  %278 = vrot.lane.b32.xlu0 %v3803_v12, %s3683_s30  ;;  %v322_v34 = vld [vmem:[#allocation2 + $0x68] sm:$0xff] }
  0x24   :  { %427 = vmatpush1.msra.mxu0 %v3752_v4  ;;  %504 = vmatpush1.msra.mxu1 %v3742_v2  ;;  %v382_v4 = vld [vmem:[#allocation2 + $0x248] sm:$0xff] }
  0x25   :  { %3592 = vmatmul.mubr.msk.f32.vlgmr.msra.gmra.mxu0 %vm389_vm4, %v3998_v42  ;;  %3594 = vmatmul.mubr.msk.f32.vlgmr.msra.gmra.mxu1 %vm389_vm4, %v3998_v42  ;;  %v384_v21 = vld [vmem:[#allocation2 + $0x258] sm:$0xff] }
  0x26   :  { %466 = vmatprep.mubr.f32.mxu0 %v3682_v3  ;;  %543 = vmatprep.mubr.f32.mxu1 %v3682_v3  ;;  %v336_v29 = vld [vmem:[#allocation2 + $0xd8] sm:$0xff] }
  0x27   :  { %267 = vrot.lane.b32.xlu1 %v3769_v7, %s3683_s30  ;;  %269 = vrot.lane.b32.xlu0 %v3774_v8, %s3683_s30  ;;  %v368_v23 = vld [vmem:[#allocation2 + $0x1d8] sm:$0xff] }
  0x28   :  { %v338_v33 = vld [vmem:[#allocation2 + $0xe8] sm:$0xff] }
  0x29   :  { %3593 = vmatmul.mubr.msk.f32.gmra.mxu0 %vm389_vm4, %v4019_v44  ;;  %3595 = vmatmul.mubr.msk.f32.gmra.mxu1 %vm389_vm4, %v4019_v44 }
  0x2a   :  { %614 = vmatprep.mubr.f32.mxu0 %v3682_v3  ;;  %691 = vmatprep.mubr.f32.mxu1 %v3682_v3  ;;  %v370_v30 = vld [vmem:[#allocation2 + $0x1e8] sm:$0xff]  ;;  %v340_v37 = vld [vmem:[#allocation2 + $0xf8] sm:$0xff] }
  0x74   :  { %v152_v45 = vpop.permute.xlu1 %151 }
  0x75   :  { %v97_v46 = vpop.permute.xlu0 %96  ;;  %165 = vst.msk [vmem:[#allocation2 + $0x238] sm:$0xff] %vm103_vm2, %v152_v45 }
  0x76   :  { %112 = vst.msk [vmem:[#allocation2 + $0x228] sm:$0xff] %vm103_vm2, %v97_v46 }
  0x77   :  { %170 = vst.msk [vmem:[#allocation2 + $0x238] sm:$0xff] %vm113_vm3, %v3682_v3  ;;  %118 = vst.msk [vmem:[#allocation2 + $0x228] sm:$0xff] %vm113_vm3, %v3682_v3 }
  0x78   :  { %v150_v47 = vpop.permute.xlu1 %149 }
  0x79   :  { %v95_v48 = vpop.permute.xlu0 %94  ;;  %v153_v49 = vsel %vm98_vm5, %v150_v47, %v152_v45 }
  0x7a   :  { %v99_v50 = vsel %vm98_vm5, %v95_v48, %v97_v46 }
  0x7c   :  { %v141_v51 = vpop.permute.xlu1 %140 }
  0x7d   :  { %v143_v52 = vpop.permute.xlu0 %142 }
  0x7e   :  { %v144_v53 = vsel %vm98_vm5, %v141_v51, %v143_v52  ;;  %163 = vst.msk [vmem:[#allocation2 + $0x1b8] sm:$0xff] %vm103_vm2, %v143_v52  ;;  %v378_v54 = vld [vmem:[#allocation2 + $0x228] sm:$0xff]  ;;  %v380_v55 = vld [vmem:[#allocation2 + $0x238] sm:$0xff] }
  0x7f   :  { %169 = vst.msk [vmem:[#allocation2 + $0x1b8] sm:$0xff] %vm113_vm3, %v3682_v3  ;;  %572 = vmatprep.subr.mxu0 %v378_v54  ;;  %649 = vmatprep.subr.mxu1 %v380_v55 }
  0x80   :  { %573 = vmatpush1.msra.mxu0 %v99_v50  ;;  %650 = vmatpush1.msra.mxu1 %v153_v49  ;;  %v132_v58 = vpop.permute.xlu1 %131 }
  0x81   :  { %v134_v59 = vpop.permute.xlu0 %133  ;;  %574 = vmatprep.subr.mxu0 %v362_v56 }
  0x82   :  { %v135_v60 = vsel %vm98_vm5, %v132_v58, %v134_v59  ;;  %161 = vst.msk [vmem:[#allocation2 + $0x138] sm:$0xff] %vm103_vm2, %v134_v59  ;;  %575 = vmatpush1.msra.mxu0 %v3892_v22 }
  0x83   :  { %168 = vst.msk [vmem:[#allocation2 + $0x138] sm:$0xff] %vm113_vm3, %v3682_v3  ;;  %576 = vmatprep.subr.mxu0 %v346_v57 }
  0x84   :  { %577 = vmatpush1.msra.mxu0 %v3833_v16  ;;  %v234_v63 = vpop.permute.xlu1 %233 }
  0x85   :  { %578 = vmatprep.subr.mxu0 %v330_v61  ;;  %v236_v0 = vpop.permute.xlu0 %235 }
  0x86   :  { %v364_v1 = vld [vmem:[#allocation2 + $0x1b8] sm:$0xff]  ;;  %v4051_v2 = vsel %vm98_vm5, %v234_v63, %v236_v0  ;;  %249 = vst.msk [vmem:[#allocation2 + $0x268] sm:$0xff] %vm103_vm2, %v236_v0  ;;  %579 = vmatpush1.msra.mxu0 %v3875_v20 }
  0x87   :  { %651 = vmatprep.subr.mxu1 %v364_v1  ;;  %254 = vst.msk [vmem:[#allocation2 + $0x268] sm:$0xff] %vm113_vm3, %v3682_v3  ;;  %580 = vmatprep.subr.mxu0 %v314_v62 }
  0x88   :  { %652 = vmatpush1.msra.mxu1 %v144_v53  ;;  %581 = vmatpush1.msra.mxu0 %v3828_v15  ;;  %v316_v15 = vld [vmem:[#allocation2 + $0x38] sm:$0xff] }
  0x89   :  { %3596 = vmatmul.mubr.msk.f32.vlgmr.msra.gmra.mxu0 %vm389_vm4, %v3998_v42  ;;  %726 = vmatprep.subr.mxu0 %v382_v4 }
  0x8a   :  { %v286_v6 = vpop.permute.xlu1 %285  ;;  %v288_v8 = vpop.permute.xlu0 %287  ;;  %v348_v10 = vld [vmem:[#allocation2 + $0x138] sm:$0xff]  ;;  %727 = vmatpush1.msra.mxu0 %v3915_v24  ;;  %620 = vmatprep.mubr.f32.mxu0 %v3682_v3 }
  0x8b   :  { %v4061_v12 = vsel %vm98_vm5, %v286_v6, %v288_v8  ;;  %301 = vst.msk [vmem:[#allocation2 + $0x278] sm:$0xff] %vm103_vm2, %v288_v8  ;;  %653 = vmatprep.subr.mxu1 %v348_v10  ;;  %728 = vmatprep.subr.mxu0 %v366_v5 }
  0x8c   :  { %306 = vst.msk [vmem:[#allocation2 + $0x278] sm:$0xff] %vm113_vm3, %v3682_v3  ;;  %654 = vmatpush1.msra.mxu1 %v135_v60  ;;  %729 = vmatpush1.msra.mxu0 %v3923_v26 }
  0x8d   :  { %655 = vmatprep.subr.mxu1 %v332_v13  ;;  %3597 = vmatmul.mubr.msk.f32.gmra.mxu0 %vm389_vm4, %v4019_v44 }
  0x8e   :  { %656 = vmatpush1.msra.mxu1 %v3892_v22  ;;  %730 = vmatprep.subr.mxu0 %v350_v14  ;;  %v318_v22 = vld [vmem:[#allocation2 + $0x48] sm:$0xff] }
  0x8f   :  { %657 = vmatprep.subr.mxu1 %v316_v15  ;;  %731 = vmatpush1.msra.mxu0 %v3785_v9 }
  0x90   :  { %658 = vmatpush1.msra.mxu1 %v3833_v16  ;;  %732 = vmatprep.subr.mxu0 %v334_v19  ;;  %v352_v16 = vld [vmem:[#allocation2 + $0x158] sm:$0xff] }
  0x91   :  { %3598 = vmatmul.mubr.msk.f32.vlgmr.msra.gmra.mxu1 %vm389_vm4, %v3998_v42  ;;  %803 = vmatprep.subr.mxu1 %v384_v21 }
  0x92   :  { %804 = vmatpush1.msra.mxu1 %v3969_v35  ;;  %733 = vmatpush1.msra.mxu0 %v3795_v11  ;;  %v386_v11 = vld [vmem:[#allocation2 + $0x268] sm:$0xff] }
  0x93   :  { %805 = vmatprep.subr.mxu1 %v368_v23  ;;  %697 = vmatprep.mubr.f32.mxu1 %v3682_v3  ;;  %v388_v32 = vld [vmem:[#allocation2 + $0x278] sm:$0xff] }
  0x94   :  { %734 = vmatprep.subr.mxu0 %v318_v22  ;;  %806 = vmatpush1.msra.mxu1 %v3976_v36 }
  0x95   :  { %v277_v17 = vpop.permute.xlu1 %276  ;;  %v279_v18 = vpop.permute.xlu0 %278  ;;  %3599 = vmatmul.mubr.msk.f32.gmra.mxu1 %vm389_vm4, %v4019_v44  ;;  %735 = vmatpush1.msra.mxu0 %v3769_v7  ;;  %v354_v7 = vld [vmem:[#allocation2 + $0x168] sm:$0xff] }
  0x96   :  { %v280_v20 = vsel %vm98_vm5, %v277_v17, %v279_v18  ;;  %299 = vst.msk [vmem:[#allocation2 + $0x1f8] sm:$0xff] %vm103_vm2, %v279_v18  ;;  %768 = vmatprep.mubr.f32.mxu0 %v3682_v3  ;;  %807 = vmatprep.subr.mxu1 %v352_v16 }
  0x97   :  { %305 = vst.msk [vmem:[#allocation2 + $0x1f8] sm:$0xff] %vm113_vm3, %v3682_v3  ;;  %3600 = vmatmul.mubr.msk.f32.vlgmr.msra.gmra.mxu0 %vm389_vm4, %v3998_v42  ;;  %808 = vmatpush1.msra.mxu1 %v3915_v24 }
  0x98   :  { %880 = vmatprep.subr.mxu0 %v386_v11  ;;  %809 = vmatprep.subr.mxu1 %v336_v29 }
  0x99   :  { %v268_v25 = vpop.permute.xlu1 %267  ;;  %v270_v27 = vpop.permute.xlu0 %269  ;;  %881 = vmatpush1.msra.mxu0 %v4051_v2  ;;  %810 = vmatpush1.msra.mxu1 %v3923_v26 }
  0x9a   :  { %v271_v28 = vsel %vm98_vm5, %v268_v25, %v270_v27  ;;  %297 = vst.msk [vmem:[#allocation2 + $0x178] sm:$0xff] %vm103_vm2, %v270_v27  ;;  %882 = vmatprep.subr.mxu0 %v370_v30  ;;  %774 = vmatprep.mubr.f32.mxu0 %v3682_v3 }
  0x9b   :  { %304 = vst.msk [vmem:[#allocation2 + $0x178] sm:$0xff] %vm113_vm3, %v3682_v3  ;;  %811 = vmatprep.subr.mxu1 %v320_v31  ;;  %883 = vmatpush1.msra.mxu0 %v4007_v43 }
  0x9c   :  { %3601 = vmatmul.mubr.msk.f32.gmra.mxu0 %vm389_vm4, %v4019_v44  ;;  %812 = vmatpush1.msra.mxu1 %v3785_v9 }
  0x9d   :  { %845 = vmatprep.mubr.f32.mxu1 %v3682_v3  ;;  %884 = vmatprep.subr.mxu0 %v354_v7 }
  0x9e   :  { %3602 = vmatmul.mubr.msk.f32.vlgmr.msra.gmra.mxu1 %vm389_vm4, %v3998_v42  ;;  %885 = vmatpush1.msra.mxu0 %v3969_v35  ;;  %v372_v26 = vld [vmem:[#allocation2 + $0x1f8] sm:$0xff] }
  0x9f   :  { %957 = vmatprep.subr.mxu1 %v388_v32  ;;  %886 = vmatprep.subr.mxu0 %v338_v33 }
  0xa0   :  { %958 = vmatpush1.msra.mxu1 %v4061_v12  ;;  %887 = vmatpush1.msra.mxu0 %v3976_v36  ;;  %v324_v36 = vld [vmem:[#allocation2 + $0x78] sm:$0xff] }
  0xa1   :  { %959 = vmatprep.subr.mxu1 %v372_v26  ;;  %851 = vmatprep.mubr.f32.mxu1 %v3682_v3 }
  0xa2   :  { %v356_v9 = vld [vmem:[#allocation2 + $0x178] sm:$0xff]  ;;  %888 = vmatprep.subr.mxu0 %v322_v34  ;;  %960 = vmatpush1.msra.mxu1 %v280_v20 }
  0xa3   :  { %3603 = vmatmul.mubr.msk.f32.gmra.mxu1 %vm389_vm4, %v4019_v44  ;;  %889 = vmatpush1.msra.mxu0 %v3915_v24 }
  0xa4   :  { %922 = vmatprep.mubr.f32.mxu0 %v3682_v3  ;;  %961 = vmatprep.subr.mxu1 %v356_v9 }
  0xa5   :  { %3604 = vmatmul.mubr.msk.f32.vlgmr.msra.gmra.mxu0 %vm389_vm4, %v3998_v42  ;;  %962 = vmatpush1.msra.mxu1 %v271_v28 }
  0xa6   :  { %963 = vmatprep.subr.mxu1 %v340_v37  ;;  %928 = vmatprep.mubr.f32.mxu0 %v3682_v3 }
  0xa7   :  { %964 = vmatpush1.msra.mxu1 %v4007_v43  ;;  %999 = vmatprep.mubr.f32.mxu1 %v3682_v3 }
  0xa8   :  { %965 = vmatprep.subr.mxu1 %v324_v36 }
  0xa9   :  { %3605 = vmatmul.mubr.msk.f32.gmra.mxu0 %vm389_vm4, %v4019_v44  ;;  %966 = vmatpush1.msra.mxu1 %v3969_v35 }
  0xaa   :  { %3606 = vmatmul.mubr.msk.f32.vlgmr.msra.gmra.mxu1 %vm389_vm4, %v3998_v42  ;;  %1798 = vmatprep.mubr.f32.mxu0 %v3682_v3 }
  0xab   :  { %1005 = vmatprep.mubr.f32.mxu1 %v3682_v3 }
  0xae   :  { %3607 = vmatmul.mubr.msk.f32.gmra.mxu1 %vm389_vm4, %v4019_v44  ;;  %vm3586_vm4 = vcmask 10240  }
  0xaf   :  { %1887 = vmatprep.mubr.f32.mxu1 %v3682_v3 }
  0xe5   :  { %v4128_v24 = vpop.f32.mrf.mxu0  ;;  %v4132_v39 = vpop.f32.mrf.mxu1 }
  0xe6   :  { %v1046_v45 = vmul.f32 %v4128_v24, %v4128_v24  ;;  %v1048_v53 = vmul.f32 %v4132_v39, %v4132_v39 }
  0xe7   :  { %v4130_v38 = vpop.f32.mrf.mxu0  ;;  %v4136_v35 = vpop.f32.mrf.mxu1 }
  0xe8   :  { %v1012_v42 = vadd.f32 %v4130_v38, %v4128_v24  ;;  %v1047_v46 = vmul.f32 %v4130_v38, %v4130_v38  ;;  %v1049_v60 = vmul.f32 %v4136_v35, %v4136_v35 }
  0xe9   :  { %v4134_v40 = vpop.f32.mrf.mxu0  ;;  %v4150_v47 = vpop.f32.mrf.mxu1 }
  0xea   :  { %v1062_v43 = vmul.f32 %v4134_v40, %v4134_v40  ;;  %v1013_v49 = vadd.f32 %v1012_v42, %v4132_v39  ;;  %v1064_v51 = vmul.f32 %v4150_v47, %v4150_v47  ;;  %v1078_v52 = vadd.f32 %v1047_v46, %v1046_v45 }
  0xeb   :  { %v4138_v41 = vpop.f32.mrf.mxu0  ;;  %v4159_v54 = vpop.f32.mrf.mxu1 }
  0xec   :  { %v1063_v44 = vmul.f32 %v4138_v41, %v4138_v41  ;;  %v1029_v48 = vadd.f32 %v4138_v41, %v4134_v40  ;;  %v1014_v56 = vadd.f32 %v1013_v49, %v4136_v35  ;;  %v1065_v58 = vmul.f32 %v4159_v54, %v4159_v54 }
  0xed   :  { %v1079_v59 = vadd.f32 %v1078_v52, %v1048_v53 }
  0xee   :  { %v1095_v50 = vadd.f32 %v1063_v44, %v1062_v43  ;;  %v1030_v55 = vadd.f32 %v1029_v48, %v4150_v47 }
  0xef   :  { %v1080_v2 = vadd.f32 %v1079_v59, %v1049_v60 }
  0xf0   :  { %v1096_v57 = vadd.f32 %v1095_v50, %v1064_v51  ;;  %v1031_v62 = vadd.f32 %v1030_v55, %v4159_v54 }
  0xf2   :  { %v1097_v1 = vadd.f32 %v1096_v57, %v1065_v58 }
 0x149   :  { %v4167_v61 = vpop.f32.mrf.mxu0 }
 0x14a   :  { %v1015_v0 = vadd.f32 %v1014_v56, %v4167_v61  ;;  %v1050_v4 = vmul.f32 %v4167_v61, %v4167_v61 }
 0x14b   :  { %v4170_v63 = vpop.f32.mrf.mxu0 }
 0x14c   :  { %v1016_v12 = vadd.f32 %v1015_v0, %v4170_v63  ;;  %v1081_v15 = vadd.f32 %v1080_v2, %v1050_v4  ;;  %v1051_v17 = vmul.f32 %v4170_v63, %v4170_v63 }
 0x14d   :  { %v4175_v5 = vpop.f32.mrf.mxu0 }
 0x14e   :  { %v1032_v6 = vadd.f32 %v1031_v62, %v4175_v5  ;;  %v1066_v8 = vmul.f32 %v4175_v5, %v4175_v5  ;;  %v1082_v25 = vadd.f32 %v1081_v15, %v1051_v17 }
 0x14f   :  { %v4180_v10 = vpop.f32.mrf.mxu0 }
 0x150   :  { %v1098_v13 = vadd.f32 %v1097_v1, %v1066_v8  ;;  %v1067_v14 = vmul.f32 %v4180_v10, %v4180_v10  ;;  %v1033_v20 = vadd.f32 %v1032_v6, %v4180_v10 }
 0x151   :  { %v4187_v18 = vpop.f32.mrf.mxu1 }
 0x152   :  { %v1017_v19 = vadd.f32 %v1016_v12, %v4187_v18  ;;  %v1052_v21 = vmul.f32 %v4187_v18, %v4187_v18  ;;  %v1099_v22 = vadd.f32 %v1098_v13, %v1067_v14 }
 0x153   :  { %v4193_v23 = vpop.f32.mrf.mxu1 }
 0x154   :  { %v1018_v27 = vadd.f32 %v1017_v19, %v4193_v23  ;;  %v1083_v29 = vadd.f32 %v1082_v25, %v1052_v21  ;;  %v1053_v30 = vmul.f32 %v4193_v23, %v4193_v23 }
 0x155   :  { %v4196_v28 = vpop.f32.mrf.mxu1 }
 0x156   :  { %v1034_v16 = vadd.f32 %v1033_v20, %v4196_v28  ;;  %v1068_v11 = vmul.f32 %v4196_v28, %v4196_v28  ;;  %v1084_v37 = vadd.f32 %v1083_v29, %v1053_v30 }
 0x157   :  { %v4203_v31 = vpop.f32.mrf.mxu0  ;;  %v4205_v7 = vpop.f32.mrf.mxu1 }
 0x158   :  { %v1100_v32 = vadd.f32 %v1099_v22, %v1068_v11  ;;  %v1019_v33 = vadd.f32 %v1018_v27, %v4203_v31  ;;  %v1069_v26 = vmul.f32 %v4205_v7, %v4205_v7  ;;  %v1035_v9 = vadd.f32 %v1034_v16, %v4205_v7 }
 0x159   :  { %v4210_v34 = vpop.f32.mrf.mxu0  ;;  %v1054_v36 = vmul.f32 %v4203_v31, %v4203_v31 }
 0x15a   :  { %v1101_v42 = vadd.f32 %v1100_v32, %v1069_v26  ;;  %v1020_v44 = vadd.f32 %v1019_v33, %v4210_v34  ;;  %v1055_v51 = vmul.f32 %v4210_v34, %v4210_v34 }
 0x15b   :  { %v1085_v50 = vadd.f32 %v1084_v37, %v1054_v36 }
 0x15c   :  { %v4215_v43 = vpop.f32.mrf.mxu0 }
 0x15d   :  { %v1070_v45 = vmul.f32 %v4215_v43, %v4215_v43  ;;  %v1036_v46 = vadd.f32 %v1035_v9, %v4215_v43  ;;  %v1086_v60 = vadd.f32 %v1085_v50, %v1055_v51 }
 0x15e   :  { %v4221_v48 = vpop.f32.mrf.mxu1  ;;  %v4223_v49 = vpop.f32.mrf.mxu0 }
 0x15f   :  { %v1021_v52 = vadd.f32 %v1020_v44, %v4221_v48  ;;  %v1102_v53 = vadd.f32 %v1101_v42, %v1070_v45  ;;  %v1071_v55 = vmul.f32 %v4223_v49, %v4223_v49  ;;  %v1056_v57 = vmul.f32 %v4221_v48, %v4221_v48 }
 0x160   :  { %v4230_v56 = vpop.f32.mrf.mxu1  ;;  %v1037_v58 = vadd.f32 %v1036_v46, %v4223_v49 }
 0x161   :  { %v1022_v59 = vadd.f32 %v1021_v52, %v4230_v56  ;;  %v1103_v0 = vadd.f32 %v1102_v53, %v1071_v55  ;;  %v1087_v4 = vadd.f32 %v1086_v60, %v1056_v57  ;;  %v1057_v12 = vmul.f32 %v4230_v56, %v4230_v56 }
 0x163   :  { %v4236_v62 = vpop.f32.mrf.mxu1  ;;  %v1088_v25 = vadd.f32 %v1087_v4, %v1057_v12  ;;  %v3684_v4 = vmov 1   ;;  %v27_v12 = vld [vmem:[%s5878_s5 + $0x8] sm:$0xff] }
 0x164   :  { %v1038_v1 = vadd.f32 %v1037_v58, %v4236_v62  ;;  %v1072_v2 = vmul.f32 %v4236_v62, %v4236_v62  ;;  %3642 = vset.pattern.permute.xlu1 %v3684_v4 }
 0x165   :  { %v4241_v6 = vpop.f32.mrf.mxu0  ;;  %v4243_v8 = vpop.f32.mrf.mxu1 }
 0x166   :  { %v1104_v13 = vadd.f32 %v1103_v0, %v1072_v2  ;;  %v1023_v14 = vadd.f32 %v1022_v59, %v4241_v6  ;;  %v1039_v15 = vadd.f32 %v1038_v1, %v4243_v8  ;;  %v1073_v17 = vmul.f32 %v4243_v8, %v4243_v8 }
 0x167   :  { %v4251_v19 = vpop.f32.mrf.mxu0  ;;  %v1058_v27 = vmul.f32 %v4241_v6, %v4241_v6 }
 0x168   :  { %v1105_v20 = vadd.f32 %v1104_v13, %v1073_v17  ;;  %v1024_v21 = vadd.f32 %v1023_v14, %v4251_v19  ;;  %v1059_v45 = vmul.f32 %v4251_v19, %v4251_v19  ;;  %v5884_v13 = vmov 0  }
 0x169   :  { %v4254_v22 = vpop.f32.mrf.mxu0  ;;  %v1089_v42 = vadd.f32 %v1088_v25, %v1058_v27  ;;  %3641 = vset.pattern.permute.xlu0 %v5884_v13 }
 0x16a   :  { %v1040_v16 = vadd.f32 %v1039_v15, %v4254_v22  ;;  %v1074_v11 = vmul.f32 %v4254_v22, %v4254_v22  ;;  %v4261_v29 = vpop.f32.mrf.mxu1 }
 0x16b   :  { %v4263_v30 = vpop.f32.mrf.mxu0  ;;  %v1025_v32 = vadd.f32 %v1024_v21, %v4261_v29  ;;  %v1060_v53 = vmul.f32 %v4261_v29, %v4261_v29  ;;  %v1090_v59 = vadd.f32 %v1089_v42, %v1059_v45 }
 0x16c   :  { %v1106_v33 = vadd.f32 %v1105_v20, %v1074_v11  ;;  %v1075_v26 = vmul.f32 %v4263_v30, %v4263_v30  ;;  %v4268_v9 = vpop.f32.mrf.mxu1  ;;  %v1041_v37 = vadd.f32 %v1040_v16, %v4263_v30 }
 0x16d   :  { %v1026_v36 = vadd.f32 %v1025_v32, %v4268_v9  ;;  %v1061_v0 = vmul.f32 %v4268_v9, %v4268_v9  ;;  %v1091_v1 = vadd.f32 %v1090_v59, %v1060_v53 }
 0x16e   :  { %v4272_v44 = vpop.f32.mrf.mxu1  ;;  %v1107_v51 = vadd.f32 %v1106_v33, %v1075_v26 }
 0x16f   :  { %v1076_v46 = vmul.f32 %v4272_v44, %v4272_v44  ;;  %1027 = vadd.xlane.f32.xlu1 %v1026_v36  ;;  %v1042_v50 = vadd.f32 %v1041_v37, %v4272_v44  ;;  %v1092_v2 = vadd.f32 %v1091_v1, %v1061_v0 }
 0x170   :  { %v4279_v52 = vpop.f32.mrf.mxu1 }
 0x171   :  { %v1043_v55 = vadd.f32 %v1042_v50, %v4279_v52  ;;  %v1077_v57 = vmul.f32 %v4279_v52, %v4279_v52  ;;  %v1108_v58 = vadd.f32 %v1107_v51, %v1076_v46  ;;  %v26_v46 = vld [vmem:[%s5878_s5] sm:$0xff] }
 0x173   :  { %1044 = vadd.xlane.f32.xlu0 %v1043_v55  ;;  %v1109_v60 = vadd.f32 %v1108_v58, %v1077_v57 }
 0x177   :  { %1110 = vadd.xlane.f32.xlu0 %v1109_v60 }
 0x17b   :  { %1093 = vadd.xlane.f32.xlu0 %v1092_v2 }
 0x180   :  { %1208 = vperm.xlu1 %3642, %v27_v12  }
 0x184   :  { %3643 = vset.pattern.permute.xlu1 %v5884_v13 }
 0x1f8   :  { %v1028_v17 = vpop.xlane.xlu1 %1027 }
 0x1f9   :  { %v4295_v21 = vmul.f32 0.0005567929, %v1028_v17 }
 0x1fb   :  { %v1117_v33 = vmul.f32 %v4295_v21, %v4295_v21  ;;  %v1132_v53 = vsub.f32 %v4170_v63, %v4295_v21  ;;  %v1128_v55 = vsub.f32 %v4130_v38, %v4295_v21  ;;  %v1130_v57 = vsub.f32 %v4136_v35, %v4295_v21 }
 0x1fc   :  { %v1045_v14 = vpop.xlane.xlu0 %1044  ;;  %v1127_v58 = vsub.f32 %v4128_v24, %v4295_v21  ;;  %v4312_v59 = vpop.permute.xlu1 %1208  ;;  %v1131_v60 = vsub.f32 %v4167_v61, %v4295_v21  ;;  %v1136_v0 = vsub.f32 %v4210_v34, %v4295_v21  ;;  %v1129_v63 = vsub.f32 %v4132_v39, %v4295_v21 }
 0x1fd   :  { %v4293_v15 = vmul.f32 0.0005567929, %v1045_v14  ;;  %v1140_v38 = vsub.f32 %v4251_v19, %v4295_v21  ;;  %v1135_v35 = vsub.f32 %v4203_v31, %v4295_v21  ;;  %v1139_v24 = vsub.f32 %v4241_v6, %v4295_v21 }
 0x1fe   :  { %v1138_v1 = vsub.f32 %v4230_v56, %v4295_v21  ;;  %v1137_v61 = vsub.f32 %v4221_v48, %v4295_v21  ;;  %v1134_v19 = vsub.f32 %v4193_v23, %v4295_v21  ;;  %v1133_v2 = vsub.f32 %v4187_v18, %v4295_v21 }
 0x1ff   :  { %v1118_v25 = vmul.f32 %v4293_v15, %v4293_v15  ;;  %v1146_v34 = vsub.f32 %v4159_v54, %v4293_v15  ;;  %v1144_v39 = vsub.f32 %v4138_v41, %v4293_v15  ;;  %v1156_v14 = vsub.f32 %v4263_v30, %v4293_v15 }
 0x200   :  { %v1111_v20 = vpop.xlane.xlu0 %1110  ;;  %v1148_v54 = vsub.f32 %v4180_v10, %v4293_v15  ;;  %v1154_v41 = vsub.f32 %v4243_v8, %v4293_v15  ;;  %v1147_v17 = vsub.f32 %v4175_v5, %v4293_v15  ;;  %v1153_v30 = vsub.f32 %v4236_v62, %v4293_v15 }
 0x201   :  { %v1116_v27 = vmul.f32 0.0005567929, %v1111_v20  ;;  %v1145_v20 = vsub.f32 %v4150_v47, %v4293_v15  ;;  %v1150_v10 = vsub.f32 %v4205_v7, %v4293_v15  ;;  %v1149_v8 = vsub.f32 %v4196_v28, %v4293_v15 }
 0x202   :  { %v1158_v5 = vsub.f32 %v4279_v52, %v4293_v15 }
 0x203   :  { %v1120_v16 = vsub.f32 %v1116_v27, %v1118_v25  ;;  %v1157_v27 = vsub.f32 %v4272_v44, %v4293_v15 }
 0x204   :  { %v1094_v11 = vpop.xlane.xlu0 %1093 }
 0x205   :  { %v1122_v32 = vadd.f32 1e-05, %v1120_v16  ;;  %v1115_v26 = vmul.f32 0.0005567929, %v1094_v11 }
 0x207   :  { %3656 = vrsqrt.f32 %v1122_v32  ;;  %v1119_v37 = vsub.f32 %v1115_v26, %v1117_v33 }
 0x209   :  { %v1121_v36 = vadd.f32 1e-05, %v1119_v37 }
 0x20b   :  { %3658 = vrsqrt.f32 %v1121_v36 }
 0x214   :  { %v3657_v42 = vpop.eup %3656 }
 0x215   :  { %v1126_v45 = vmul.f32 %v3657_v42, %v27_v12  ;;  %v1143_v12 = vsub.f32 %v4134_v40, %v4293_v15  ;;  %v1155_v40 = vsub.f32 %v4254_v22, %v4293_v15 }
 0x217   :  { %1166 = vperm.xlu1 %3643, %v1126_v45  }
 0x218   :  { %v3659_v50 = vpop.eup %3658 }
 0x219   :  { %v1125_v51 = vmul.f32 %v3659_v50, %v26_v46 }
 0x21b   :  { %1161 = vperm.xlu0 %3641, %v1125_v51   ;;  %3644 = vset.pattern.permute.xlu1 %v3684_v4  ;;  %v1152_v4 = vsub.f32 %v4223_v49, %v4293_v15  ;;  %v1151_v49 = vsub.f32 %v4215_v43, %v4293_v15 }
 0x21c   :  { %1203 = vperm.xlu1 %3644, %v26_v46  }
 0x292   :  { %v4362_v25 = vpop.permute.xlu1 %1166 }
 0x293   :  { %v1188_v32 = vmul.f32 %v4362_v25, %v1146_v34  ;;  %v1186_v33 = vmul.f32 %v4362_v25, %v1144_v39  ;;  %v1194_v26 = vmul.f32 %v4362_v25, %v1152_v4  ;;  %v1185_v37 = vmul.f32 %v4362_v25, %v1143_v12 }
 0x294   :  { %v1198_v36 = vmul.f32 %v4362_v25, %v1156_v14  ;;  %v1190_v42 = vmul.f32 %v4362_v25, %v1148_v54  ;;  %v1196_v45 = vmul.f32 %v4362_v25, %v1154_v41  ;;  %v1189_v46 = vmul.f32 %v4362_v25, %v1147_v17 }
 0x295   :  { %v4381_v50 = vadd.f32 %v4312_v59, %v1188_v32  ;;  %v1228_v51 = vadd.f32 %v4312_v59, %v1186_v33  ;;  %v1236_v34 = vadd.f32 %v4312_v59, %v1194_v26  ;;  %v1227_v39 = vadd.f32 %v4312_v59, %v1185_v37 }
 0x296   :  { %v4386_v4 = vpop.permute.xlu0 %1161  ;;  %v1240_v12 = vadd.f32 %v4312_v59, %v1198_v36  ;;  %v1232_v14 = vadd.f32 %v4312_v59, %v1190_v42  ;;  %v4391_v54 = vadd.f32 %v4312_v59, %v1196_v45  ;;  %v1231_v41 = vadd.f32 %v4312_v59, %v1189_v46 }
 0x297   :  { %v4394_v17 = vpop.permute.xlu1 %1203  ;;  %v1174_v32 = vmul.f32 %v4386_v4, %v1132_v53  ;;  %v1170_v33 = vmul.f32 %v4386_v4, %v1128_v55  ;;  %v1172_v26 = vmul.f32 %v4386_v4, %v1130_v57  ;;  %v1169_v37 = vmul.f32 %v4386_v4, %v1127_v58 }
 0x298   :  { %v1173_v13 = vmul.f32 %v4386_v4, %v1131_v60  ;;  %v1178_v36 = vmul.f32 %v4386_v4, %v1136_v0  ;;  %v1171_v42 = vmul.f32 %v4386_v4, %v1129_v63  ;;  %v1182_v45 = vmul.f32 %v4386_v4, %v1140_v38 }
 0x299   :  { %v1216_v46 = vadd.f32 %v4394_v17, %v1174_v32  ;;  %v1212_v11 = vadd.f32 %v4394_v17, %v1170_v33  ;;  %v1214_v53 = vadd.f32 %v4394_v17, %v1172_v26  ;;  %v1211_v55 = vadd.f32 %v4394_v17, %v1169_v37 }
 0x29a   :  { %v1215_v57 = vadd.f32 %v4394_v17, %v1173_v13  ;;  %v1220_v58 = vadd.f32 %v4394_v17, %v1178_v36  ;;  %v4411_v60 = vadd.f32 %v4394_v17, %v1171_v42  ;;  %v1224_v0 = vadd.f32 %v4394_v17, %v1182_v45 }
 0x29b   :  { %v1248_v63 = vmax.f32 %v1216_v46, 0.0  ;;  %v4414_v16 = vmax.f32 %v1212_v11, 0.0  ;;  %v1246_v38 = vmax.f32 %v1214_v53, 0.0  ;;  %v4416_v32 = vmax.f32 %v1211_v55, 0.0 }
 0x29c   :  { %v4418_v33 = vmax.f32 %v1215_v57, 0.0  ;;  %v4420_v26 = vmax.f32 %v1220_v58, 0.0  ;;  %v1245_v37 = vmax.f32 %v4411_v60, 0.0  ;;  %v4423_v13 = vmax.f32 %v1224_v0, 0.0 }
 0x29d   :  { %1429 = vrot.lane.b32.xlu0 %v1248_v63, %s3683_s30  ;;  %1350 = vst.msk [vmem:[#allocation3 + $0x108] sm:$0xff] %vm103_vm2, %v1248_v63  ;;  %1329 = vrot.lane.b32.xlu1 %v4414_v16, %s3683_s30  ;;  %1342 = vst.msk [vmem:[#allocation3 + $0x8] sm:$0xff] %vm103_vm2, %v4414_v16  ;;  %v1262_v11 = vmax.f32 %v4381_v50, 0.0  ;;  %v1177_v36 = vmul.f32 %v4386_v4, %v1135_v35  ;;  %v4438_v42 = vmax.f32 %v1228_v51, 0.0  ;;  %v4462_v6 = vmax.f32 %v1236_v34, 0.0 }
 0x29e   :  { %1443 = vst.msk [vmem:[#allocation3 + $0x18] sm:$0xff] %vm1442_vm6, %v1248_v63  ;;  %v1181_v45 = vmul.f32 %v4386_v4, %v1139_v24  ;;  %1608 = vst.msk [vmem:[#allocation3 + $0x38] sm:$0xff] %vm1442_vm6, %v4423_v13  ;;  %v1180_v31 = vmul.f32 %v4386_v4, %v1138_v1  ;;  %v4464_v35 = vmax.f32 %v1227_v39, 0.0  ;;  %v4466_v24 = vmax.f32 %v1240_v12, 0.0 }
 0x29f   :  { %1346 = vst.msk [vmem:[#allocation3 + $0x88] sm:$0xff] %vm103_vm2, %v1246_v38  ;;  %1508 = vst.msk [vmem:[#allocation3 + $0x28] sm:$0xff] %vm103_vm2, %v4420_v26  ;;  %v1219_v56 = vadd.f32 %v4394_v17, %v1177_v36  ;;  %v4481_v51 = vmax.f32 %v1232_v14, 0.0  ;;  %v1270_v34 = vmax.f32 %v4391_v54, 0.0  ;;  %v4497_v12 = vmax.f32 %v1231_v41, 0.0 }
 0x2a0   :  { %1365 = vst.msk [vmem:[#allocation3 + $0x108] sm:$0xff] %vm113_vm3, %v3682_v3  ;;  %1361 = vst.msk [vmem:[#allocation3 + $0x8] sm:$0xff] %vm113_vm3, %v3682_v3  ;;  %v1223_v1 = vadd.f32 %v4394_v17, %v1181_v45  ;;  %v4489_v39 = vadd.f32 %v4394_v17, %v1180_v31  ;;  %v1187_v14 = vmul.f32 %v4362_v25, %v1145_v20 }
 0x2a1   :  { %1463 = vst.msk [vmem:[#allocation3 + $0x18] sm:$0xff] %vm1462_vm7, %v3682_v3  ;;  %1627 = vst.msk [vmem:[#allocation3 + $0x38] sm:$0xff] %vm1462_vm7, %v3682_v3  ;;  %v1179_v46 = vmul.f32 %v4386_v4, %v1137_v61  ;;  %1411 = vrot.lane.b32.xlu0 %v1246_v38, %s3683_s30  ;;  %1327 = vrot.lane.b32.xlu1 %v4416_v32, %s3683_s30  ;;  %v4510_v53 = vmax.f32 %v1219_v56, 0.0  ;;  %v1193_v47 = vmul.f32 %v4362_v25, %v1151_v49 }
 0x2a2   :  { %1363 = vst.msk [vmem:[#allocation3 + $0x88] sm:$0xff] %vm113_vm3, %v3682_v3  ;;  %1527 = vst.msk [vmem:[#allocation3 + $0x28] sm:$0xff] %vm113_vm3, %v3682_v3  ;;  %v4512_v55 = vmax.f32 %v1223_v1, 0.0  ;;  %v1197_v48 = vmul.f32 %v4362_v25, %v1155_v40  ;;  %v1254_v61 = vmax.f32 %v4489_v39, 0.0  ;;  %v4543_v43 = vadd.f32 %v4312_v59, %v1187_v14 }
 0x2a3   :  { %1516 = vst.msk [vmem:[#allocation3 + $0x128] sm:$0xff] %vm103_vm2, %v4423_v13  ;;  %1348 = vst.msk [vmem:[#allocation3 + $0xc8] sm:$0xff] %vm103_vm2, %v1262_v11  ;;  %v4546_v20 = vadd.f32 %v4394_v17, %v1179_v46  ;;  %v1195_v22 = vmul.f32 %v4362_v25, %v1153_v30  ;;  %v1235_v49 = vadd.f32 %v4312_v59, %v1193_v47 }
 0x2a4   :  { %1531 = vst.msk [vmem:[#allocation3 + $0x128] sm:$0xff] %vm113_vm3, %v3682_v3  ;;  %1364 = vst.msk [vmem:[#allocation3 + $0xc8] sm:$0xff] %vm113_vm3, %v3682_v3  ;;  %v1239_v40 = vadd.f32 %v4312_v59, %v1197_v48  ;;  %v1192_v41 = vmul.f32 %v4362_v25, %v1150_v10  ;;  %v1191_v57 = vmul.f32 %v4362_v25, %v1149_v8  ;;  %v1261_v62 = vmax.f32 %v4543_v43, 0.0 }
 0x2a5   :  { %1344 = vst.msk [vmem:[#allocation3 + $0x48] sm:$0xff] %vm103_vm2, %v4438_v42  ;;  %1510 = vst.msk [vmem:[#allocation3 + $0x68] sm:$0xff] %vm103_vm2, %v4462_v6  ;;  %v1253_v30 = vmax.f32 %v4546_v20, 0.0  ;;  %v4568_v58 = vadd.f32 %v4312_v59, %v1195_v22  ;;  %v1176_v7 = vmul.f32 %v4386_v4, %v1134_v19  ;;  %1393 = vrot.lane.b32.xlu0 %v4414_v16, %s3683_s30  ;;  %1427 = vrot.lane.b32.xlu1 %v4418_v33, %s3683_s30 }
 0x2a6   :  { %1362 = vst.msk [vmem:[#allocation3 + $0x48] sm:$0xff] %vm113_vm3, %v3682_v3  ;;  %1528 = vst.msk [vmem:[#allocation3 + $0x68] sm:$0xff] %vm113_vm3, %v3682_v3  ;;  %v4580_v28 = vmax.f32 %v1235_v49, 0.0  ;;  %v4582_v10 = vmax.f32 %v1239_v40, 0.0  ;;  %v1234_v8 = vadd.f32 %v4312_v59, %v1192_v41  ;;  %v4586_v0 = vadd.f32 %v4312_v59, %v1191_v57 }
 0x2a7   :  { %1518 = vst.msk [vmem:[#allocation3 + $0x168] sm:$0xff] %vm103_vm2, %v4466_v24  ;;  %1352 = vst.msk [vmem:[#allocation3 + $0x148] sm:$0xff] %vm103_vm2, %v4481_v51  ;;  %v1269_v23 = vmax.f32 %v4568_v58, 0.0  ;;  %v1218_v19 = vadd.f32 %v4394_v17, %v1176_v7  ;;  %v1175_v16 = vmul.f32 %v4386_v4, %v1133_v2  ;;  %v1200_v63 = vmul.f32 %v4362_v25, %v1158_v5 }
 0x2a8   :  { %1610 = vst.msk [vmem:[#allocation3 + $0x78] sm:$0xff] %vm1442_vm6, %v4466_v24  ;;  %1445 = vst.msk [vmem:[#allocation3 + $0x58] sm:$0xff] %vm1442_vm6, %v4481_v51  ;;  %v1266_v38 = vmax.f32 %v1234_v8, 0.0  ;;  %v1265_v36 = vmax.f32 %v4586_v0, 0.0  ;;  %v1199_v45 = vmul.f32 %v4362_v25, %v1157_v27  ;;  %v5885_v31 = vsub.f32 %v4268_v9, %v4295_v21 }
 0x2a9   :  { %1532 = vst.msk [vmem:[#allocation3 + $0x168] sm:$0xff] %vm113_vm3, %v3682_v3  ;;  %1366 = vst.msk [vmem:[#allocation3 + $0x148] sm:$0xff] %vm113_vm3, %v3682_v3  ;;  %v1250_v56 = vmax.f32 %v1218_v19, 0.0  ;;  %v4608_v2 = vadd.f32 %v4394_v17, %v1175_v16  ;;  %v1242_v52 = vadd.f32 %v4312_v59, %v1200_v63  ;;  %v5886_v5 = vsub.f32 %v4261_v29, %v4295_v21  ;;  %v1646_v58 = vld [vmem:[#allocation3 + $0x28] sm:$0xff] }
 0x2aa   :  { %1628 = vst.msk [vmem:[#allocation3 + $0x78] sm:$0xff] %vm1462_vm7, %v3682_v3  ;;  %1464 = vst.msk [vmem:[#allocation3 + $0x58] sm:$0xff] %vm1462_vm7, %v3682_v3  ;;  %v1184_v18 = vmul.f32 %v4386_v4, %v5885_v31  ;;  %1495 = vrot.lane.b32.xlu0 %v4420_v26, %s3683_s30  ;;  %1409 = vrot.lane.b32.xlu1 %v1245_v37, %s3683_s30  ;;  %v4623_v9 = vadd.f32 %v4312_v59, %v1199_v45 }
 0x2ab   :  { %1514 = vst.msk [vmem:[#allocation3 + $0xe8] sm:$0xff] %vm103_vm2, %v1270_v34  ;;  %1512 = vst.msk [vmem:[#allocation3 + $0xa8] sm:$0xff] %vm103_vm2, %v1254_v61  ;;  %v1183_v1 = vmul.f32 %v4386_v4, %v5886_v5  ;;  %v1249_v29 = vmax.f32 %v4608_v2, 0.0  ;;  %v1274_v15 = vmax.f32 %v1242_v52, 0.0 }
 0x2ac   :  { %1530 = vst.msk [vmem:[#allocation3 + $0xe8] sm:$0xff] %vm113_vm3, %v3682_v3  ;;  %1529 = vst.msk [vmem:[#allocation3 + $0xa8] sm:$0xff] %vm113_vm3, %v3682_v3  ;;  %v1226_v44 = vadd.f32 %v4394_v17, %v1184_v18  ;;  %v1273_v59 = vmax.f32 %v4623_v9, 0.0 }
 0x2ad   :  { %1356 = vst.msk [vmem:[#allocation3 + $0x1c8] sm:$0xff] %vm103_vm2, %v1266_v38  ;;  %1354 = vst.msk [vmem:[#allocation3 + $0x188] sm:$0xff] %vm103_vm2, %v1250_v56  ;;  %v4634_v21 = vadd.f32 %v4394_v17, %v1183_v1 }
 0x2ae   :  { %1449 = vst.msk [vmem:[#allocation3 + $0xd8] sm:$0xff] %vm1442_vm6, %v1266_v38  ;;  %1447 = vst.msk [vmem:[#allocation3 + $0x98] sm:$0xff] %vm1442_vm6, %v1250_v56  ;;  %v1258_v25 = vmax.f32 %v1226_v44, 0.0  ;;  %1595 = vrot.lane.b32.xlu0 %v4423_v13, %s3683_s30  ;;  %1391 = vrot.lane.b32.xlu1 %v4416_v32, %s3683_s30 }
 0x2af   :  { %1368 = vst.msk [vmem:[#allocation3 + $0x1c8] sm:$0xff] %vm113_vm3, %v3682_v3  ;;  %1367 = vst.msk [vmem:[#allocation3 + $0x188] sm:$0xff] %vm113_vm3, %v3682_v3  ;;  %v1257_v27 = vmax.f32 %v4634_v21, 0.0 }
 0x2b0   :  { %1466 = vst.msk [vmem:[#allocation3 + $0xd8] sm:$0xff] %vm1462_vm7, %v3682_v3  ;;  %1465 = vst.msk [vmem:[#allocation3 + $0x98] sm:$0xff] %vm1462_vm7, %v3682_v3  ;;  %v1682_v5 = vld [vmem:[#allocation3 + $0x148] sm:$0xff] }
 0x2b1   :  { %1522 = vst.msk [vmem:[#allocation3 + $0x1e8] sm:$0xff] %vm103_vm2, %v1274_v15  ;;  %1520 = vst.msk [vmem:[#allocation3 + $0x1a8] sm:$0xff] %vm103_vm2, %v1258_v25  ;;  %v1656_v20 = vld [vmem:[#allocation3 + $0x78] sm:$0xff] }
 0x2b2   :  { %1614 = vst.msk [vmem:[#allocation3 + $0xf8] sm:$0xff] %vm1442_vm6, %v1274_v15  ;;  %1612 = vst.msk [vmem:[#allocation3 + $0xb8] sm:$0xff] %vm1442_vm6, %v1258_v25  ;;  %1415 = vrot.lane.b32.xlu0 %v1262_v11, %s3683_s30  ;;  %1493 = vrot.lane.b32.xlu1 %v4510_v53, %s3683_s30 }
 0x2b3   :  { %1534 = vst.msk [vmem:[#allocation3 + $0x1e8] sm:$0xff] %vm113_vm3, %v3682_v3  ;;  %1533 = vst.msk [vmem:[#allocation3 + $0x1a8] sm:$0xff] %vm113_vm3, %v3682_v3 }
 0x2b4   :  { %1630 = vst.msk [vmem:[#allocation3 + $0xf8] sm:$0xff] %vm1462_vm7, %v3682_v3  ;;  %1629 = vst.msk [vmem:[#allocation3 + $0xb8] sm:$0xff] %vm1462_vm7, %v3682_v3 }
 0x2b6   :  { %1397 = vrot.lane.b32.xlu0 %v4438_v42, %s3683_s30  ;;  %1593 = vrot.lane.b32.xlu1 %v4512_v55, %s3683_s30  ;;  %v1698_v45 = vld [vmem:[#allocation3 + $0x1c8] sm:$0xff] }
 0x2b7   :  { %v1690_v52 = vld [vmem:[#allocation3 + $0x188] sm:$0xff]  ;;  %v1668_v43 = vld [vmem:[#allocation3 + $0xd8] sm:$0xff] }
 0x2ba   :  { %1577 = vrot.lane.b32.xlu0 %v1254_v61, %s3683_s30  ;;  %1333 = vrot.lane.b32.xlu1 %v4438_v42, %s3683_s30  ;;  %v1694_v0 = vld [vmem:[#allocation3 + $0x1a8] sm:$0xff] }
 0x2be   :  { %1499 = vrot.lane.b32.xlu0 %v4462_v6, %s3683_s30  ;;  %1331 = vrot.lane.b32.xlu1 %v4464_v35, %s3683_s30 }
 0x2c2   :  { %1599 = vrot.lane.b32.xlu0 %v4466_v24, %s3683_s30  ;;  %1433 = vrot.lane.b32.xlu1 %v4481_v51, %s3683_s30 }
 0x2c6   :  { %1581 = vrot.lane.b32.xlu0 %v1270_v34, %s3683_s30  ;;  %1431 = vrot.lane.b32.xlu1 %v4497_v12, %s3683_s30 }
 0x2ca   :  { %1563 = vrot.lane.b32.xlu0 %v4462_v6, %s3683_s30  ;;  %1413 = vrot.lane.b32.xlu1 %v1261_v62, %s3683_s30 }
 0x2ce   :  { %1559 = vrot.lane.b32.xlu0 %v4420_v26, %s3683_s30  ;;  %1395 = vrot.lane.b32.xlu1 %v4464_v35, %s3683_s30 }
 0x2d2   :  { %1575 = vrot.lane.b32.xlu1 %v1253_v30, %s3683_s30 }
 0x2d6   :  { %1497 = vrot.lane.b32.xlu1 %v4580_v28, %s3683_s30 }
 0x2da   :  { %1597 = vrot.lane.b32.xlu1 %v4582_v10, %s3683_s30 }
 0x2de   :  { %1579 = vrot.lane.b32.xlu1 %v1269_v23, %s3683_s30 }
 0x2e2   :  { %1561 = vrot.lane.b32.xlu1 %v4580_v28, %s3683_s30 }
 0x2e6   :  { %1557 = vrot.lane.b32.xlu1 %v4510_v53, %s3683_s30 }
 0x30f   :  { %v1430_v50 = vpop.permute.xlu0 %1429  ;;  %v1330_v4 = vpop.permute.xlu1 %1329 }
 0x310   :  { %1459 = vst.msk [vmem:[#allocation3 + $0x218] sm:$0xff] %vm1442_vm6, %v1430_v50 }
 0x311   :  { %1358 = vst.msk [vmem:[#allocation3 + $0x208] sm:$0xff] %vm103_vm2, %v1330_v4 }
 0x312   :  { %1471 = vst.msk [vmem:[#allocation3 + $0x218] sm:$0xff] %vm1462_vm7, %v3682_v3 }
 0x313   :  { %1369 = vst.msk [vmem:[#allocation3 + $0x208] sm:$0xff] %vm113_vm3, %v3682_v3  ;;  %v1412_v54 = vpop.permute.xlu0 %1411  ;;  %v1328_v17 = vpop.permute.xlu1 %1327 }
 0x314   :  { %1455 = vst.msk [vmem:[#allocation3 + $0x198] sm:$0xff] %vm1442_vm6, %v1412_v54  ;;  %v1335_v26 = vsel %vm98_vm5, %v1328_v17, %v1330_v4 }
 0x315   :  { %1469 = vst.msk [vmem:[#allocation3 + $0x198] sm:$0xff] %vm1462_vm7, %v3682_v3 }
 0x317   :  { %v1394_v13 = vpop.permute.xlu0 %1393  ;;  %v1428_v11 = vpop.permute.xlu1 %1427 }
 0x318   :  { %1451 = vst.msk [vmem:[#allocation3 + $0x118] sm:$0xff] %vm1442_vm6, %v1394_v13  ;;  %v4720_v42 = vsel %vm98_vm5, %v1428_v11, %v1430_v50  ;;  %v1674_v50 = vld [vmem:[#allocation3 + $0x108] sm:$0xff] }
 0x319   :  { %1467 = vst.msk [vmem:[#allocation3 + $0x118] sm:$0xff] %vm1462_vm7, %v3682_v3  ;;  %v1708_v4 = vld [vmem:[#allocation3 + $0x218] sm:$0xff] }
 0x31a   :  { %v1706_v38 = vld [vmem:[#allocation3 + $0x208] sm:$0xff] }
 0x31c   :  { %v1496_v6 = vpop.permute.xlu0 %1495  ;;  %v1410_v24 = vpop.permute.xlu1 %1409 }
 0x31d   :  { %1524 = vst.msk [vmem:[#allocation3 + $0x228] sm:$0xff] %vm103_vm2, %v1496_v6  ;;  %v4726_v51 = vsel %vm98_vm5, %v1410_v24, %v1412_v54  ;;  %v1666_v54 = vld [vmem:[#allocation3 + $0xc8] sm:$0xff]  ;;  %v1692_v24 = vld [vmem:[#allocation3 + $0x198] sm:$0xff] }
 0x31e   :  { %1535 = vst.msk [vmem:[#allocation3 + $0x228] sm:$0xff] %vm113_vm3, %v3682_v3 }
 0x320   :  { %v1596_v34 = vpop.permute.xlu0 %1595  ;;  %v1392_v39 = vpop.permute.xlu1 %1391 }
 0x321   :  { %1624 = vst.msk [vmem:[#allocation3 + $0x238] sm:$0xff] %vm1442_vm6, %v1596_v34  ;;  %v4732_v14 = vsel %vm98_vm5, %v1392_v39, %v1394_v13 }
 0x322   :  { %1635 = vst.msk [vmem:[#allocation3 + $0x238] sm:$0xff] %vm1462_vm7, %v3682_v3 }
 0x324   :  { %v1416_v46 = vpop.permute.xlu0 %1415  ;;  %v1494_v47 = vpop.permute.xlu1 %1493 }
 0x325   :  { %1457 = vst.msk [vmem:[#allocation3 + $0x1d8] sm:$0xff] %vm1442_vm6, %v1416_v46  ;;  %v4738_v48 = vsel %vm98_vm5, %v1494_v47, %v1496_v6  ;;  %v1658_v6 = vld [vmem:[#allocation3 + $0x88] sm:$0xff] }
 0x326   :  { %1470 = vst.msk [vmem:[#allocation3 + $0x1d8] sm:$0xff] %vm1462_vm7, %v3682_v3 }
 0x328   :  { %v1398_v61 = vpop.permute.xlu0 %1397  ;;  %v1594_v22 = vpop.permute.xlu1 %1593 }
 0x329   :  { %1453 = vst.msk [vmem:[#allocation3 + $0x158] sm:$0xff] %vm1442_vm6, %v1398_v61  ;;  %v4744_v49 = vsel %vm98_vm5, %v1594_v22, %v1596_v34  ;;  %v1650_v34 = vld [vmem:[#allocation3 + $0x48] sm:$0xff]  ;;  %v1712_v2 = vld [vmem:[#allocation3 + $0x238] sm:$0xff] }
 0x32a   :  { %1468 = vst.msk [vmem:[#allocation3 + $0x158] sm:$0xff] %vm1462_vm7, %v3682_v3 }
 0x32c   :  { %v4748_v40 = vpop.permute.xlu0 %1577  ;;  %v1334_v41 = vpop.permute.xlu1 %1333 }
 0x32d   :  { %1620 = vst.msk [vmem:[#allocation3 + $0x1b8] sm:$0xff] %vm1442_vm6, %v4748_v40  ;;  %v1700_v17 = vld [vmem:[#allocation3 + $0x1d8] sm:$0xff] }
 0x32e   :  { %1360 = vst.msk [vmem:[#allocation3 + $0x248] sm:$0xff] %vm103_vm2, %v1334_v41 }
 0x32f   :  { %1633 = vst.msk [vmem:[#allocation3 + $0x1b8] sm:$0xff] %vm1462_vm7, %v3682_v3 }
 0x330   :  { %1370 = vst.msk [vmem:[#allocation3 + $0x248] sm:$0xff] %vm113_vm3, %v3682_v3  ;;  %v4757_v57 = vpop.permute.xlu0 %1499  ;;  %v1332_v7 = vpop.permute.xlu1 %1331 }
 0x331   :  { %1526 = vst.msk [vmem:[#allocation3 + $0x268] sm:$0xff] %vm103_vm2, %v4757_v57  ;;  %v1336_v8 = vsel %vm98_vm5, %v1332_v7, %v1334_v41  ;;  %v1684_v39 = vld [vmem:[#allocation3 + $0x158] sm:$0xff]  ;;  %v1702_v7 = vld [vmem:[#allocation3 + $0x1e8] sm:$0xff]  ;;  %vm3430_vm2 = vcmask 256000  }
 0x332   :  { %1536 = vst.msk [vmem:[#allocation3 + $0x268] sm:$0xff] %vm113_vm3, %v3682_v3  ;;  %vm3577_vm3 = vcmask 7168  }
 0x334   :  { %v4764_v19 = vpop.permute.xlu0 %1599  ;;  %v1434_v16 = vpop.permute.xlu1 %1433 }
 0x335   :  { %1626 = vst.msk [vmem:[#allocation3 + $0x278] sm:$0xff] %vm1442_vm6, %v4764_v19  ;;  %1461 = vst.msk [vmem:[#allocation3 + $0x258] sm:$0xff] %vm1442_vm6, %v1434_v16 }
 0x336   :  { %1636 = vst.msk [vmem:[#allocation3 + $0x278] sm:$0xff] %vm1462_vm7, %v3682_v3  ;;  %1472 = vst.msk [vmem:[#allocation3 + $0x258] sm:$0xff] %vm1462_vm7, %v3682_v3 }
 0x337   :  { %v1714_v63 = vld [vmem:[#allocation3 + $0x248] sm:$0xff] }
 0x338   :  { %1746 = vmatprep.subr.mxu0 %v1714_v63  ;;  %v4773_v31 = vpop.permute.xlu0 %1581  ;;  %v1432_v18 = vpop.permute.xlu1 %1431  ;;  %v1696_v63 = vld [vmem:[#allocation3 + $0x1b8] sm:$0xff] }
 0x339   :  { %1747 = vmatpush1.msra.mxu0 %v1336_v8  ;;  %1622 = vst.msk [vmem:[#allocation3 + $0x1f8] sm:$0xff] %vm1442_vm6, %v4773_v31  ;;  %v1436_v56 = vsel %vm98_vm5, %v1432_v18, %v1434_v16  ;;  %v1678_v16 = vld [vmem:[#allocation3 + $0x128] sm:$0xff] }
 0x33a   :  { %1748 = vmatprep.subr.mxu0 %v1706_v38  ;;  %1634 = vst.msk [vmem:[#allocation3 + $0x1f8] sm:$0xff] %vm1462_vm7, %v3682_v3 }
 0x33b   :  { %1749 = vmatpush1.msra.mxu0 %v1335_v26 }
 0x33c   :  { %1750 = vmatprep.subr.mxu0 %v1698_v45  ;;  %v4782_v1 = vpop.permute.xlu0 %1563  ;;  %v1414_v44 = vpop.permute.xlu1 %1413  ;;  %v1639_v45 = vld [vmem:[%s5879_s2 + $0x10] sm:$0xff] }
 0x33d   :  { %1751 = vmatpush1.msra.mxu0 %v1265_v36  ;;  %1618 = vst.msk [vmem:[#allocation3 + $0x178] sm:$0xff] %vm1442_vm6, %v4782_v1  ;;  %v1418_v15 = vsel %vm98_vm5, %v1414_v44, %v1416_v46  ;;  %v1716_v25 = vld [vmem:[#allocation3 + $0x258] sm:$0xff] }
 0x33e   :  { %1752 = vmatprep.subr.mxu0 %v1690_v52  ;;  %1632 = vst.msk [vmem:[#allocation3 + $0x178] sm:$0xff] %vm1462_vm7, %v3682_v3  ;;  %1835 = vmatprep.subr.mxu1 %v1716_v25  ;;  %v1640_v52 = vld [vmem:[%s5879_s2 + $0x18] sm:$0xff] }
 0x33f   :  { %1753 = vmatpush1.msra.mxu0 %v1249_v29  ;;  %1836 = vmatpush1.msra.mxu1 %v1436_v56  ;;  %v1662_v56 = vld [vmem:[#allocation3 + $0xa8] sm:$0xff]  ;;  %v1664_v44 = vld [vmem:[#allocation3 + $0xb8] sm:$0xff] }
 0x340   :  { %1754 = vmatprep.subr.mxu0 %v1682_v5  ;;  %v4792_v26 = vpop.permute.xlu0 %1559  ;;  %v1396_v13 = vpop.permute.xlu1 %1395  ;;  %1837 = vmatprep.subr.mxu1 %v1708_v4  ;;  %v1654_v5 = vld [vmem:[#allocation3 + $0x68] sm:$0xff] }
 0x341   :  { %1755 = vmatpush1.msra.mxu0 %v4497_v12  ;;  %1616 = vst.msk [vmem:[#allocation3 + $0x138] sm:$0xff] %vm1442_vm6, %v4792_v26  ;;  %v1400_v11 = vsel %vm98_vm5, %v1396_v13, %v1398_v61  ;;  %1838 = vmatpush1.msra.mxu1 %v4720_v42  ;;  %v1642_v42 = vld [vmem:[#allocation3 + $0x8] sm:$0xff]  ;;  %v1676_v61 = vld [vmem:[#allocation3 + $0x118] sm:$0xff] }
 0x342   :  { %1756 = vmatprep.subr.mxu0 %v1674_v50  ;;  %1631 = vst.msk [vmem:[#allocation3 + $0x138] sm:$0xff] %vm1462_vm7, %v3682_v3  ;;  %1839 = vmatprep.subr.mxu1 %v1700_v17 }
 0x343   :  { %1757 = vmatpush1.msra.mxu0 %v4418_v33  ;;  %1840 = vmatpush1.msra.mxu1 %v1418_v15 }
 0x344   :  { %1758 = vmatprep.subr.mxu0 %v1666_v54  ;;  %v1576_v46 = vpop.permute.xlu1 %1575  ;;  %1841 = vmatprep.subr.mxu1 %v1692_v24 }
 0x345   :  { %1759 = vmatpush1.msra.mxu0 %v1261_v62  ;;  %v4805_v47 = vsel %vm98_vm5, %v1576_v46, %v4748_v40  ;;  %1842 = vmatpush1.msra.mxu1 %v4726_v51  ;;  %v1718_v62 = vld [vmem:[#allocation3 + $0x268] sm:$0xff]  ;;  %v4814_v40 = vld [vmem:[%s5879_s2] sm:$0xff]  ;;  %v1652_v51 = vld [vmem:[#allocation3 + $0x58] sm:$0xff] }
 0x346   :  { %1760 = vmatprep.subr.mxu0 %v1658_v6  ;;  %1843 = vmatprep.subr.mxu1 %v1684_v39  ;;  %v1688_v18 = vld [vmem:[#allocation3 + $0x178] sm:$0xff] }
 0x347   :  { %1761 = vmatpush1.msra.mxu0 %v1245_v37  ;;  %1844 = vmatpush1.msra.mxu1 %v1400_v11  ;;  %v1660_v37 = vld [vmem:[#allocation3 + $0x98] sm:$0xff] }
 0x348   :  { %1762 = vmatprep.subr.mxu0 %v1650_v34  ;;  %v1498_v22 = vpop.permute.xlu1 %1497  ;;  %1845 = vmatprep.subr.mxu1 %v1676_v61 }
 0x349   :  { %1763 = vmatpush1.msra.mxu0 %v4464_v35  ;;  %v1502_v60 = vsel %vm98_vm5, %v1498_v22, %v4757_v57  ;;  %1846 = vmatpush1.msra.mxu1 %v4732_v14  ;;  %v1710_v35 = vld [vmem:[#allocation3 + $0x228] sm:$0xff] }
 0x34a   :  { %1764 = vmatprep.subr.mxu0 %v1642_v42  ;;  %1847 = vmatprep.subr.mxu1 %v1668_v43 }
 0x34b   :  { %1765 = vmatpush1.msra.mxu0 %v4416_v32  ;;  %1848 = vmatpush1.msra.mxu1 %v1265_v36  ;;  %v1644_v32 = vld [vmem:[#allocation3 + $0x18] sm:$0xff] }
 0x34c   :  { %1924 = vmatprep.subr.mxu0 %v1718_v62  ;;  %3608 = vmatmul.mubr.msk.f32.vlgmr.msra.gmra.mxu0 %vm1721_vm8, %v4814_v40  ;;  %v1598_v41 = vpop.permute.xlu1 %1597  ;;  %v1720_v36 = vld [vmem:[#allocation3 + $0x278] sm:$0xff] }
 0x34d   :  { %1849 = vmatprep.subr.mxu1 %v1660_v37  ;;  %1925 = vmatpush1.msra.mxu0 %v1502_v60  ;;  %v1602_v14 = vsel %vm98_vm5, %v1598_v41, %v4764_v19 }
 0x34e   :  { %1850 = vmatpush1.msra.mxu1 %v1249_v29  ;;  %1926 = vmatprep.subr.mxu0 %v1710_v35  ;;  %v1686_v29 = vld [vmem:[#allocation3 + $0x168] sm:$0xff] }
 0x34f   :  { %1851 = vmatprep.subr.mxu1 %v1652_v51  ;;  %1927 = vmatpush1.msra.mxu0 %v4738_v48  ;;  %v1704_v48 = vld [vmem:[#allocation3 + $0x1f8] sm:$0xff] }
 0x350   :  { %1852 = vmatpush1.msra.mxu1 %v4497_v12  ;;  %1928 = vmatprep.subr.mxu0 %v1702_v7  ;;  %v1580_v57 = vpop.permute.xlu1 %1579  ;;  %v4840_v12 = vld [vmem:[%s5879_s2 + $0x8] sm:$0xff] }
 0x351   :  { %1853 = vmatprep.subr.mxu1 %v1644_v32  ;;  %1929 = vmatpush1.msra.mxu0 %v1273_v59  ;;  %v1584_v8 = vsel %vm98_vm5, %v1580_v57, %v4773_v31  ;;  %v1670_v31 = vld [vmem:[#allocation3 + $0xe8] sm:$0xff] }
 0x352   :  { %1854 = vmatpush1.msra.mxu1 %v4418_v33  ;;  %1930 = vmatprep.subr.mxu0 %v1694_v0 }
 0x353   :  { %2013 = vmatprep.subr.mxu1 %v1720_v36  ;;  %3612 = vmatmul.mubr.msk.f32.vlgmr.msra.gmra.mxu1 %vm1721_vm8, %v4814_v40 }
 0x354   :  { %2014 = vmatpush1.msra.mxu1 %v1602_v14  ;;  %1804 = vmatprep.mubr.f32.mxu0 %v3682_v3  ;;  %v1562_v19 = vpop.permute.xlu1 %1561 }
 0x355   :  { %2015 = vmatprep.subr.mxu1 %v1712_v2  ;;  %1931 = vmatpush1.msra.mxu0 %v1257_v27  ;;  %v1566_v33 = vsel %vm98_vm5, %v1562_v19, %v4782_v1  ;;  %v1680_v1 = vld [vmem:[#allocation3 + $0x138] sm:$0xff] }
 0x356   :  { %2016 = vmatpush1.msra.mxu1 %v4744_v49  ;;  %3609 = vmatmul.mubr.msk.f32.gmra.mxu0 %vm1721_vm8, %v4840_v12 }
 0x357   :  { %1932 = vmatprep.subr.mxu0 %v1686_v29  ;;  %2017 = vmatprep.subr.mxu1 %v1704_v48 }
 0x358   :  { %1933 = vmatpush1.msra.mxu0 %v4582_v10  ;;  %2018 = vmatpush1.msra.mxu1 %v1584_v8  ;;  %v1558_v38 = vpop.permute.xlu1 %1557 }
 0x359   :  { %1934 = vmatprep.subr.mxu0 %v1678_v16  ;;  %2019 = vmatprep.subr.mxu1 %v1696_v63  ;;  %v1565_v49 = vsel %vm98_vm5, %v1558_v38, %v4792_v26 }
 0x35a   :  { %1810 = vmatprep.mubr.f32.mxu0 %v3682_v3  ;;  %1893 = vmatprep.mubr.f32.mxu1 %v3682_v3 }
 0x35b   :  { %1935 = vmatpush1.msra.mxu0 %v4512_v55  ;;  %2020 = vmatpush1.msra.mxu1 %v4805_v47 }
 0x35c   :  { %3610 = vmatmul.mubr.msk.f32.gmra.mxu0 %vm1721_vm8, %v1639_v45  ;;  %3613 = vmatmul.mubr.msk.f32.gmra.mxu1 %vm1721_vm8, %v4840_v12 }
 0x35d   :  { %1936 = vmatprep.subr.mxu0 %v1670_v31  ;;  %2021 = vmatprep.subr.mxu1 %v1688_v18 }
 0x35e   :  { %1937 = vmatpush1.msra.mxu0 %v1269_v23  ;;  %2022 = vmatpush1.msra.mxu1 %v1566_v33  ;;  %v1672_v23 = vld [vmem:[#allocation3 + $0xf8] sm:$0xff] }
 0x35f   :  { %1938 = vmatprep.subr.mxu0 %v1662_v56  ;;  %1816 = vmatprep.mubr.f32.mxu0 %v3682_v3 }
 0x360   :  { %1899 = vmatprep.mubr.f32.mxu1 %v3682_v3  ;;  %1939 = vmatpush1.msra.mxu0 %v1253_v30  ;;  %v1648_v30 = vld [vmem:[#allocation3 + $0x38] sm:$0xff] }
 0x361   :  { %3611 = vmatmul.mubr.msk.f32.gmra.mxu0 %vm1721_vm8, %v1640_v52  ;;  %3614 = vmatmul.mubr.msk.f32.gmra.mxu1 %vm1721_vm8, %v1639_v45 }
 0x362   :  { %1940 = vmatprep.subr.mxu0 %v1654_v5  ;;  %2023 = vmatprep.subr.mxu1 %v1680_v1 }
 0x363   :  { %1941 = vmatpush1.msra.mxu0 %v4580_v28  ;;  %2024 = vmatpush1.msra.mxu1 %v1565_v49 }
 0x364   :  { %1942 = vmatprep.subr.mxu0 %v1646_v58  ;;  %2025 = vmatprep.subr.mxu1 %v1672_v23 }
 0x365   :  { %1905 = vmatprep.mubr.f32.mxu1 %v3682_v3  ;;  %1943 = vmatpush1.msra.mxu0 %v4510_v53 }
 0x366   :  { %1976 = vmatprep.mubr.f32.mxu0 %v3682_v3  ;;  %2026 = vmatpush1.msra.mxu1 %v1273_v59 }
 0x367   :  { %3615 = vmatmul.mubr.msk.f32.gmra.mxu1 %vm1721_vm8, %v1640_v52  ;;  %3616 = vmatmul.mubr.msk.f32.vlgmr.msra.gmra.mxu0 %vm1721_vm8, %v4814_v40 }
 0x368   :  { %2027 = vmatprep.subr.mxu1 %v1664_v44  ;;  %1982 = vmatprep.mubr.f32.mxu0 %v3682_v3 }
 0x369   :  { %2028 = vmatpush1.msra.mxu1 %v1257_v27  ;;  %2065 = vmatprep.mubr.f32.mxu1 %v3682_v3 }
 0x36a   :  { %2029 = vmatprep.subr.mxu1 %v1656_v20 }
 0x36b   :  { %2030 = vmatpush1.msra.mxu1 %v4582_v10  ;;  %3617 = vmatmul.mubr.msk.f32.gmra.mxu0 %vm1721_vm8, %v4840_v12 }
 0x36c   :  { %2031 = vmatprep.subr.mxu1 %v1648_v30  ;;  %1988 = vmatprep.mubr.f32.mxu0 %v3682_v3 }
 0x36d   :  { %2032 = vmatpush1.msra.mxu1 %v4512_v55 }
 0x36e   :  { %3620 = vmatmul.mubr.msk.f32.vlgmr.msra.gmra.mxu1 %vm1721_vm8, %v4814_v40 }
 0x36f   :  { %3618 = vmatmul.mubr.msk.f32.gmra.mxu0 %vm1721_vm8, %v1639_v45  ;;  %2071 = vmatprep.mubr.f32.mxu1 %v3682_v3 }
 0x370   :  { %1994 = vmatprep.mubr.f32.mxu0 %v3682_v3 }
 0x372   :  { %3621 = vmatmul.mubr.msk.f32.gmra.mxu1 %vm1721_vm8, %v4840_v12 }
 0x373   :  { %3619 = vmatmul.mubr.msk.f32.gmra.mxu0 %vm1721_vm8, %v1640_v52  ;;  %2077 = vmatprep.mubr.f32.mxu1 %v3682_v3 }
 0x376   :  { %3622 = vmatmul.mubr.msk.f32.gmra.mxu1 %vm1721_vm8, %v1639_v45 }
 0x377   :  { %2083 = vmatprep.mubr.f32.mxu1 %v3682_v3 }
 0x37a   :  { %3623 = vmatmul.mubr.msk.f32.gmra.mxu1 %vm1721_vm8, %v1640_v52 }
 0x40c   :  { %v4904_v53 = vpop.f32.mrf.mxu0 }
 0x40d   :  { %v2126_v2 = vmul.f32 %v4904_v53, %v4904_v53 }
 0x40e   :  { %v4906_v55 = vpop.f32.mrf.mxu0 }
 0x40f   :  { %v2090_v29 = vadd.f32 %v4906_v55, %v4904_v53  ;;  %v2127_v48 = vmul.f32 %v4906_v55, %v4906_v55 }
 0x411   :  { %v2158_v30 = vadd.f32 %v2127_v48, %v2126_v2 }
 0x413   :  { %v4908_v28 = vpop.f32.mrf.mxu1 }
 0x415   :  { %v4914_v21 = vpop.f32.mrf.mxu1 }
 0x416   :  { %v4910_v10 = vpop.f32.mrf.mxu0  ;;  %v2129_v48 = vmul.f32 %v4914_v21, %v4914_v21 }
 0x417   :  { %v2134_v39 = vmul.f32 %v4910_v10, %v4910_v10 }
 0x418   :  { %v4912_v9 = vpop.f32.mrf.mxu0 }
 0x419   :  { %v2099_v54 = vadd.f32 %v4912_v9, %v4910_v10  ;;  %v2135_v46 = vmul.f32 %v4912_v9, %v4912_v9 }
 0x41b   :  { %v2167_v51 = vadd.f32 %v2135_v46, %v2134_v39 }
 0x41c   :  { %v4916_v59 = vpop.f32.mrf.mxu0  ;;  %v4918_v27 = vpop.f32.mrf.mxu1 }
 0x41d   :  { %v2142_v26 = vmul.f32 %v4916_v59, %v4916_v59  ;;  %v2100_v6 = vadd.f32 %v2099_v54, %v4918_v27  ;;  %v2136_v41 = vmul.f32 %v4918_v27, %v4918_v27 }
 0x41e   :  { %v4920_v15 = vpop.f32.mrf.mxu0  ;;  %v4922_v25 = vpop.f32.mrf.mxu1 }
 0x41f   :  { %v2143_v13 = vmul.f32 %v4920_v15, %v4920_v15  ;;  %v2108_v24 = vadd.f32 %v4920_v15, %v4916_v59  ;;  %v2101_v40 = vadd.f32 %v2100_v6, %v4922_v25  ;;  %v2168_v63 = vadd.f32 %v2167_v51, %v2136_v41 }
 0x420   :  { %v2137_v38 = vmul.f32 %v4922_v25, %v4922_v25  ;;  %v2091_v6 = vadd.f32 %v2090_v29, %v4908_v28 }
 0x421   :  { %v4924_v50 = vpop.f32.mrf.mxu0  ;;  %v4926_v4 = vpop.f32.mrf.mxu1  ;;  %v2176_v47 = vadd.f32 %v2143_v13, %v2142_v26 }
 0x422   :  { %v2144_v42 = vmul.f32 %v4926_v4, %v4926_v4  ;;  %v2150_v43 = vmul.f32 %v4924_v50, %v4924_v50  ;;  %v2109_v60 = vadd.f32 %v2108_v24, %v4926_v4  ;;  %v2128_v24 = vmul.f32 %v4908_v28, %v4908_v28 }
 0x423   :  { %v4930_v17 = vpop.f32.mrf.mxu0  ;;  %v4936_v11 = vpop.f32.mrf.mxu1  ;;  %v2169_v39 = vadd.f32 %v2168_v63, %v2137_v38  ;;  %v2092_v29 = vadd.f32 %v2091_v6, %v4914_v21 }
 0x424   :  { %v2151_v62 = vmul.f32 %v4930_v17, %v4930_v17  ;;  %v2117_v37 = vadd.f32 %v4930_v17, %v4924_v50  ;;  %v2177_v7 = vadd.f32 %v2176_v47, %v2144_v42  ;;  %v2145_v14 = vmul.f32 %v4936_v11, %v4936_v11 }
 0x425   :  { %v2110_v19 = vadd.f32 %v2109_v60, %v4936_v11  ;;  %v2159_v2 = vadd.f32 %v2158_v30, %v2128_v24 }
 0x426   :  { %v2185_v0 = vadd.f32 %v2151_v62, %v2150_v43  ;;  %v2178_v45 = vadd.f32 %v2177_v7, %v2145_v14 }
 0x427   :  { %v4941_v34 = vpop.f32.mrf.mxu0  ;;  %v4949_v61 = vpop.f32.mrf.mxu1  ;;  %v2160_v30 = vadd.f32 %v2159_v2, %v2129_v48  ;;  %v29_v48 = vld [vmem:[%s5878_s5 + $0x18] sm:$0xff] }
 0x428   :  { %v2152_v36 = vmul.f32 %v4949_v61, %v4949_v61  ;;  %v2118_v33 = vadd.f32 %v2117_v37, %v4949_v61 }
 0x429   :  { %v4955_v22 = vpop.f32.mrf.mxu0  ;;  %v4967_v32 = vpop.f32.mrf.mxu1 }
 0x42a   :  { %v2186_v18 = vadd.f32 %v2185_v0, %v2152_v36  ;;  %v2153_v56 = vmul.f32 %v4967_v32, %v4967_v32  ;;  %v2119_v54 = vadd.f32 %v2118_v33, %v4967_v32 }
 0x42b   :  { %v4961_v35 = vpop.f32.mrf.mxu0 }
 0x42c   :  { %v2102_v57 = vadd.f32 %v2101_v40, %v4961_v35  ;;  %v2138_v58 = vmul.f32 %v4961_v35, %v4961_v35  ;;  %v2187_v42 = vadd.f32 %v2186_v18, %v2153_v56  ;;  %v2093_v18 = vadd.f32 %v2092_v29, %v4941_v34 }
 0x42d   :  { %v4972_v8 = vpop.f32.mrf.mxu0 }
 0x42e   :  { %v4976_v12 = vpop.f32.mrf.mxu1  ;;  %v2103_v52 = vadd.f32 %v2102_v57, %v4972_v8  ;;  %v2170_v37 = vadd.f32 %v2169_v39, %v2138_v58  ;;  %v2139_v51 = vmul.f32 %v4972_v8, %v4972_v8 }
 0x42f   :  { %v4984_v16 = vpop.f32.mrf.mxu0 }
 0x430   :  { %v2146_v49 = vmul.f32 %v4984_v16, %v4984_v16  ;;  %v4990_v31 = vpop.f32.mrf.mxu1  ;;  %v2111_v5 = vadd.f32 %v2110_v19, %v4984_v16 }
 0x431   :  { %v4996_v1 = vpop.f32.mrf.mxu0 }
 0x432   :  { %v2179_v23 = vadd.f32 %v2178_v45, %v2146_v49  ;;  %v2147_v44 = vmul.f32 %v4996_v1, %v4996_v1  ;;  %v5002_v20 = vpop.f32.mrf.mxu1  ;;  %v2112_v43 = vadd.f32 %v2111_v5, %v4996_v1  ;;  %v2130_v5 = vmul.f32 %v4941_v34, %v4941_v34 }
 0x433   :  { %v5005_v26 = vpop.f32.mrf.mxu0  ;;  %v2104_v13 = vadd.f32 %v2103_v52, %v5002_v20  ;;  %v2140_v19 = vmul.f32 %v5002_v20, %v5002_v20  ;;  %v2171_v52 = vadd.f32 %v2170_v37, %v2139_v51  ;;  %v2132_v37 = vmul.f32 %v4976_v12, %v4976_v12 }
 0x434   :  { %v2154_v46 = vmul.f32 %v5005_v26, %v5005_v26  ;;  %v5013_v47 = vpop.f32.mrf.mxu1  ;;  %v2120_v62 = vadd.f32 %v2119_v54, %v5005_v26  ;;  %v2180_v7 = vadd.f32 %v2179_v23, %v2147_v44 }
 0x435   :  { %v5017_v40 = vpop.f32.mrf.mxu0  ;;  %v2105_v60 = vadd.f32 %v2104_v13, %v5013_v47  ;;  %v2141_v13 = vmul.f32 %v5013_v47, %v5013_v47  ;;  %v2172_v6 = vadd.f32 %v2171_v52, %v2140_v19  ;;  %v3686_v19 = vmov 3  }
 0x436   :  { %v5022_v41 = vpop.f32.mrf.mxu1  ;;  %v2188_v14 = vadd.f32 %v2187_v42, %v2154_v46  ;;  %v2155_v0 = vmul.f32 %v5017_v40, %v5017_v40  ;;  %v2121_v63 = vadd.f32 %v2120_v62, %v5017_v40  ;;  %v2094_v62 = vadd.f32 %v2093_v18, %v4955_v22  ;;  %3646 = vset.pattern.permute.xlu1 %v3686_v19 }
 0x437   :  { %v2148_v36 = vmul.f32 %v5022_v41, %v5022_v41  ;;  %2106 = vadd.xlane.f32.xlu0 %v2105_v60  ;;  %v2113_v57 = vadd.f32 %v2112_v43, %v5022_v41  ;;  %v2161_v43 = vadd.f32 %v2160_v30, %v2130_v5  ;;  %v2131_v60 = vmul.f32 %v4955_v22, %v4955_v22 }
 0x438   :  { %v5034_v33 = vpop.f32.mrf.mxu1  ;;  %v2189_v44 = vadd.f32 %v2188_v14, %v2155_v0  ;;  %v2173_v51 = vadd.f32 %v2172_v6, %v2141_v13  ;;  %v2095_v14 = vadd.f32 %v2094_v62, %v4976_v12 }
 0x439   :  { %v2114_v38 = vadd.f32 %v2113_v57, %v5034_v33  ;;  %v2149_v45 = vmul.f32 %v5034_v33, %v5034_v33  ;;  %v2181_v49 = vadd.f32 %v2180_v7, %v2148_v36  ;;  %v2162_v0 = vadd.f32 %v2161_v43, %v2131_v60 }
 0x43a   :  { %v5041_v56 = vpop.f32.mrf.mxu1  ;;  %v2096_v36 = vadd.f32 %v2095_v14, %v4990_v31  ;;  %v2133_v57 = vmul.f32 %v4990_v31, %v4990_v31 }
 0x43b   :  { %v2156_v58 = vmul.f32 %v5041_v56, %v5041_v56  ;;  %2115 = vadd.xlane.f32.xlu1 %v2114_v38  ;;  %v2122_v23 = vadd.f32 %v2121_v63, %v5041_v56  ;;  %v2182_v24 = vadd.f32 %v2181_v49, %v2149_v45  ;;  %v2163_v2 = vadd.f32 %v2162_v0, %v2132_v37 }
 0x43c   :  { %v5048_v54 = vpop.f32.mrf.mxu1  ;;  %v3687_v63 = vmov 2  }
 0x43d   :  { %v2123_v39 = vadd.f32 %v2122_v23, %v5048_v54  ;;  %v2157_v46 = vmul.f32 %v5048_v54, %v5048_v54  ;;  %v2190_v42 = vadd.f32 %v2189_v44, %v2156_v58  ;;  %v2164_v29 = vadd.f32 %v2163_v2, %v2133_v57  ;;  %3645 = vset.pattern.permute.xlu0 %v3687_v63 }
 0x43f   :  { %2183 = vadd.xlane.f32.xlu1 %v2182_v24  ;;  %2124 = vadd.xlane.f32.xlu0 %v2123_v39  ;;  %v2191_v7 = vadd.f32 %v2190_v42, %v2157_v46 }
 0x443   :  { %2174 = vadd.xlane.f32.xlu1 %v2173_v51  ;;  %2192 = vadd.xlane.f32.xlu0 %v2191_v7 }
 0x447   :  { %2097 = vadd.xlane.f32.xlu0 %v2096_v36 }
 0x44b   :  { %2165 = vadd.xlane.f32.xlu0 %v2164_v29  ;;  %v28_v29 = vld [vmem:[%s5878_s5 + $0x10] sm:$0xff] }
 0x454   :  { %2322 = vperm.xlu1 %3646, %v29_v48  }
 0x458   :  { %3647 = vset.pattern.permute.xlu1 %v3687_v63 }
 0x4c0   :  { %v2107_v38 = vpop.xlane.xlu0 %2106 }
 0x4c1   :  { %v5069_v5 = vmul.f32 0.0011185682, %v2107_v38 }
 0x4c3   :  { %v2204_v24 = vmul.f32 %v5069_v5, %v5069_v5 }
 0x4c4   :  { %v2116_v45 = vpop.xlane.xlu1 %2115 }
 0x4c5   :  { %v5067_v49 = vmul.f32 0.0011185682, %v2116_v45 }
 0x4c7   :  { %v2205_v58 = vmul.f32 %v5067_v49, %v5067_v49 }
 0x4c8   :  { %v2184_v18 = vpop.xlane.xlu1 %2183  ;;  %v2125_v52 = vpop.xlane.xlu0 %2124 }
 0x4c9   :  { %v2201_v23 = vmul.f32 0.0011185682, %v2184_v18  ;;  %v5075_v43 = vmul.f32 0.0011185682, %v2125_v52 }
 0x4cb   :  { %v2209_v44 = vsub.f32 %v2201_v23, %v2205_v58  ;;  %v2206_v7 = vmul.f32 %v5075_v43, %v5075_v43  ;;  %v3676_v58 = vld [vmem:[%s5878_s5 + $0x8] sm:$0xff] }
 0x4cc   :  { %v2175_v30 = vpop.xlane.xlu1 %2174  ;;  %v2193_v13 = vpop.xlane.xlu0 %2192 }
 0x4cd   :  { %v2213_v6 = vadd.f32 1e-05, %v2209_v44  ;;  %v2200_v39 = vmul.f32 0.0011185682, %v2175_v30  ;;  %v2202_v37 = vmul.f32 0.0011185682, %v2193_v13 }
 0x4ce   :  { %v3677_v30 = vld [vmem:[%s5878_s5] sm:$0xff] }
 0x4cf   :  { %3660 = vrsqrt.f32 %v2213_v6  ;;  %v2208_v46 = vsub.f32 %v2200_v39, %v2204_v24  ;;  %v2210_v36 = vsub.f32 %v2202_v37, %v2206_v7  ;;  %v2241_v37 = vsub.f32 %v4926_v4, %v5067_v49 }
 0x4d0   :  { %v2098_v42 = vpop.xlane.xlu0 %2097  ;;  %v5092_v39 = vpop.permute.xlu1 %2322  ;;  %v2231_v7 = vsub.f32 %v4910_v10, %v5069_v5  ;;  %v2243_v4 = vsub.f32 %v4984_v16, %v5067_v49 }
 0x4d1   :  { %v2212_v62 = vadd.f32 1e-05, %v2208_v46  ;;  %v5077_v60 = vmul.f32 0.0011185682, %v2098_v42  ;;  %v2214_v38 = vadd.f32 1e-05, %v2210_v36  ;;  %v2238_v46 = vsub.f32 %v5013_v47, %v5069_v5 }
 0x4d2   :  { %v2237_v42 = vsub.f32 %v5002_v20, %v5069_v5  ;;  %v2244_v36 = vsub.f32 %v4996_v1, %v5067_v49 }
 0x4d3   :  { %3662 = vrsqrt.f32 %v2212_v62  ;;  %v2203_v14 = vmul.f32 %v5077_v60, %v5077_v60  ;;  %v2235_v62 = vsub.f32 %v4961_v35, %v5069_v5 }
 0x4d4   :  { %v2166_v51 = vpop.xlane.xlu0 %2165 }
 0x4d5   :  { %v2199_v0 = vmul.f32 0.0011185682, %v2166_v51  ;;  %v2246_v51 = vsub.f32 %v5034_v33, %v5067_v49  ;;  %v2249_v33 = vsub.f32 %v4949_v61, %v5075_v43  ;;  %v5891_v61 = vsub.f32 %v5017_v40, %v5075_v43 }
 0x4d7   :  { %v2207_v57 = vsub.f32 %v2199_v0, %v2203_v14  ;;  %v2236_v14 = vsub.f32 %v4972_v8, %v5069_v5  ;;  %v2245_v0 = vsub.f32 %v5022_v41, %v5067_v49  ;;  %v2239_v41 = vsub.f32 %v4916_v59, %v5067_v49 }
 0x4d9   :  { %v2211_v2 = vadd.f32 1e-05, %v2207_v57  ;;  %v2242_v57 = vsub.f32 %v4936_v11, %v5067_v49 }
 0x4db   :  { %3664 = vrsqrt.f32 %v2211_v2 }
 0x4dc   :  { %v3661_v45 = vpop.eup %3660  ;;  %3666 = vrsqrt.f32 %v2214_v38 }
 0x4dd   :  { %v2221_v18 = vmul.f32 %v3661_v45, %v28_v29 }
 0x4df   :  { %2267 = vperm.xlu0 %3645, %v2221_v18  }
 0x4e0   :  { %v3663_v52 = vpop.eup %3662 }
 0x4e1   :  { %v2220_v23 = vmul.f32 %v3676_v58, %v3663_v52  ;;  %v2226_v52 = vsub.f32 %v4914_v21, %v5077_v60 }
 0x4e3   :  { %2262 = vperm.xlu1 %3647, %v2220_v23   ;;  %v2225_v23 = vsub.f32 %v4908_v28, %v5077_v60 }
 0x4e7   :  { %3648 = vset.pattern.permute.xlu1 %v3686_v19 }
 0x4e8   :  { %v3665_v44 = vpop.eup %3664  ;;  %2317 = vperm.xlu1 %3648, %v28_v29   ;;  %v2240_v29 = vsub.f32 %v4920_v15, %v5067_v49  ;;  %v2230_v15 = vsub.f32 %v4990_v31, %v5077_v60 }
 0x4e9   :  { %v2219_v13 = vmul.f32 %v3677_v30, %v3665_v44  ;;  %v3667_v6 = vpop.eup %3666  ;;  %v2224_v44 = vsub.f32 %v4906_v55, %v5077_v60 }
 0x4ea   :  { %v2222_v24 = vmul.f32 %v3667_v6, %v29_v48  ;;  %v2233_v48 = vsub.f32 %v4918_v27, %v5069_v5 }
 0x4ec   :  { %3649 = vset.pattern.permute.xlu1 %v3687_v63  ;;  %v2234_v63 = vsub.f32 %v4922_v25, %v5069_v5 }
 0x4ed   :  { %2257 = vperm.xlu1 %3649, %v2219_v13  }
 0x4f1   :  { %2272 = vperm.xlu1 %3649, %v2222_v24  }
 0x4f5   :  { %3650 = vset.pattern.permute.xlu1 %v3686_v19  ;;  %v2232_v19 = vsub.f32 %v4912_v9, %v5069_v5  ;;  %v5887_v5 = vsub.f32 %v5048_v54, %v5075_v43  ;;  %v5892_v54 = vsub.f32 %v4924_v50, %v5075_v43 }
 0x4f6   :  { %2312 = vperm.xlu1 %3650, %v3676_v58   ;;  %v2229_v58 = vsub.f32 %v4976_v12, %v5077_v60 }
 0x4fa   :  { %2308 = vperm.xlu1 %3650, %v3677_v30  }
 0x55a   :  { %v2268_v1 = vpop.permute.xlu0 %2267 }
 0x55b   :  { %v2293_v31 = vmul.f32 %v2268_v1, %v2241_v37  ;;  %v2298_v30 = vmul.f32 %v2268_v1, %v2246_v51  ;;  %v2297_v13 = vmul.f32 %v2268_v1, %v2245_v0  ;;  %v2296_v21 = vmul.f32 %v2268_v1, %v2244_v36 }
 0x55c   :  { %v2294_v24 = vmul.f32 %v2268_v1, %v2242_v57  ;;  %v2295_v59 = vmul.f32 %v2268_v1, %v2243_v4  ;;  %v2292_v18 = vmul.f32 %v2268_v1, %v2240_v29  ;;  %v2291_v45 = vmul.f32 %v2268_v1, %v2239_v41 }
 0x55e   :  { %v2263_v2 = vpop.permute.xlu1 %2262 }
 0x55f   :  { %v2284_v25 = vmul.f32 %v2263_v2, %v2232_v19  ;;  %v2288_v35 = vmul.f32 %v2263_v2, %v2236_v14 }
 0x563   :  { %v2318_v6 = vpop.permute.xlu1 %2317 }
 0x564   :  { %v5152_v49 = vadd.f32 %v2318_v6, %v2293_v31  ;;  %v5154_v16 = vadd.f32 %v2318_v6, %v2298_v30  ;;  %v5156_v12 = vadd.f32 %v2318_v6, %v2297_v13  ;;  %v2346_v11 = vadd.f32 %v2318_v6, %v2296_v21 }
 0x565   :  { %v5158_v28 = vadd.f32 %v2318_v6, %v2294_v24  ;;  %v2345_v38 = vadd.f32 %v2318_v6, %v2295_v59  ;;  %v2342_v55 = vadd.f32 %v2318_v6, %v2292_v18  ;;  %v2341_v37 = vadd.f32 %v2318_v6, %v2291_v45 }
 0x566   :  { %v2375_v51 = vmax.f32 %v5152_v49, 0.0  ;;  %v2380_v0 = vmax.f32 %v5154_v16, 0.0  ;;  %v2379_v36 = vmax.f32 %v5156_v12, 0.0  ;;  %v5163_v57 = vmax.f32 %v2346_v11, 0.0  ;;  %v2777_v16 = vld [vmem:[%s5880_s3 + $0x8] sm:$0xff] }
 0x567   :  { %v2376_v4 = vmax.f32 %v5158_v28, 0.0  ;;  %v5166_v29 = vmax.f32 %v2345_v38, 0.0  ;;  %v5168_v41 = vmax.f32 %v2342_v55, 0.0  ;;  %v5170_v1 = vmax.f32 %v2341_v37, 0.0  ;;  %3624 = vmatprep.mubr.msk.f32.mxu0 %vm2864_vm11, %v2777_v16  ;;  %3628 = vmatprep.mubr.msk.f32.mxu1 %vm2864_vm11, %v2777_v16 }
 0x568   :  { %v2258_v31 = vpop.permute.xlu1 %2257  ;;  %v2223_v45 = vsub.f32 %v4904_v53, %v5077_v60  ;;  %2729 = vst.msk [vmem:[#allocation4 + $0xd8] sm:$0xff] %vm2539_vm9, %v2380_v0  ;;  %2721 = vst.msk [vmem:[#allocation4 + $0x58] sm:$0xff] %vm2539_vm9, %v5163_v57  ;;  %v2227_v38 = vsub.f32 %v4941_v34, %v5077_v60  ;;  %v2228_v11 = vsub.f32 %v4955_v22, %v5077_v60 }
 0x569   :  { %v2290_v18 = vmul.f32 %v2263_v2, %v2238_v46  ;;  %v2289_v53 = vmul.f32 %v2263_v2, %v2237_v42  ;;  %v2287_v59 = vmul.f32 %v2263_v2, %v2235_v62  ;;  %v2286_v30 = vmul.f32 %v2263_v2, %v2234_v63  ;;  %2762 = vst.msk [vmem:[#allocation4 + $0xd8] sm:$0xff] %vm2579_vm10, %v3682_v3 }
 0x56a   :  { %2758 = vst.msk [vmem:[#allocation4 + $0x58] sm:$0xff] %vm2579_vm10, %v3682_v3  ;;  %v2285_v34 = vmul.f32 %v2263_v2, %v2233_v48  ;;  %v2283_v22 = vmul.f32 %v2263_v2, %v2231_v7  ;;  %v2282_v27 = vmul.f32 %v2258_v31, %v2230_v15  ;;  %v2278_v20 = vmul.f32 %v2258_v31, %v2226_v52 }
 0x56b   :  { %2552 = vst.msk [vmem:[#allocation4 + $0xc8] sm:$0xff] %vm2539_vm9, %v2376_v4  ;;  %2544 = vst.msk [vmem:[#allocation4 + $0x48] sm:$0xff] %vm2539_vm9, %v5168_v41  ;;  %v2281_v47 = vmul.f32 %v2258_v31, %v2229_v58  ;;  %v2277_v60 = vmul.f32 %v2258_v31, %v2225_v23  ;;  %v2276_v46 = vmul.f32 %v2258_v31, %v2224_v44 }
 0x56c   :  { %2586 = vst.msk [vmem:[#allocation4 + $0xc8] sm:$0xff] %vm2579_vm10, %v3682_v3  ;;  %2582 = vst.msk [vmem:[#allocation4 + $0x48] sm:$0xff] %vm2579_vm10, %v3682_v3  ;;  %v2273_v9 = vpop.permute.xlu1 %2272  ;;  %v2275_v42 = vmul.f32 %v2258_v31, %v2223_v45  ;;  %v2279_v62 = vmul.f32 %v2258_v31, %v2227_v38  ;;  %v5220_v10 = vmul.f32 %v2258_v31, %v2228_v11 }
 0x56d   :  { %v2301_v8 = vmul.f32 %v2273_v9, %v2249_v33  ;;  %v2306_v63 = vmul.f32 %v2273_v9, %v5887_v5  ;;  %v5888_v48 = vsub.f32 %v5041_v56, %v5075_v43  ;;  %v5889_v7 = vsub.f32 %v4967_v32, %v5075_v43 }
 0x56e   :  { %v5890_v2 = vsub.f32 %v4930_v17, %v5075_v43  ;;  %v2304_v33 = vmul.f32 %v2273_v9, %v5891_v61  ;;  %v2299_v52 = vmul.f32 %v2273_v9, %v5892_v54  ;;  %v5893_v56 = vsub.f32 %v5005_v26, %v5075_v43 }
 0x56f   :  { %v2305_v19 = vmul.f32 %v2273_v9, %v5888_v48  ;;  %v2302_v14 = vmul.f32 %v2273_v9, %v5889_v7  ;;  %v5247_v23 = vadd.f32 %v5092_v39, %v2301_v8  ;;  %v5250_v32 = vadd.f32 %v5092_v39, %v2306_v63 }
 0x570   :  { %v2300_v15 = vmul.f32 %v2273_v9, %v5890_v2  ;;  %v2303_v58 = vmul.f32 %v2273_v9, %v5893_v56  ;;  %v2354_v50 = vadd.f32 %v5092_v39, %v2304_v33  ;;  %v2349_v13 = vadd.f32 %v5092_v39, %v2299_v52 }
 0x571   :  { %v5253_v17 = vadd.f32 %v5092_v39, %v2305_v19  ;;  %v5256_v40 = vadd.f32 %v5092_v39, %v2302_v14  ;;  %v2313_v43 = vpop.permute.xlu1 %2312  ;;  %v2383_v21 = vmax.f32 %v5247_v23, 0.0  ;;  %v2388_v6 = vmax.f32 %v5250_v32, 0.0 }
 0x572   :  { %v2350_v44 = vadd.f32 %v5092_v39, %v2300_v15  ;;  %v2353_v26 = vadd.f32 %v5092_v39, %v2303_v58  ;;  %v5266_v37 = vadd.f32 %v2313_v43, %v2290_v18  ;;  %v5268_v31 = vadd.f32 %v2313_v43, %v2289_v53 }
 0x573   :  { %v2387_v24 = vmax.f32 %v5253_v17, 0.0  ;;  %v2384_v55 = vmax.f32 %v5256_v40, 0.0  ;;  %v2337_v45 = vadd.f32 %v2313_v43, %v2287_v59  ;;  %v5270_v38 = vadd.f32 %v2313_v43, %v2286_v30  ;;  %2731 = vst.msk [vmem:[#allocation4 + $0xf8] sm:$0xff] %vm2539_vm9, %v2388_v6 }
 0x574   :  { %v5272_v11 = vadd.f32 %v2313_v43, %v2285_v34  ;;  %v2334_v9 = vadd.f32 %v2313_v43, %v2284_v25  ;;  %v2333_v39 = vadd.f32 %v2313_v43, %v2283_v22  ;;  %v2338_v8 = vadd.f32 %v2313_v43, %v2288_v35  ;;  %2763 = vst.msk [vmem:[#allocation4 + $0xf8] sm:$0xff] %vm2579_vm10, %v3682_v3 }
 0x575   :  { %2554 = vst.msk [vmem:[#allocation4 + $0xe8] sm:$0xff] %vm2539_vm9, %v2384_v55  ;;  %v2372_v18 = vmax.f32 %v5266_v37, 0.0  ;;  %v2371_v53 = vmax.f32 %v5268_v31, 0.0  ;;  %v5282_v59 = vmax.f32 %v2337_v45, 0.0  ;;  %v2368_v30 = vmax.f32 %v5270_v38, 0.0  ;;  %v2309_v34 = vpop.permute.xlu1 %2308 }
 0x576   :  { %2587 = vst.msk [vmem:[#allocation4 + $0xe8] sm:$0xff] %vm2579_vm10, %v3682_v3  ;;  %v2367_v25 = vmax.f32 %v5272_v11, 0.0  ;;  %v5290_v22 = vmax.f32 %v2334_v9, 0.0  ;;  %v5292_v35 = vmax.f32 %v2333_v39, 0.0  ;;  %v5294_v5 = vmax.f32 %v2338_v8, 0.0 }
 0x577   :  { %v2332_v63 = vadd.f32 %v2309_v34, %v2282_v27  ;;  %v2328_v48 = vadd.f32 %v2309_v34, %v2278_v20  ;;  %v5296_v19 = vadd.f32 %v2309_v34, %v2281_v47  ;;  %v5298_v7 = vadd.f32 %v2309_v34, %v2277_v60  ;;  %2727 = vst.msk [vmem:[#allocation4 + $0xb8] sm:$0xff] %vm2539_vm9, %v2372_v18 }
 0x578   :  { %2550 = vst.msk [vmem:[#allocation4 + $0xa8] sm:$0xff] %vm2539_vm9, %v2368_v30  ;;  %v2326_v14 = vadd.f32 %v2309_v34, %v2276_v46  ;;  %v2325_v2 = vadd.f32 %v2309_v34, %v2275_v42  ;;  %2542 = vst.msk [vmem:[#allocation4 + $0x28] sm:$0xff] %vm2539_vm9, %v5290_v22  ;;  %v2329_v27 = vadd.f32 %v2309_v34, %v2279_v62  ;;  %v5310_v20 = vmax.f32 %v2350_v44, 0.0 }
 0x579   :  { %2761 = vst.msk [vmem:[#allocation4 + $0xb8] sm:$0xff] %vm2579_vm10, %v3682_v3  ;;  %2585 = vst.msk [vmem:[#allocation4 + $0xa8] sm:$0xff] %vm2579_vm10, %v3682_v3  ;;  %v2364_v47 = vmax.f32 %v2332_v63, 0.0  ;;  %v2360_v60 = vmax.f32 %v2328_v48, 0.0  ;;  %v2363_v15 = vmax.f32 %v5296_v19, 0.0  ;;  %v2359_v61 = vmax.f32 %v5298_v7, 0.0 }
 0x57a   :  { %2719 = vst.msk [vmem:[#allocation4 + $0x38] sm:$0xff] %vm2539_vm9, %v5294_v5  ;;  %v2358_v46 = vmax.f32 %v2326_v14, 0.0  ;;  %v5318_v42 = vmax.f32 %v2325_v2, 0.0  ;;  %v5320_v33 = vmax.f32 %v2329_v27, 0.0  ;;  %2546 = vst.msk [vmem:[#allocation4 + $0x68] sm:$0xff] %vm2539_vm9, %v5310_v20  ;;  %v2386_v62 = vmax.f32 %v2354_v50, 0.0 }
 0x57b   :  { %2581 = vst.msk [vmem:[#allocation4 + $0x28] sm:$0xff] %vm2579_vm10, %v3682_v3  ;;  %2757 = vst.msk [vmem:[#allocation4 + $0x38] sm:$0xff] %vm2579_vm10, %v3682_v3  ;;  %2662 = vrot.lane.b32.xlu0 %v2364_v47, %s3683_s30  ;;  %2483 = vrot.lane.b32.xlu1 %v2360_v60, %s3683_s30  ;;  %v5330_v54 = vmax.f32 %v2349_v13, 0.0  ;;  %v5332_v52 = vmax.f32 %v2353_v26, 0.0  ;;  %v2330_v56 = vadd.f32 %v2309_v34, %v5220_v10 }
 0x57c   :  { %2725 = vst.msk [vmem:[#allocation4 + $0x98] sm:$0xff] %vm2539_vm9, %v2364_v47  ;;  %2548 = vst.msk [vmem:[#allocation4 + $0x88] sm:$0xff] %vm2539_vm9, %v2360_v60 }
 0x57d   :  { %2583 = vst.msk [vmem:[#allocation4 + $0x68] sm:$0xff] %vm2579_vm10, %v3682_v3  ;;  %2760 = vst.msk [vmem:[#allocation4 + $0x98] sm:$0xff] %vm2579_vm10, %v3682_v3  ;;  %v2362_v58 = vmax.f32 %v2330_v56, 0.0 }
 0x57e   :  { %2584 = vst.msk [vmem:[#allocation4 + $0x88] sm:$0xff] %vm2579_vm10, %v3682_v3 }
 0x57f   :  { %2540 = vst.msk [vmem:[#allocation4 + $0x8] sm:$0xff] %vm2539_vm9, %v2358_v46  ;;  %2723 = vst.msk [vmem:[#allocation4 + $0x78] sm:$0xff] %vm2539_vm9, %v2386_v62  ;;  %2660 = vrot.lane.b32.xlu0 %v2363_v15, %s3683_s30  ;;  %2481 = vrot.lane.b32.xlu1 %v2359_v61, %s3683_s30 }
 0x580   :  { %2580 = vst.msk [vmem:[#allocation4 + $0x8] sm:$0xff] %vm2579_vm10, %v3682_v3  ;;  %2759 = vst.msk [vmem:[#allocation4 + $0x78] sm:$0xff] %vm2579_vm10, %v3682_v3 }
 0x581   :  { %2717 = vst.msk [vmem:[#allocation4 + $0x18] sm:$0xff] %vm2539_vm9, %v2362_v58 }
 0x582   :  { %2756 = vst.msk [vmem:[#allocation4 + $0x18] sm:$0xff] %vm2579_vm10, %v3682_v3  ;;  %v2789_v31 = vld [vmem:[#allocation4 + $0x28] sm:$0xff]  ;;  %v2791_v11 = vld [vmem:[#allocation4 + $0x38] sm:$0xff] }
 0x583   :  { %2666 = vrot.lane.b32.xlu0 %v2372_v18, %s3683_s30  ;;  %2447 = vrot.lane.b32.xlu1 %v2358_v46, %s3683_s30 }
 0x584   :  { %v2803_v23 = vld [vmem:[#allocation4 + $0x98] sm:$0xff]  ;;  %v2797_v17 = vld [vmem:[#allocation4 + $0x68] sm:$0xff] }
 0x587   :  { %2664 = vrot.lane.b32.xlu0 %v2371_v53, %s3683_s30  ;;  %2445 = vrot.lane.b32.xlu1 %v5318_v42, %s3683_s30 }
 0x58b   :  { %2628 = vrot.lane.b32.xlu0 %v5282_v59, %s3683_s30  ;;  %2487 = vrot.lane.b32.xlu1 %v2368_v30, %s3683_s30 }
 0x58f   :  { %2485 = vrot.lane.b32.xlu1 %v2367_v25, %s3683_s30  ;;  %2489 = vrot.lane.b32.xlu0 %v2375_v51, %s3683_s30 }
 0x593   :  { %2451 = vrot.lane.b32.xlu1 %v5290_v22, %s3683_s30  ;;  %2670 = vrot.lane.b32.xlu0 %v2380_v0, %s3683_s30 }
 0x597   :  { %2449 = vrot.lane.b32.xlu1 %v5292_v35, %s3683_s30  ;;  %2668 = vrot.lane.b32.xlu0 %v2379_v36, %s3683_s30 }
 0x59b   :  { %2630 = vrot.lane.b32.xlu1 %v5294_v5, %s3683_s30  ;;  %2634 = vrot.lane.b32.xlu0 %v5163_v57, %s3683_s30 }
 0x59f   :  { %2491 = vrot.lane.b32.xlu1 %v2376_v4, %s3683_s30  ;;  %2632 = vrot.lane.b32.xlu0 %v5166_v29, %s3683_s30 }
 0x5a3   :  { %2493 = vrot.lane.b32.xlu0 %v2383_v21, %s3683_s30  ;;  %2455 = vrot.lane.b32.xlu1 %v5168_v41, %s3683_s30 }
 0x5a7   :  { %2674 = vrot.lane.b32.xlu0 %v2388_v6, %s3683_s30  ;;  %2453 = vrot.lane.b32.xlu1 %v5170_v1, %s3683_s30 }
 0x5ab   :  { %2672 = vrot.lane.b32.xlu0 %v2387_v24, %s3683_s30  ;;  %2495 = vrot.lane.b32.xlu1 %v2384_v55, %s3683_s30 }
 0x5af   :  { %2624 = vrot.lane.b32.xlu0 %v5320_v33, %s3683_s30  ;;  %2459 = vrot.lane.b32.xlu1 %v5310_v20, %s3683_s30 }
 0x5b3   :  { %2638 = vrot.lane.b32.xlu0 %v2386_v62, %s3683_s30  ;;  %2457 = vrot.lane.b32.xlu1 %v5330_v54, %s3683_s30 }
 0x5b7   :  { %2636 = vrot.lane.b32.xlu0 %v5332_v52, %s3683_s30  ;;  %2626 = vrot.lane.b32.xlu1 %v2362_v58, %s3683_s30 }
 0x5bb   :  { %2517 = vrot.lane.b32.xlu0 %v5170_v1, %s3688_s21  ;;  %2519 = vrot.lane.b32.xlu1 %v5168_v41, %s3688_s21 }
 0x5bf   :  { %2698 = vrot.lane.b32.xlu0 %v5163_v57, %s3688_s21  ;;  %2515 = vrot.lane.b32.xlu1 %v5290_v22, %s3688_s21 }
 0x5c3   :  { %2696 = vrot.lane.b32.xlu0 %v5166_v29, %s3688_s21  ;;  %2513 = vrot.lane.b32.xlu1 %v5292_v35, %s3688_s21 }
 0x5c7   :  { %2521 = vrot.lane.b32.xlu0 %v5330_v54, %s3688_s21  ;;  %2511 = vrot.lane.b32.xlu1 %v2358_v46, %s3688_s21 }
 0x5cb   :  { %2702 = vrot.lane.b32.xlu0 %v2386_v62, %s3688_s21  ;;  %2523 = vrot.lane.b32.xlu1 %v5310_v20, %s3688_s21 }
 0x5cf   :  { %2700 = vrot.lane.b32.xlu0 %v5332_v52, %s3688_s21  ;;  %2509 = vrot.lane.b32.xlu1 %v5318_v42, %s3688_s21 }
 0x5d3   :  { %2692 = vrot.lane.b32.xlu0 %v5282_v59, %s3688_s21  ;;  %2694 = vrot.lane.b32.xlu1 %v5294_v5, %s3688_s21 }
 0x5d7   :  { %2688 = vrot.lane.b32.xlu0 %v5320_v33, %s3688_s21  ;;  %2690 = vrot.lane.b32.xlu1 %v2362_v58, %s3688_s21 }
 0x5ed   :  { %v2484_v28 = vpop.permute.xlu1 %2483  ;;  %v2663_v0 = vpop.permute.xlu0 %2662 }
 0x5ee   :  { %2564 = vst.msk [vmem:[#allocation4 + $0x188] sm:$0xff] %vm2539_vm9, %v2484_v28  ;;  %2741 = vst.msk [vmem:[#allocation4 + $0x198] sm:$0xff] %vm2539_vm9, %v2663_v0 }
 0x5ef   :  { %2592 = vst.msk [vmem:[#allocation4 + $0x188] sm:$0xff] %vm2579_vm10, %v3682_v3  ;;  %2768 = vst.msk [vmem:[#allocation4 + $0x198] sm:$0xff] %vm2579_vm10, %v3682_v3 }
 0x5f1   :  { %v2482_v57 = vpop.permute.xlu1 %2481  ;;  %v2661_v4 = vpop.permute.xlu0 %2660 }
 0x5f2   :  { %v5440_v41 = vsel %vm98_vm5, %v2482_v57, %v2484_v28  ;;  %v5443_v10 = vsel %vm98_vm5, %v2661_v4, %v2663_v0 }
 0x5f5   :  { %v2448_v32 = vpop.permute.xlu1 %2447  ;;  %v2667_v40 = vpop.permute.xlu0 %2666 }
 0x5f6   :  { %2556 = vst.msk [vmem:[#allocation4 + $0x108] sm:$0xff] %vm2539_vm9, %v2448_v32  ;;  %2743 = vst.msk [vmem:[#allocation4 + $0x1b8] sm:$0xff] %vm2539_vm9, %v2667_v40 }
 0x5f7   :  { %2588 = vst.msk [vmem:[#allocation4 + $0x108] sm:$0xff] %vm2579_vm10, %v3682_v3  ;;  %2769 = vst.msk [vmem:[#allocation4 + $0x1b8] sm:$0xff] %vm2579_vm10, %v3682_v3 }
 0x5f9   :  { %v2446_v44 = vpop.permute.xlu1 %2445  ;;  %v2665_v50 = vpop.permute.xlu0 %2664 }
 0x5fa   :  { %v5452_v13 = vsel %vm98_vm5, %v2446_v44, %v2448_v32  ;;  %v5455_v26 = vsel %vm98_vm5, %v2665_v50, %v2667_v40 }
 0x5fd   :  { %v2488_v43 = vpop.permute.xlu1 %2487  ;;  %v2629_v6 = vpop.permute.xlu0 %2628 }
 0x5fe   :  { %2566 = vst.msk [vmem:[#allocation4 + $0x1a8] sm:$0xff] %vm2539_vm9, %v2488_v43  ;;  %v2839_v32 = vld [vmem:[#allocation4 + $0x1b8] sm:$0xff] }
 0x5ff   :  { %2593 = vst.msk [vmem:[#allocation4 + $0x1a8] sm:$0xff] %vm2579_vm10, %v3682_v3 }
 0x601   :  { %v2486_v55 = vpop.permute.xlu1 %2485  ;;  %v2490_v37 = vpop.permute.xlu0 %2489 }
 0x602   :  { %v5461_v45 = vsel %vm98_vm5, %v2486_v55, %v2488_v43  ;;  %v2835_v55 = vld [vmem:[#allocation4 + $0x198] sm:$0xff] }
 0x605   :  { %v2452_v38 = vpop.permute.xlu1 %2451  ;;  %v2671_v9 = vpop.permute.xlu0 %2670 }
 0x606   :  { %2558 = vst.msk [vmem:[#allocation4 + $0x128] sm:$0xff] %vm2539_vm9, %v2452_v38  ;;  %2745 = vst.msk [vmem:[#allocation4 + $0x1d8] sm:$0xff] %vm2539_vm9, %v2671_v9 }
 0x607   :  { %2589 = vst.msk [vmem:[#allocation4 + $0x128] sm:$0xff] %vm2579_vm10, %v3682_v3  ;;  %2770 = vst.msk [vmem:[#allocation4 + $0x1d8] sm:$0xff] %vm2579_vm10, %v3682_v3 }
 0x609   :  { %v2450_v39 = vpop.permute.xlu1 %2449  ;;  %v2669_v8 = vpop.permute.xlu0 %2668 }
 0x60a   :  { %v5470_v18 = vsel %vm98_vm5, %v2450_v39, %v2452_v38  ;;  %v2678_v30 = vsel %vm98_vm5, %v2669_v8, %v2671_v9 }
 0x60d   :  { %v2631_v34 = vpop.permute.xlu1 %2630  ;;  %v2635_v22 = vpop.permute.xlu0 %2634 }
 0x60e   :  { %v5474_v5 = vsel %vm98_vm5, %v2629_v6, %v2631_v34  ;;  %2735 = vst.msk [vmem:[#allocation4 + $0x138] sm:$0xff] %vm2539_vm9, %v2631_v34  ;;  %2737 = vst.msk [vmem:[#allocation4 + $0x158] sm:$0xff] %vm2539_vm9, %v2635_v22  ;;  %v2843_v4 = vld [vmem:[#allocation4 + $0x1d8] sm:$0xff] }
 0x60f   :  { %2765 = vst.msk [vmem:[#allocation4 + $0x138] sm:$0xff] %vm2579_vm10, %v3682_v3  ;;  %2766 = vst.msk [vmem:[#allocation4 + $0x158] sm:$0xff] %vm2579_vm10, %v3682_v3 }
 0x611   :  { %v2492_v63 = vpop.permute.xlu1 %2491  ;;  %v2633_v48 = vpop.permute.xlu0 %2632 }
 0x612   :  { %v2499_v14 = vsel %vm98_vm5, %v2490_v37, %v2492_v63  ;;  %2568 = vst.msk [vmem:[#allocation4 + $0x1c8] sm:$0xff] %vm2539_vm9, %v2492_v63  ;;  %v5485_v2 = vsel %vm98_vm5, %v2633_v48, %v2635_v22  ;;  %v2837_v37 = vld [vmem:[#allocation4 + $0x1a8] sm:$0xff] }
 0x613   :  { %2594 = vst.msk [vmem:[#allocation4 + $0x1c8] sm:$0xff] %vm2579_vm10, %v3682_v3 }
 0x615   :  { %v2456_v27 = vpop.permute.xlu1 %2455  ;;  %v2494_v20 = vpop.permute.xlu0 %2493 }
 0x616   :  { %2560 = vst.msk [vmem:[#allocation4 + $0x148] sm:$0xff] %vm2539_vm9, %v2456_v27 }
 0x617   :  { %2590 = vst.msk [vmem:[#allocation4 + $0x148] sm:$0xff] %vm2579_vm10, %v3682_v3 }
 0x619   :  { %v2454_v47 = vpop.permute.xlu1 %2453  ;;  %v2675_v60 = vpop.permute.xlu0 %2674 }
 0x61a   :  { %v5493_v46 = vsel %vm98_vm5, %v2454_v47, %v2456_v27  ;;  %2747 = vst.msk [vmem:[#allocation4 + $0x1f8] sm:$0xff] %vm2539_vm9, %v2675_v60  ;;  %v2841_v6 = vld [vmem:[#allocation4 + $0x1c8] sm:$0xff]  ;;  %v2823_v27 = vld [vmem:[#allocation4 + $0x138] sm:$0xff] }
 0x61b   :  { %2771 = vst.msk [vmem:[#allocation4 + $0x1f8] sm:$0xff] %vm2579_vm10, %v3682_v3 }
 0x61d   :  { %v2496_v62 = vpop.permute.xlu1 %2495  ;;  %v2673_v56 = vpop.permute.xlu0 %2672 }
 0x61e   :  { %v2500_v58 = vsel %vm98_vm5, %v2494_v20, %v2496_v62  ;;  %2570 = vst.msk [vmem:[#allocation4 + $0x1e8] sm:$0xff] %vm2539_vm9, %v2496_v62  ;;  %v2679_v16 = vsel %vm98_vm5, %v2673_v56, %v2675_v60  ;;  %v2825_v48 = vld [vmem:[#allocation4 + $0x148] sm:$0xff]  ;;  %v2815_v56 = vld [vmem:[#allocation4 + $0xf8] sm:$0xff] }
 0x61f   :  { %2595 = vst.msk [vmem:[#allocation4 + $0x1e8] sm:$0xff] %vm2579_vm10, %v3682_v3  ;;  %v2813_v62 = vld [vmem:[#allocation4 + $0xe8] sm:$0xff] }
 0x621   :  { %v2460_v28 = vpop.permute.xlu1 %2459  ;;  %v2625_v0 = vpop.permute.xlu0 %2624 }
 0x622   :  { %2562 = vst.msk [vmem:[#allocation4 + $0x168] sm:$0xff] %vm2539_vm9, %v2460_v28  ;;  %v2847_v57 = vld [vmem:[#allocation4 + $0x1f8] sm:$0xff] }
 0x623   :  { %2591 = vst.msk [vmem:[#allocation4 + $0x168] sm:$0xff] %vm2579_vm10, %v3682_v3  ;;  %2966 = vmatprep.subr.mxu1 %v2847_v57 }
 0x624   :  { %2967 = vmatpush1.msra.mxu1 %v2679_v16 }
 0x625   :  { %v2458_v40 = vpop.permute.xlu1 %2457  ;;  %v2639_v44 = vpop.permute.xlu0 %2638  ;;  %2968 = vmatprep.subr.mxu1 %v2843_v4 }
 0x626   :  { %v2464_v50 = vsel %vm98_vm5, %v2458_v40, %v2460_v28  ;;  %2739 = vst.msk [vmem:[#allocation4 + $0x178] sm:$0xff] %vm2539_vm9, %v2639_v44  ;;  %v2845_v43 = vld [vmem:[#allocation4 + $0x1e8] sm:$0xff]  ;;  %2969 = vmatpush1.msra.mxu1 %v2678_v30 }
 0x627   :  { %2767 = vst.msk [vmem:[#allocation4 + $0x178] sm:$0xff] %vm2579_vm10, %v3682_v3  ;;  %2877 = vmatprep.subr.mxu0 %v2845_v43  ;;  %2970 = vmatprep.subr.mxu1 %v2839_v32  ;;  %v2833_v30 = vld [vmem:[#allocation4 + $0x188] sm:$0xff]  ;;  %v2776_v43 = vld [vmem:[%s5880_s3] sm:$0xff] }
 0x628   :  { %2878 = vmatpush1.msra.mxu0 %v2500_v58  ;;  %2971 = vmatpush1.msra.mxu1 %v5455_v26  ;;  %v2809_v28 = vld [vmem:[#allocation4 + $0xc8] sm:$0xff] }
 0x629   :  { %v2627_v38 = vpop.permute.xlu1 %2626  ;;  %2879 = vmatprep.subr.mxu0 %v2841_v6  ;;  %v2637_v9 = vpop.permute.xlu0 %2636  ;;  %2972 = vmatprep.subr.mxu1 %v2835_v55  ;;  %v2779_v6 = vld [vmem:[%s5880_s3 + $0x18] sm:$0xff] }
 0x62a   :  { %v2640_v39 = vsel %vm98_vm5, %v2625_v0, %v2627_v38  ;;  %2733 = vst.msk [vmem:[#allocation4 + $0x118] sm:$0xff] %vm2539_vm9, %v2627_v38  ;;  %v2643_v8 = vsel %vm98_vm5, %v2637_v9, %v2639_v44  ;;  %2880 = vmatpush1.msra.mxu0 %v2499_v14  ;;  %2973 = vmatpush1.msra.mxu1 %v5443_v10  ;;  %v2829_v26 = vld [vmem:[#allocation4 + $0x168] sm:$0xff]  ;;  %v2827_v14 = vld [vmem:[#allocation4 + $0x158] sm:$0xff]  ;;  %v2780_v9 = vld [vmem:[%s5880_s3 + $0x20] sm:$0xff] }
 0x62b   :  { %2764 = vst.msk [vmem:[#allocation4 + $0x118] sm:$0xff] %vm2579_vm10, %v3682_v3  ;;  %2881 = vmatprep.subr.mxu0 %v2837_v37  ;;  %v2811_v0 = vld [vmem:[#allocation4 + $0xd8] sm:$0xff]  ;;  %v2781_v37 = vld [vmem:[%s5880_s3 + $0x28] sm:$0xff] }
 0x62c   :  { %2882 = vmatpush1.msra.mxu0 %v5461_v45  ;;  %v2821_v45 = vld [vmem:[#allocation4 + $0x128] sm:$0xff] }
 0x62d   :  { %v2520_v34 = vpop.permute.xlu1 %2519  ;;  %2883 = vmatprep.subr.mxu0 %v2833_v30  ;;  %v2518_v22 = vpop.permute.xlu0 %2517 }
 0x62e   :  { %2576 = vst.msk [vmem:[#allocation4 + $0x248] sm:$0xff] %vm2539_vm9, %v2520_v34  ;;  %v5520_v63 = vsel %vm2525_vm12, %v2518_v22, %v2520_v34  ;;  %2884 = vmatpush1.msra.mxu0 %v5440_v41  ;;  %v2831_v10 = vld [vmem:[#allocation4 + $0x178] sm:$0xff]  ;;  %v2817_v41 = vld [vmem:[#allocation4 + $0x108] sm:$0xff] }
 0x62f   :  { %2598 = vst.msk [vmem:[#allocation4 + $0x248] sm:$0xff] %vm2579_vm10, %v3682_v3  ;;  %2885 = vmatprep.subr.mxu0 %v2829_v26  ;;  %2974 = vmatprep.subr.mxu1 %v2831_v10 }
 0x630   :  { %2886 = vmatpush1.msra.mxu0 %v2464_v50  ;;  %2975 = vmatpush1.msra.mxu1 %v2643_v8  ;;  %v2782_v8 = vld [vmem:[%s5880_s3 + $0x30] sm:$0xff] }
 0x631   :  { %v2516_v20 = vpop.permute.xlu1 %2515  ;;  %2887 = vmatprep.subr.mxu0 %v2825_v48  ;;  %v2699_v47 = vpop.permute.xlu0 %2698  ;;  %2976 = vmatprep.subr.mxu1 %v2827_v14 }
 0x632   :  { %2574 = vst.msk [vmem:[#allocation4 + $0x228] sm:$0xff] %vm2539_vm9, %v2516_v20  ;;  %2753 = vst.msk [vmem:[#allocation4 + $0x258] sm:$0xff] %vm2539_vm9, %v2699_v47  ;;  %2888 = vmatpush1.msra.mxu0 %v5493_v46  ;;  %2977 = vmatpush1.msra.mxu1 %v5485_v2  ;;  %v2819_v60 = vld [vmem:[#allocation4 + $0x118] sm:$0xff] }
 0x633   :  { %2597 = vst.msk [vmem:[#allocation4 + $0x228] sm:$0xff] %vm2579_vm10, %v3682_v3  ;;  %2774 = vst.msk [vmem:[#allocation4 + $0x258] sm:$0xff] %vm2579_vm10, %v3682_v3  ;;  %2889 = vmatprep.subr.mxu0 %v2821_v45  ;;  %2978 = vmatprep.subr.mxu1 %v2823_v27 }
 0x634   :  { %2890 = vmatpush1.msra.mxu0 %v5470_v18  ;;  %2979 = vmatpush1.msra.mxu1 %v5474_v5  ;;  %v2805_v18 = vld [vmem:[#allocation4 + $0xa8] sm:$0xff]  ;;  %v2807_v5 = vld [vmem:[#allocation4 + $0xb8] sm:$0xff] }
 0x635   :  { %v2514_v58 = vpop.permute.xlu1 %2513  ;;  %2891 = vmatprep.subr.mxu0 %v2817_v41  ;;  %v2697_v46 = vpop.permute.xlu0 %2696  ;;  %2980 = vmatprep.subr.mxu1 %v2819_v60 }
 0x636   :  { %v5536_v2 = vsel %vm2525_vm12, %v2514_v58, %v2516_v20  ;;  %v5539_v16 = vsel %vm2525_vm12, %v2697_v46, %v2699_v47  ;;  %2892 = vmatpush1.msra.mxu0 %v5452_v13  ;;  %2981 = vmatpush1.msra.mxu1 %v2640_v39  ;;  %v2801_v13 = vld [vmem:[#allocation4 + $0x88] sm:$0xff]  ;;  %v2783_v39 = vld [vmem:[%s5880_s3 + $0x38] sm:$0xff] }
 0x637   :  { %2893 = vmatprep.subr.mxu0 %v2813_v62  ;;  %2982 = vmatprep.subr.mxu1 %v2815_v56  ;;  %v2857_v32 = vld [vmem:[#allocation4 + $0x248] sm:$0xff] }
 0x638   :  { %2894 = vmatpush1.msra.mxu0 %v2383_v21  ;;  %2983 = vmatpush1.msra.mxu1 %v2387_v24  ;;  %v2799_v21 = vld [vmem:[#allocation4 + $0x78] sm:$0xff] }
 0x639   :  { %v2512_v57 = vpop.permute.xlu1 %2511  ;;  %2895 = vmatprep.subr.mxu0 %v2809_v28  ;;  %v2522_v4 = vpop.permute.xlu0 %2521  ;;  %2984 = vmatprep.subr.mxu1 %v2811_v0  ;;  %v2795_v24 = vld [vmem:[#allocation4 + $0x58] sm:$0xff] }
 0x63a   :  { %2572 = vst.msk [vmem:[#allocation4 + $0x208] sm:$0xff] %vm2539_vm9, %v2512_v57  ;;  %2896 = vmatpush1.msra.mxu0 %v2375_v51  ;;  %2985 = vmatpush1.msra.mxu1 %v2379_v36  ;;  %v2793_v36 = vld [vmem:[#allocation4 + $0x48] sm:$0xff]  ;;  %v2859_v44 = vld [vmem:[#allocation4 + $0x258] sm:$0xff] }
 0x63b   :  { %2596 = vst.msk [vmem:[#allocation4 + $0x208] sm:$0xff] %vm2579_vm10, %v3682_v3  ;;  %2897 = vmatprep.subr.mxu0 %v2805_v18  ;;  %2986 = vmatprep.subr.mxu1 %v2807_v5 }
 0x63c   :  { %2898 = vmatpush1.msra.mxu0 %v2367_v25  ;;  %2987 = vmatpush1.msra.mxu1 %v2371_v53 }
 0x63d   :  { %v2524_v49 = vpop.permute.xlu1 %2523  ;;  %2899 = vmatprep.subr.mxu0 %v2801_v13  ;;  %v2703_v51 = vpop.permute.xlu0 %2702  ;;  %2988 = vmatprep.subr.mxu1 %v2803_v23 }
 0x63e   :  { %v2529_v12 = vsel %vm2525_vm12, %v2522_v4, %v2524_v49  ;;  %2578 = vst.msk [vmem:[#allocation4 + $0x268] sm:$0xff] %vm2539_vm9, %v2524_v49  ;;  %2755 = vst.msk [vmem:[#allocation4 + $0x278] sm:$0xff] %vm2539_vm9, %v2703_v51  ;;  %2900 = vmatpush1.msra.mxu0 %v2359_v61  ;;  %2989 = vmatpush1.msra.mxu1 %v2363_v15  ;;  %v2785_v15 = vld [vmem:[#allocation4 + $0x8] sm:$0xff]  ;;  %v2787_v61 = vld [vmem:[#allocation4 + $0x18] sm:$0xff] }
 0x63f   :  { %2599 = vst.msk [vmem:[#allocation4 + $0x268] sm:$0xff] %vm2579_vm10, %v3682_v3  ;;  %2775 = vst.msk [vmem:[#allocation4 + $0x278] sm:$0xff] %vm2579_vm10, %v3682_v3  ;;  %2901 = vmatprep.subr.mxu0 %v2797_v17  ;;  %2990 = vmatprep.subr.mxu1 %v2799_v21 }
 0x640   :  { %2902 = vmatpush1.msra.mxu0 %v5330_v54  ;;  %2991 = vmatpush1.msra.mxu1 %v5332_v52 }
 0x641   :  { %v2510_v53 = vpop.permute.xlu1 %2509  ;;  %2903 = vmatprep.subr.mxu0 %v2793_v36  ;;  %v2701_v25 = vpop.permute.xlu0 %2700  ;;  %2992 = vmatprep.subr.mxu1 %v2795_v24 }
 0x642   :  { %v2526_v19 = vsel %vm2525_vm12, %v2510_v53, %v2512_v57  ;;  %v2707_v7 = vsel %vm2525_vm12, %v2701_v25, %v2703_v51  ;;  %2904 = vmatpush1.msra.mxu0 %v5170_v1  ;;  %2993 = vmatpush1.msra.mxu1 %v5166_v29 }
 0x643   :  { %2905 = vmatprep.subr.mxu0 %v2789_v31  ;;  %2994 = vmatprep.subr.mxu1 %v2791_v11 }
 0x644   :  { %2906 = vmatpush1.msra.mxu0 %v5292_v35  ;;  %2995 = vmatpush1.msra.mxu1 %v5282_v59  ;;  %v2853_v59 = vld [vmem:[#allocation4 + $0x228] sm:$0xff] }
 0x645   :  { %v2695_v54 = vpop.permute.xlu1 %2694  ;;  %2907 = vmatprep.subr.mxu0 %v2785_v15  ;;  %v2693_v52 = vpop.permute.xlu0 %2692  ;;  %2996 = vmatprep.subr.mxu1 %v2787_v61 }
 0x646   :  { %2751 = vst.msk [vmem:[#allocation4 + $0x238] sm:$0xff] %vm2539_vm9, %v2695_v54  ;;  %v2705_v40 = vsel %vm2525_vm12, %v2693_v52, %v2695_v54  ;;  %2908 = vmatpush1.msra.mxu0 %v5318_v42  ;;  %v2861_v1 = vld [vmem:[#allocation4 + $0x268] sm:$0xff]  ;;  %2997 = vmatpush1.msra.mxu1 %v5320_v33  ;;  %v2863_v29 = vld [vmem:[#allocation4 + $0x278] sm:$0xff] }
 0x647   :  { %2773 = vst.msk [vmem:[#allocation4 + $0x238] sm:$0xff] %vm2579_vm10, %v3682_v3  ;;  %2933 = vmatprep.subr.mxu0 %v2861_v1  ;;  %3022 = vmatprep.subr.mxu1 %v2863_v29  ;;  %v2849_v33 = vld [vmem:[#allocation4 + $0x208] sm:$0xff] }
 0x648   :  { %2934 = vmatpush2.msra.mxu0 %v2529_v12  ;;  %3023 = vmatpush2.msra.mxu1 %v2707_v7 }
 0x649   :  { %v2691_v35 = vpop.permute.xlu1 %2690  ;;  %2935 = vmatprep.subr.mxu0 %v2857_v32  ;;  %v2689_v50 = vpop.permute.xlu0 %2688  ;;  %3024 = vmatprep.subr.mxu1 %v2859_v44 }
 0x64a   :  { %2749 = vst.msk [vmem:[#allocation4 + $0x218] sm:$0xff] %vm2539_vm9, %v2691_v35  ;;  %v2704_v42 = vsel %vm2525_vm12, %v2689_v50, %v2691_v35  ;;  %2936 = vmatpush2.msra.mxu0 %v5520_v63  ;;  %3025 = vmatpush2.msra.mxu1 %v5539_v16 }
 0x64b   :  { %2772 = vst.msk [vmem:[#allocation4 + $0x218] sm:$0xff] %vm2579_vm10, %v3682_v3  ;;  %2937 = vmatprep.subr.mxu0 %v2853_v59  ;;  %v2778_v3 = vld [vmem:[%s5880_s3 + $0x10] sm:$0xff] }
 0x64c   :  { %2938 = vmatpush2.msra.mxu0 %v5536_v2 }
 0x64d   :  { %2939 = vmatprep.subr.mxu0 %v2849_v33 }
 0x64e   :  { %2940 = vmatpush2.msra.mxu0 %v2526_v19  ;;  %v2855_v55 = vld [vmem:[#allocation4 + $0x238] sm:$0xff] }
 0x64f   :  { %2942 = vmatmul.mubr.f32.vlgmr.msra.gmra.mxu0 %v2776_v43  ;;  %3026 = vmatprep.subr.mxu1 %v2855_v55  ;;  %v3678_v55 = vld [vmem:[%s5878_s5] sm:$0xff] }
 0x650   :  { %3027 = vmatpush2.msra.mxu1 %v2705_v40  ;;  %3625 = vmatprep.mubr.msk.f32.mxu0 %vm2864_vm11, %v2779_v6 }
 0x652   :  { %v2851_v38 = vld [vmem:[#allocation4 + $0x218] sm:$0xff] }
 0x653   :  { %3028 = vmatprep.subr.mxu1 %v2851_v38  ;;  %2948 = vmatmul.mubr.f32.gmra.mxu0 %v2778_v3  ;;  %v3680_v38 = vld [vmem:[%s5878_s5 + $0x10] sm:$0xff] }
 0x654   :  { %3029 = vmatpush2.msra.mxu1 %v2704_v42  ;;  %3626 = vmatprep.mubr.msk.f32.mxu0 %vm2864_vm11, %v2781_v37 }
 0x655   :  { %3031 = vmatmul.mubr.f32.vlgmr.msra.gmra.mxu1 %v2776_v43 }
 0x656   :  { %3629 = vmatprep.mubr.msk.f32.mxu1 %vm2864_vm11, %v2779_v6  ;;  %v3689_v6 = vmov 5  }
 0x657   :  { %2954 = vmatmul.mubr.f32.gmra.mxu0 %v2780_v9  ;;  %3651 = vset.pattern.permute.xlu1 %v3689_v6 }
 0x658   :  { %3627 = vmatprep.mubr.msk.f32.mxu0 %vm2864_vm11, %v2783_v39 }
 0x659   :  { %3037 = vmatmul.mubr.f32.gmra.mxu1 %v2778_v3  ;;  %v3690_v3 = vmov 4  }
 0x65a   :  { %3630 = vmatprep.mubr.msk.f32.mxu1 %vm2864_vm11, %v2781_v37  ;;  %3652 = vset.pattern.permute.xlu0 %v3690_v3  ;;  %v3679_v37 = vld [vmem:[%s5878_s5 + $0x8] sm:$0xff] }
 0x65b   :  { %2960 = vmatmul.mubr.f32.gmra.mxu0 %v2782_v8 }
 0x65d   :  { %3043 = vmatmul.mubr.f32.gmra.mxu1 %v2780_v9 }
 0x65e   :  { %3631 = vmatprep.mubr.msk.f32.mxu1 %vm2864_vm11, %v2783_v39 }
 0x661   :  { %3049 = vmatmul.mubr.f32.gmra.mxu1 %v2782_v8 }
 0x70f   :  { %v5616_v30 = vpop.f32.mrf.mxu0 }
 0x710   :  { %v3075_v26 = vmul.f32 %v5616_v30, %v5616_v30 }
 0x711   :  { %v5620_v34 = vpop.f32.mrf.mxu0 }
 0x712   :  { %v3076_v22 = vmul.f32 %v5620_v34, %v5620_v34  ;;  %v3055_v48 = vadd.f32 %v5620_v34, %v5616_v30 }
 0x713   :  { %v5624_v63 = vpop.f32.mrf.mxu0 }
 0x714   :  { %v3079_v10 = vmul.f32 %v5624_v63, %v5624_v63  ;;  %v3091_v14 = vadd.f32 %v3076_v22, %v3075_v26 }
 0x715   :  { %v5630_v45 = vpop.f32.mrf.mxu1  ;;  %v5632_v27 = vpop.f32.mrf.mxu0 }
 0x716   :  { %v3056_v20 = vadd.f32 %v3055_v48, %v5630_v45  ;;  %v3077_v47 = vmul.f32 %v5630_v45, %v5630_v45  ;;  %v3060_v41 = vadd.f32 %v5632_v27, %v5624_v63  ;;  %v3080_v60 = vmul.f32 %v5632_v27, %v5632_v27 }
 0x717   :  { %v5641_v62 = vpop.f32.mrf.mxu1  ;;  %v5643_v56 = vpop.f32.mrf.mxu0 }
 0x718   :  { %v3092_v58 = vadd.f32 %v3091_v14, %v3077_v47  ;;  %v3096_v46 = vadd.f32 %v3080_v60, %v3079_v10  ;;  %v3057_v2 = vadd.f32 %v3056_v20, %v5641_v62  ;;  %v3078_v16 = vmul.f32 %v5641_v62, %v5641_v62 }
 0x719   :  { %v3083_v28 = vmul.f32 %v5643_v56, %v5643_v56  ;;  %v5650_v0 = vpop.f32.mrf.mxu1  ;;  %v5652_v18 = vpop.f32.mrf.mxu0 }
 0x71a   :  { %v3061_v5 = vadd.f32 %v3060_v41, %v5650_v0  ;;  %v3081_v57 = vmul.f32 %v5650_v0, %v5650_v0  ;;  %3058 = vadd.xlane.f32.xlu1 %v3057_v2  ;;  %v3065_v4 = vadd.f32 %v5652_v18, %v5643_v56  ;;  %v3084_v13 = vmul.f32 %v5652_v18, %v5652_v18 }
 0x71b   :  { %v5661_v23 = vpop.f32.mrf.mxu1  ;;  %v3093_v17 = vadd.f32 %v3092_v58, %v3078_v16  ;;  %v5663_v21 = vpop.f32.mrf.mxu0 }
 0x71c   :  { %v3097_v49 = vadd.f32 %v3096_v46, %v3081_v57  ;;  %v3082_v51 = vmul.f32 %v5661_v23, %v5661_v23  ;;  %v3101_v12 = vadd.f32 %v3084_v13, %v3083_v28  ;;  %v3062_v36 = vadd.f32 %v3061_v5, %v5661_v23 }
 0x71d   :  { %3094 = vadd.xlane.f32.xlu0 %v3093_v17  ;;  %v3087_v24 = vmul.f32 %v5663_v21, %v5663_v21  ;;  %v5670_v31 = vpop.f32.mrf.mxu1  ;;  %v5672_v11 = vpop.f32.mrf.mxu0 }
 0x71e   :  { %v3066_v53 = vadd.f32 %v3065_v4, %v5670_v31  ;;  %v3085_v25 = vmul.f32 %v5670_v31, %v5670_v31  ;;  %v3070_v19 = vadd.f32 %v5672_v11, %v5663_v21  ;;  %v3088_v7 = vmul.f32 %v5672_v11, %v5672_v11 }
 0x71f   :  { %v5681_v15 = vpop.f32.mrf.mxu1  ;;  %v3098_v61 = vadd.f32 %v3097_v49, %v3082_v51 }
 0x720   :  { %v3106_v54 = vadd.f32 %v3088_v7, %v3087_v24  ;;  %v3102_v52 = vadd.f32 %v3101_v12, %v3085_v25  ;;  %v3067_v32 = vadd.f32 %v3066_v53, %v5681_v15  ;;  %v3086_v40 = vmul.f32 %v5681_v15, %v5681_v15 }
 0x721   :  { %3063 = vadd.xlane.f32.xlu0 %v3062_v36  ;;  %v5686_v1 = vpop.f32.mrf.mxu1  ;;  %3099 = vadd.xlane.f32.xlu1 %v3098_v61 }
 0x722   :  { %v3071_v29 = vadd.f32 %v3070_v19, %v5686_v1  ;;  %v3089_v44 = vmul.f32 %v5686_v1, %v5686_v1  ;;  %v3103_v33 = vadd.f32 %v3102_v52, %v3086_v40 }
 0x723   :  { %v5691_v59 = vpop.f32.mrf.mxu1 }
 0x724   :  { %v3107_v35 = vadd.f32 %v3106_v54, %v3089_v44  ;;  %v3072_v50 = vadd.f32 %v3071_v29, %v5691_v59  ;;  %v3090_v42 = vmul.f32 %v5691_v59, %v5691_v59  ;;  %v5894_v54 = vmov 0   ;;  %v3681_v29 = vld [vmem:[%s5878_s5 + $0x18] sm:$0xff] }
 0x725   :  { %3068 = vadd.xlane.f32.xlu0 %v3067_v32 }
 0x726   :  { %v3108_v43 = vadd.f32 %v3107_v35, %v3090_v42  ;;  %3073 = vadd.xlane.f32.xlu1 %v3072_v50 }
 0x729   :  { %3104 = vadd.xlane.f32.xlu0 %v3103_v33 }
 0x72a   :  { %3109 = vadd.xlane.f32.xlu1 %v3108_v43 }
 0x73b   :  { %3193 = vperm.xlu1 %3651, %v3678_v55  }
 0x73f   :  { %3197 = vperm.xlu1 %3651, %v3679_v37  }
 0x743   :  { %3201 = vperm.xlu1 %3651, %v3680_v38  }
 0x747   :  { %3653 = vset.pattern.permute.xlu1 %v3690_v3 }
 0x7a3   :  { %v3059_v9 = vpop.xlane.xlu1 %3058 }
 0x7a4   :  { %v3112_v39 = vmul.f32 0.0022522523, %v3059_v9 }
 0x7a6   :  { %v3095_v8 = vpop.xlane.xlu0 %3094  ;;  %v3120_v26 = vmul.f32 %v3112_v39, %v3112_v39  ;;  %v3140_v42 = vsub.f32 %v5616_v30, %v3112_v39  ;;  %v3141_v33 = vsub.f32 %v5620_v34, %v3112_v39  ;;  %v3142_v43 = vsub.f32 %v5630_v45, %v3112_v39  ;;  %v3272_v45 = vld [vmem:[%s5881_s4 + $0x40] sm:$0xff] }
 0x7a7   :  { %v3116_v22 = vmul.f32 0.0022522523, %v3095_v8 }
 0x7a9   :  { %v3124_v48 = vsub.f32 %v3116_v22, %v3120_v26 }
 0x7aa   :  { %v3064_v10 = vpop.xlane.xlu0 %3063  ;;  %v3100_v14 = vpop.xlane.xlu1 %3099 }
 0x7ab   :  { %v3128_v20 = vadd.f32 1e-05, %v3124_v48  ;;  %v5705_v47 = vmul.f32 0.0022522523, %v3064_v10  ;;  %v3117_v41 = vmul.f32 0.0022522523, %v3100_v14 }
 0x7ad   :  { %3668 = vrsqrt.f32 %v3128_v20  ;;  %v3121_v60 = vmul.f32 %v5705_v47, %v5705_v47  ;;  %v3144_v30 = vsub.f32 %v5624_v63, %v5705_v47  ;;  %v3145_v34 = vsub.f32 %v5632_v27, %v5705_v47  ;;  %v3264_v63 = vld [vmem:[%s5881_s4] sm:$0xff]  ;;  %v3265_v27 = vld [vmem:[%s5881_s4 + $0x8] sm:$0xff] }
 0x7ae   :  { %v3069_v58 = vpop.xlane.xlu0 %3068  ;;  %v3146_v14 = vsub.f32 %v5650_v0, %v5705_v47  ;;  %v3147_v20 = vsub.f32 %v5661_v23, %v5705_v47 }
 0x7af   :  { %v3125_v46 = vsub.f32 %v3117_v41, %v3121_v60  ;;  %v5709_v2 = vmul.f32 0.0022522523, %v3069_v58  ;;  %v3074_v16 = vpop.xlane.xlu1 %3073  ;;  %v3273_v41 = vld [vmem:[%s5881_s4 + $0x48] sm:$0xff] }
 0x7b0   :  { %v5711_v28 = vmul.f32 0.0022522523, %v3074_v16 }
 0x7b1   :  { %v3129_v5 = vadd.f32 1e-05, %v3125_v46  ;;  %v3122_v57 = vmul.f32 %v5709_v2, %v5709_v2 }
 0x7b2   :  { %v3105_v4 = vpop.xlane.xlu0 %3104  ;;  %v3123_v13 = vmul.f32 %v5711_v28, %v5711_v28 }
 0x7b3   :  { %3670 = vrsqrt.f32 %v3129_v5  ;;  %v3118_v17 = vmul.f32 0.0022522523, %v3105_v4  ;;  %v3110_v49 = vpop.xlane.xlu1 %3109 }
 0x7b4   :  { %v3119_v51 = vmul.f32 0.0022522523, %v3110_v49 }
 0x7b5   :  { %v3126_v12 = vsub.f32 %v3118_v17, %v3122_v57 }
 0x7b6   :  { %v3127_v36 = vsub.f32 %v3119_v51, %v3123_v13 }
 0x7b7   :  { %v3130_v24 = vadd.f32 1e-05, %v3126_v12  ;;  %v3194_v35 = vpop.permute.xlu1 %3193 }
 0x7b8   :  { %v3131_v53 = vadd.f32 1e-05, %v3127_v36 }
 0x7b9   :  { %3672 = vrsqrt.f32 %v3130_v24 }
 0x7ba   :  { %v3669_v25 = vpop.eup %3668  ;;  %3674 = vrsqrt.f32 %v3131_v53 }
 0x7bb   :  { %v3136_v19 = vmul.f32 %v3678_v55, %v3669_v25  ;;  %v3198_v50 = vpop.permute.xlu1 %3197  ;;  %v3143_v55 = vsub.f32 %v5641_v62, %v3112_v39 }
 0x7bd   :  { %3158 = vperm.xlu0 %3652, %v3136_v19  }
 0x7bf   :  { %v5725_v26 = vpop.permute.xlu1 %3201 }
 0x7c0   :  { %v3671_v7 = vpop.eup %3670 }
 0x7c1   :  { %v3137_v61 = vmul.f32 %v3679_v37, %v3671_v7  ;;  %3655 = vset.pattern.permute.xlu0 %v5894_v54  ;;  %v3275_v54 = vld [vmem:[%s5881_s4 + $0x58] sm:$0xff] }
 0x7c3   :  { %3163 = vperm.xlu1 %3653, %v3137_v61   ;;  %v3274_v61 = vld [vmem:[%s5881_s4 + $0x50] sm:$0xff] }
 0x7c6   :  { %v3673_v52 = vpop.eup %3672 }
 0x7c7   :  { %v3675_v32 = vpop.eup %3674  ;;  %v3138_v40 = vmul.f32 %v3680_v38, %v3673_v52 }
 0x7c8   :  { %v3139_v44 = vmul.f32 %v3681_v29, %v3675_v32 }
 0x7c9   :  { %3168 = vperm.xlu1 %3653, %v3138_v40  }
 0x7cd   :  { %3173 = vperm.xlu1 %3653, %v3139_v44   ;;  %v3267_v44 = vld [vmem:[%s5881_s4 + $0x18] sm:$0xff] }
 0x7d1   :  { %3654 = vset.pattern.permute.xlu1 %v3689_v6 }
 0x7d2   :  { %3205 = vperm.xlu1 %3654, %v3681_v29   ;;  %v3266_v29 = vld [vmem:[%s5881_s4 + $0x10] sm:$0xff] }
 0x838   :  { %v3159_v3 = vpop.permute.xlu0 %3158 }
 0x839   :  { %v3176_v37 = vmul.f32 %v3159_v3, %v3140_v42  ;;  %v3177_v38 = vmul.f32 %v3159_v3, %v3141_v33  ;;  %v3178_v9 = vmul.f32 %v3159_v3, %v3142_v43  ;;  %v3179_v8 = vmul.f32 %v3159_v3, %v3143_v55  ;;  %v3280_v3 = vld [vmem:[%s5881_s4 + $0x80] sm:$0xff] }
 0x83a   :  { %v3148_v55 = vsub.f32 %v5643_v56, %v5709_v2 }
 0x83b   :  { %v3208_v22 = vadd.f32 %v3194_v35, %v3176_v37  ;;  %v3209_v6 = vadd.f32 %v3194_v35, %v3177_v38  ;;  %v3210_v48 = vadd.f32 %v3194_v35, %v3178_v9  ;;  %v3211_v10 = vadd.f32 %v3194_v35, %v3179_v8  ;;  %v3281_v37 = vld [vmem:[%s5881_s4 + $0x88] sm:$0xff] }
 0x83c   :  { %v3149_v38 = vsub.f32 %v5652_v18, %v5709_v2 }
 0x83d   :  { %v3224_v62 = vmax.f32 %v3208_v22, 0.0  ;;  %v3225_v39 = vmax.f32 %v3209_v6, 0.0  ;;  %v5747_v60 = vmax.f32 %v3210_v48, 0.0  ;;  %v5749_v58 = vmax.f32 %v3211_v10, 0.0 }
 0x83e   :  { %v3164_v0 = vpop.permute.xlu1 %3163 }
 0x83f   :  { %v3180_v46 = vmul.f32 %v3164_v0, %v3144_v30  ;;  %v3181_v16 = vmul.f32 %v3164_v0, %v3145_v34  ;;  %v3182_v23 = vmul.f32 %v3164_v0, %v3146_v14  ;;  %v3183_v47 = vmul.f32 %v3164_v0, %v3147_v20  ;;  %v3282_v0 = vld [vmem:[%s5881_s4 + $0x90] sm:$0xff] }
 0x840   :  { %v3296_v5 = vmul.f32 %v3272_v45, %v3224_v62  ;;  %v3297_v57 = vmul.f32 %v3273_v41, %v3225_v39  ;;  %v3288_v4 = vmul.f32 %v3264_v63, %v3224_v62  ;;  %v3289_v13 = vmul.f32 %v3265_v27, %v3225_v39 }
 0x841   :  { %v3212_v17 = vadd.f32 %v3198_v50, %v3180_v46  ;;  %v3213_v49 = vadd.f32 %v3198_v50, %v3181_v16  ;;  %v3214_v51 = vadd.f32 %v3198_v50, %v3182_v23  ;;  %v3215_v12 = vadd.f32 %v3198_v50, %v3183_v47 }
 0x842   :  { %v3324_v36 = vadd.f32 %v3297_v57, %v3296_v5  ;;  %v3312_v24 = vadd.f32 %v3289_v13, %v3288_v4  ;;  %v3442_v53 = vmul.f32 %v3264_v63, %v5747_v60  ;;  %v3443_v25 = vmul.f32 %v3265_v27, %v5749_v58 }
 0x843   :  { %v3228_v19 = vmax.f32 %v3212_v17, 0.0  ;;  %v3229_v7 = vmax.f32 %v3213_v49, 0.0  ;;  %v3230_v52 = vmax.f32 %v3214_v51, 0.0  ;;  %v3231_v32 = vmax.f32 %v3215_v12, 0.0 }
 0x844   :  { %3325 = vadd.xlane.f32.xlu0 %v3324_v36  ;;  %3313 = vadd.xlane.f32.xlu1 %v3312_v24  ;;  %v3466_v40 = vadd.f32 %v3443_v25, %v3442_v53  ;;  %v3169_v35 = vpop.permute.xlu1 %3168  ;;  %v3450_v33 = vmul.f32 %v3272_v45, %v5747_v60  ;;  %v3451_v43 = vmul.f32 %v3273_v41, %v5749_v58 }
 0x845   :  { %v3298_v50 = vmul.f32 %v3274_v61, %v3228_v19  ;;  %v3299_v42 = vmul.f32 %v3275_v54, %v3229_v7  ;;  %v3444_v8 = vmul.f32 %v3266_v29, %v3230_v52  ;;  %v3445_v22 = vmul.f32 %v3267_v44, %v3231_v32 }
 0x846   :  { %v3184_v6 = vmul.f32 %v3169_v35, %v3148_v55  ;;  %v3185_v48 = vmul.f32 %v3169_v35, %v3149_v38  ;;  %v3478_v10 = vadd.f32 %v3451_v43, %v3450_v33  ;;  %v3304_v56 = vmul.f32 %v3280_v3, %v3224_v62  ;;  %v3283_v62 = vld [vmem:[%s5881_s4 + $0x98] sm:$0xff] }
 0x847   :  { %v3327_v9 = vadd.f32 %v3299_v42, %v3298_v50  ;;  %v3305_v30 = vmul.f32 %v3281_v37, %v3225_v39  ;;  %v3150_v34 = vsub.f32 %v5670_v31, %v5709_v2  ;;  %v3151_v45 = vsub.f32 %v5681_v15, %v5709_v2 }
 0x848   :  { %3467 = vadd.xlane.f32.xlu0 %v3466_v40  ;;  %v3469_v14 = vadd.f32 %v3445_v22, %v3444_v8  ;;  %v3452_v20 = vmul.f32 %v3274_v61, %v3230_v52  ;;  %v3453_v18 = vmul.f32 %v3275_v54, %v3231_v32  ;;  %v3216_v27 = vadd.f32 %v5725_v26, %v3184_v6  ;;  %v3174_v46 = vpop.permute.xlu1 %3173  ;;  %v3284_v8 = vld [vmem:[%s5881_s4 + $0xa0] sm:$0xff]  ;;  %v3285_v22 = vld [vmem:[%s5881_s4 + $0xa8] sm:$0xff] }
 0x849   :  { %3328 = vadd.xlane.f32.xlu1 %v3327_v9  ;;  %v3186_v41 = vmul.f32 %v3169_v35, %v3150_v34  ;;  %v3187_v63 = vmul.f32 %v3169_v35, %v3151_v45  ;;  %v3217_v31 = vadd.f32 %v5725_v26, %v3185_v48  ;;  %v3336_v15 = vadd.f32 %v3305_v30, %v3304_v56 }
 0x84a   :  { %v3458_v2 = vmul.f32 %v3280_v3, %v5747_v60  ;;  %v3459_v39 = vmul.f32 %v3281_v37, %v5749_v58  ;;  %v3481_v16 = vadd.f32 %v3453_v18, %v3452_v20  ;;  %v3306_v23 = vmul.f32 %v3282_v0, %v3228_v19  ;;  %v3268_v60 = vld [vmem:[%s5881_s4 + $0x20] sm:$0xff]  ;;  %v3269_v58 = vld [vmem:[%s5881_s4 + $0x28] sm:$0xff]  ;;  %v3271_v20 = vld [vmem:[%s5881_s4 + $0x38] sm:$0xff] }
 0x84b   :  { %v3307_v47 = vmul.f32 %v3283_v62, %v3229_v7  ;;  %v3218_v5 = vadd.f32 %v5725_v26, %v3186_v41  ;;  %v3219_v57 = vadd.f32 %v5725_v26, %v3187_v63  ;;  %v3232_v4 = vmax.f32 %v3216_v27, 0.0 }
 0x84c   :  { %3479 = vadd.xlane.f32.xlu0 %v3478_v10  ;;  %v3233_v13 = vmax.f32 %v3217_v31, 0.0  ;;  %v3490_v17 = vadd.f32 %v3459_v39, %v3458_v2  ;;  %v3290_v49 = vmul.f32 %v3266_v29, %v3228_v19  ;;  %v3291_v51 = vmul.f32 %v3267_v44, %v3229_v7  ;;  %v3276_v19 = vld [vmem:[%s5881_s4 + $0x60] sm:$0xff]  ;;  %v3277_v7 = vld [vmem:[%s5881_s4 + $0x68] sm:$0xff] }
 0x84d   :  { %3470 = vadd.xlane.f32.xlu1 %v3469_v14  ;;  %v3339_v12 = vadd.f32 %v3307_v47, %v3306_v23  ;;  %v3460_v36 = vmul.f32 %v3282_v0, %v3230_v52  ;;  %v3461_v24 = vmul.f32 %v3283_v62, %v3231_v32  ;;  %v3234_v53 = vmax.f32 %v3218_v5, 0.0  ;;  %v3206_v54 = vpop.permute.xlu1 %3205  ;;  %v3270_v14 = vld [vmem:[%s5881_s4 + $0x30] sm:$0xff]  ;;  %v3279_v62 = vld [vmem:[%s5881_s4 + $0x78] sm:$0xff] }
 0x84e   :  { %v3152_v26 = vsub.f32 %v5663_v21, %v5711_v28  ;;  %v3153_v25 = vsub.f32 %v5672_v11, %v5711_v28  ;;  %v3235_v61 = vmax.f32 %v3219_v57, 0.0  ;;  %v3315_v52 = vadd.f32 %v3291_v51, %v3290_v49  ;;  %v3278_v0 = vld [vmem:[%s5881_s4 + $0x70] sm:$0xff] }
 0x84f   :  { %v3292_v32 = vmul.f32 %v3268_v60, %v3232_v4  ;;  %v3293_v40 = vmul.f32 %v3269_v58, %v3233_v13  ;;  %v3493_v21 = vadd.f32 %v3461_v24, %v3460_v36  ;;  %v3300_v35 = vmul.f32 %v3276_v19, %v3232_v4 }
 0x850   :  { %3337 = vadd.xlane.f32.xlu0 %v3336_v15  ;;  %v3188_v29 = vmul.f32 %v3174_v46, %v3152_v26  ;;  %v3189_v44 = vmul.f32 %v3174_v46, %v3153_v25  ;;  %v3301_v11 = vmul.f32 %v3277_v7, %v3233_v13  ;;  %v3154_v50 = vsub.f32 %v5686_v1, %v5711_v28 }
 0x851   :  { %3482 = vadd.xlane.f32.xlu1 %v3481_v16  ;;  %v3155_v42 = vsub.f32 %v5691_v59, %v5711_v28  ;;  %v3318_v55 = vadd.f32 %v3293_v40, %v3292_v32  ;;  %v3446_v3 = vmul.f32 %v3268_v60, %v3234_v53  ;;  %v3447_v37 = vmul.f32 %v3269_v58, %v3235_v61 }
 0x852   :  { %v3220_v33 = vadd.f32 %v3206_v54, %v3188_v29  ;;  %v3221_v43 = vadd.f32 %v3206_v54, %v3189_v44  ;;  %v3190_v38 = vmul.f32 %v3174_v46, %v3154_v50  ;;  %v3330_v1 = vadd.f32 %v3301_v11, %v3300_v35 }
 0x853   :  { %v3191_v9 = vmul.f32 %v3174_v46, %v3155_v42  ;;  %v3454_v6 = vmul.f32 %v3276_v19, %v3234_v53  ;;  %v3455_v59 = vmul.f32 %v3277_v7, %v3235_v61  ;;  %v3472_v30 = vadd.f32 %v3447_v37, %v3446_v3 }
 0x854   :  { %3491 = vadd.xlane.f32.xlu0 %v3490_v17  ;;  %v3222_v28 = vadd.f32 %v3206_v54, %v3190_v38  ;;  %v3236_v10 = vmax.f32 %v3220_v33, 0.0  ;;  %v3237_v56 = vmax.f32 %v3221_v43, 0.0  ;;  %v3308_v34 = vmul.f32 %v3284_v8, %v3232_v4  ;;  %v3286_v4 = vld [vmem:[%s5881_s4 + $0xb0] sm:$0xff] }
 0x855   :  { %3340 = vadd.xlane.f32.xlu1 %v3339_v12  ;;  %v3223_v48 = vadd.f32 %v3206_v54, %v3191_v9  ;;  %v3309_v45 = vmul.f32 %v3285_v22, %v3233_v13  ;;  %v3484_v18 = vadd.f32 %v3455_v59, %v3454_v6  ;;  %v3462_v41 = vmul.f32 %v3284_v8, %v3234_v53  ;;  %v3287_v13 = vld [vmem:[%s5881_s4 + $0xb8] sm:$0xff] }
 0x856   :  { %v3463_v63 = vmul.f32 %v3285_v22, %v3235_v61  ;;  %v3238_v27 = vmax.f32 %v3222_v28, 0.0  ;;  %v3294_v2 = vmul.f32 %v3270_v14, %v3236_v10  ;;  %v3295_v39 = vmul.f32 %v3271_v20, %v3237_v56 }
 0x857   :  { %v3239_v31 = vmax.f32 %v3223_v48, 0.0  ;;  %v3342_v15 = vadd.f32 %v3309_v45, %v3308_v34  ;;  %v3302_v16 = vmul.f32 %v3278_v0, %v3236_v10  ;;  %v3303_v23 = vmul.f32 %v3279_v62, %v3237_v56 }
 0x858   :  { %3316 = vadd.xlane.f32.xlu0 %v3315_v52  ;;  %v3496_v46 = vadd.f32 %v3463_v63, %v3462_v41  ;;  %v3321_v47 = vadd.f32 %v3295_v39, %v3294_v2  ;;  %v3456_v5 = vmul.f32 %v3278_v0, %v3238_v27  ;;  %v3448_v49 = vmul.f32 %v3270_v14, %v3238_v27 }
 0x859   :  { %3494 = vadd.xlane.f32.xlu1 %v3493_v21  ;;  %v3457_v57 = vmul.f32 %v3279_v62, %v3239_v31  ;;  %v3333_v17 = vadd.f32 %v3303_v23, %v3302_v16  ;;  %v3449_v51 = vmul.f32 %v3271_v20, %v3239_v31  ;;  %v3310_v58 = vmul.f32 %v3286_v4, %v3236_v10 }
 0x85a   :  { %v3311_v12 = vmul.f32 %v3287_v13, %v3237_v56  ;;  %v3464_v24 = vmul.f32 %v3286_v4, %v3238_v27  ;;  %v3465_v53 = vmul.f32 %v3287_v13, %v3239_v31  ;;  %v3360_v11 = vlaneseq }
 0x85b   :  { %v3487_v60 = vadd.f32 %v3457_v57, %v3456_v5  ;;  %v3475_v36 = vadd.f32 %v3449_v51, %v3448_v49 }
 0x85c   :  { %3319 = vadd.xlane.f32.xlu0 %v3318_v55  ;;  %v3345_v26 = vadd.f32 %v3311_v12, %v3310_v58  ;;  %v3499_v25 = vadd.f32 %v3465_v53, %v3464_v24  ;;  %v3361_v33 = vand.u32 127, %v3360_v11  ;;  %v3363_v37 = vshrl.u32 %v3360_v11, 7 }
 0x85d   :  { %3331 = vadd.xlane.f32.xlu1 %v3330_v1 }
 0x85e   :  { %v3366_v55 = vadd.s32 4294967288, %v3361_v33  ;;  %v3364_v22 = vsub.s32 %v3361_v33, %v3363_v37  ;;  %v3373_v1 = vadd.s32 4294967280, %v3361_v33  ;;  %v3380_v6 = vadd.s32 4294967272, %v3361_v33 }
 0x860   :  { %3473 = vadd.xlane.f32.xlu0 %v3472_v30  ;;  %v3369_v9 = vsub.s32 %v3366_v55, %v3363_v37  ;;  %v3376_v30 = vsub.s32 %v3373_v1, %v3363_v37  ;;  %v3383_v34 = vsub.s32 %v3380_v6, %v3363_v37  ;;  %v3579_v37 = vld [vmem:[%s5882_s6] sm:$0x7] }
 0x861   :  { %3485 = vadd.xlane.f32.xlu1 %v3484_v18 }
 0x864   :  { %3343 = vadd.xlane.f32.xlu0 %v3342_v15 }
 0x865   :  { %3497 = vadd.xlane.f32.xlu1 %v3496_v46 }
 0x868   :  { %3322 = vadd.xlane.f32.xlu0 %v3321_v47 }
 0x869   :  { %3334 = vadd.xlane.f32.xlu1 %v3333_v17 }
 0x86c   :  { %3488 = vadd.xlane.f32.xlu0 %v3487_v60 }
 0x86d   :  { %3476 = vadd.xlane.f32.xlu1 %v3475_v36 }
 0x870   :  { %3346 = vadd.xlane.f32.xlu0 %v3345_v26 }
 0x871   :  { %3500 = vadd.xlane.f32.xlu1 %v3499_v25 }
 0x8cd   :  { %v3326_v19 = vpop.xlane.xlu0 %3325  ;;  %v5837_v7 = vpop.xlane.xlu1 %3313 }
 0x8ce   :  { %v3390_v56 = vrot.slane %v3326_v19, %v3364_v22  ;;  %v3365_v18 = vrot.slane %v5837_v7, %v3364_v22 }
 0x8d1   :  { %v3468_v61 = vpop.xlane.xlu0 %3467 }
 0x8d2   :  { %v3329_v54 = vpop.xlane.xlu1 %3328  ;;  %v3517_v45 = vrot.slane %v3468_v61, %v3364_v22 }
 0x8d3   :  { %v3394_v28 = vrot.slane %v3329_v54, %v3369_v9 }
 0x8d5   :  { %v3480_v52 = vpop.xlane.xlu0 %3479  ;;  %v3395_v41 = vsel %vm3371_vm13, %v3394_v28, %v3390_v56 }
 0x8d6   :  { %v3471_v32 = vpop.xlane.xlu1 %3470  ;;  %v3536_v27 = vrot.slane %v3480_v52, %v3364_v22 }
 0x8d7   :  { %v3521_v48 = vrot.slane %v3471_v32, %v3369_v9 }
 0x8d9   :  { %v5839_v40 = vpop.xlane.xlu0 %3337  ;;  %v3522_v0 = vsel %vm3371_vm13, %v3521_v48, %v3517_v45 }
 0x8da   :  { %v3483_v29 = vpop.xlane.xlu1 %3482  ;;  %v3409_v2 = vrot.slane %v5839_v40, %v3364_v22 }
 0x8db   :  { %v3540_v14 = vrot.slane %v3483_v29, %v3369_v9 }
 0x8dd   :  { %v5841_v44 = vpop.xlane.xlu0 %3491  ;;  %v3541_v23 = vsel %vm3371_vm13, %v3540_v14, %v3536_v27 }
 0x8de   :  { %v3341_v21 = vpop.xlane.xlu1 %3340  ;;  %v3555_v13 = vrot.slane %v5841_v44, %v3364_v22 }
 0x8df   :  { %v3413_v39 = vrot.slane %v3341_v21, %v3369_v9 }
 0x8e1   :  { %v3317_v35 = vpop.xlane.xlu0 %3316  ;;  %v3414_v53 = vsel %vm3371_vm13, %v3413_v39, %v3409_v2 }
 0x8e2   :  { %v3495_v50 = vpop.xlane.xlu1 %3494  ;;  %v3370_v62 = vrot.slane %v3317_v35, %v3369_v9 }
 0x8e3   :  { %v3559_v47 = vrot.slane %v3495_v50, %v3369_v9 }
 0x8e4   :  { %v3372_v60 = vsel %vm3371_vm13, %v3370_v62, %v3365_v18 }
 0x8e5   :  { %v3320_v42 = vpop.xlane.xlu0 %3319  ;;  %v3560_v7 = vsel %vm3371_vm13, %v3559_v47, %v3555_v13 }
 0x8e6   :  { %v3332_v43 = vpop.xlane.xlu1 %3331  ;;  %v3377_v46 = vrot.slane %v3320_v42, %v3376_v30 }
 0x8e7   :  { %v3399_v63 = vrot.slane %v3332_v43, %v3376_v30 }
 0x8e8   :  { %v3379_v26 = vsel %vm3378_vm14, %v3377_v46, %v3372_v60 }
 0x8e9   :  { %v3474_v3 = vpop.xlane.xlu0 %3473  ;;  %v3400_v17 = vsel %vm3378_vm14, %v3399_v63, %v3395_v41 }
 0x8ea   :  { %v3486_v38 = vpop.xlane.xlu1 %3485  ;;  %v3526_v16 = vrot.slane %v3474_v3, %v3376_v30 }
 0x8eb   :  { %v3545_v49 = vrot.slane %v3486_v38, %v3376_v30 }
 0x8ec   :  { %v3527_v25 = vsel %vm3378_vm14, %v3526_v16, %v3522_v0 }
 0x8ed   :  { %v3344_v8 = vpop.xlane.xlu0 %3343  ;;  %v3546_v40 = vsel %vm3378_vm14, %v3545_v49, %v3541_v23 }
 0x8ee   :  { %v3498_v59 = vpop.xlane.xlu1 %3497  ;;  %v3418_v5 = vrot.slane %v3344_v8, %v3376_v30 }
 0x8ef   :  { %v3564_v58 = vrot.slane %v3498_v59, %v3376_v30 }
 0x8f0   :  { %v3419_v61 = vsel %vm3378_vm14, %v3418_v5, %v3414_v53 }
 0x8f1   :  { %v3323_v10 = vpop.xlane.xlu0 %3322  ;;  %v3565_v35 = vsel %vm3378_vm14, %v3564_v58, %v3560_v7 }
 0x8f2   :  { %v3335_v20 = vpop.xlane.xlu1 %3334  ;;  %v3384_v57 = vrot.slane %v3323_v10, %v3383_v34 }
 0x8f3   :  { %v3404_v31 = vrot.slane %v3335_v20, %v3383_v34 }
 0x8f4   :  { %v3386_v54 = vsel %vm3385_vm15, %v3384_v57, %v3379_v26 }
 0x8f5   :  { %v3489_v15 = vpop.xlane.xlu0 %3488  ;;  %v3405_v12 = vsel %vm3385_vm15, %v3404_v31, %v3400_v17 }
 0x8f6   :  { %v3477_v4 = vpop.xlane.xlu1 %3476  ;;  %v3550_v36 = vrot.slane %v3489_v15, %v3383_v34  ;;  %v3426_v21 = vsel %vm3425_vm0, %v3405_v12, %v3386_v54 }
 0x8f7   :  { %v3531_v51 = vrot.slane %v3477_v4, %v3383_v34 }
 0x8f8   :  { %v3551_v11 = vsel %vm3385_vm15, %v3550_v36, %v3546_v40 }
 0x8f9   :  { %v3347_v24 = vpop.xlane.xlu0 %3346  ;;  %v3532_v52 = vsel %vm3385_vm15, %v3531_v51, %v3527_v25 }
 0x8fa   :  { %v3423_v19 = vrot.slane %v3347_v24, %v3383_v34  ;;  %v3501_v32 = vpop.xlane.xlu1 %3500  ;;  %v3571_v43 = vsel %vm3425_vm0, %v3551_v11, %v3532_v52 }
 0x8fb   :  { %v3569_v29 = vrot.slane %v3501_v32, %v3383_v34 }
 0x8fc   :  { %v3424_v44 = vsel %vm3385_vm15, %v3423_v19, %v3419_v61 }
 0x8fd   :  { %v3428_v50 = vsel %vm3427_vm1, %v3424_v44, %v3426_v21  ;;  %v3570_v33 = vsel %vm3385_vm15, %v3569_v29, %v3565_v35 }
 0x8fe   :  { %v3431_v42 = vsel %vm3430_vm2, %v3428_v50, 0.0  ;;  %v3572_v55 = vsel %vm3427_vm1, %v3570_v33, %v3571_v43 }
 0x8ff   :  { %3432 = vadd.xlane.f32.xlu0 %v3431_v42  ;;  %v3574_v3 = vsel %vm3430_vm2, %v3572_v55, 0.0 }
 0x900   :  { %3575 = vadd.xlane.f32.xlu1 %v3574_v3 }
 0x915   :  { %3582 = vperm.xlu0 %3655, %v3579_v37  }
 0x988   :  { %v3433_v38 = vpop.xlane.xlu0 %3432 }
 0x989   :  { %v3576_v9 = vpop.xlane.xlu1 %3575 }
 0x98a   :  { %v3578_v22 = vsel %vm3577_vm3, %v3433_v38, %v3576_v9 }
 0x990   :  { %v3583_v8 = vpop.permute.xlu0 %3582 }
 0x991   :  { %v3585_v1 = vadd.f32 %v3583_v8, %v3578_v22 }
 0x993   :  { %3587 = vst.msk [vmem:[%s5883_s7] sm:$0x7] %vm3586_vm4, %v3585_v1 }

</bundles_post_ra>
